<compile_context>
chip_gen: v6e
topology: v6e:2x2x1
jax: 0.10.0
libtpu: 0.0.40
codegen_flags: <defaults>
</compile_context>

<pallas_src>
import jax
import jax.numpy as jnp
from jax.experimental import pallas as pl
from jax.experimental.pallas import tpu as pltpu


def seq2seq_lstm_kernel(src_ref, trg_ref, wx_ref, wh_ref, b_ref, wy_ref, by_ref,
                        prob_ref, zx_src_sc, zx_trg_sc, hdec_sc):
    h2 = wh_ref.shape[0]
    s_src = src_ref.shape[0]
    s_trg = trg_ref.shape[0]

    # -------- hoisted input-side gate matmuls (batched, full sublane occupancy) --------
    wx = wx_ref[...]
    b = b_ref[...]
    zx_src_sc[...] = jnp.dot(src_ref[...], wx, preferred_element_type=jnp.float32) + b
    zx_trg_sc[...] = jnp.dot(trg_ref[...], wx, preferred_element_type=jnp.float32) + b

    wh = wh_ref[...]

    def lstm_cell(zx, h, c):
        # zx already contains x @ Wx + b; only the recurrent matmul is on the serial path.
        z = zx + jnp.dot(h, wh, preferred_element_type=jnp.float32)
        ft = jax.nn.sigmoid(z[:, 0 * h2:1 * h2])
        it = jax.nn.sigmoid(z[:, 1 * h2:2 * h2])
        ot = jax.nn.sigmoid(z[:, 2 * h2:3 * h2])
        gt = jnp.tanh(z[:, 3 * h2:4 * h2])
        c_new = ft * c + it * gt
        h_new = ot * jnp.tanh(c_new)
        return h_new, c_new

    # -------- encoder: fully unrolled (static trip count), h/c carried in vregs --------
    h = jnp.zeros((1, h2), jnp.float32)
    c = jnp.zeros((1, h2), jnp.float32)
    for t in range(s_src):
        h, c = lstm_cell(zx_src_sc[pl.ds(t, 1), :], h, c)

    # -------- decoder (train mode): fully unrolled; collect hidden states --------------
    for t in range(s_trg):
        h, c = lstm_cell(zx_trg_sc[pl.ds(t, 1), :], h, c)
        hdec_sc[pl.ds(t, 1), :] = h

    # -------- batched output projection + row softmax, lane-dense output store ---------
    logits = (jnp.dot(hdec_sc[...], wy_ref[...], preferred_element_type=jnp.float32)
              + by_ref[...])                                   # (S_trg, C)
    logits = logits - jnp.max(logits, axis=-1, keepdims=True)
    e = jnp.exp(logits)
    prob_ref[...] = e * pl.reciprocal(jnp.sum(e, axis=-1, keepdims=True), approx=False)


def seq2seq_lstm_forward(embedded_src, embedded_trg, wx, wh, b, wy, by):
    s_src = embedded_src.shape[0]
    s_trg = embedded_trg.shape[0]
    h2 = wh.shape[0]
    c_vocab = wy.shape[1]
    vmem = pl.BlockSpec(memory_space=pltpu.MemorySpace.VMEM)
    return pl.pallas_call(
        seq2seq_lstm_kernel,
        out_shape=jax.ShapeDtypeStruct((s_trg, c_vocab), jnp.float32),
        in_specs=[vmem] * 7,
        out_specs=vmem,
        scratch_shapes=[
            pltpu.VMEM((s_src, 4 * h2), jnp.float32),   # precomputed src @ Wx + b
            pltpu.VMEM((s_trg, 4 * h2), jnp.float32),   # precomputed trg @ Wx + b
            pltpu.VMEM((s_trg, h2), jnp.float32),       # decoder hidden states
        ],
    )(embedded_src, embedded_trg, wx, wh, b, wy, by)


def reference_forward(embedded_src, embedded_trg, wx, wh, b, wy, by):
    """Pure-JAX reference mirroring the PyTorch forward (attention=False, train)."""
    h2 = wh.shape[0]

    def cell(xt, h, c):
        z = xt @ wx + h @ wh + b[0]
        ft = jax.nn.sigmoid(z[0 * h2:1 * h2])
        it = jax.nn.sigmoid(z[1 * h2:2 * h2])
        ot = jax.nn.sigmoid(z[2 * h2:3 * h2])
        gt = jnp.tanh(z[3 * h2:4 * h2])
        c_new = ft * c + it * gt
        h_new = ot * jnp.tanh(c_new)
        return h_new, c_new

    h = jnp.zeros((h2,), jnp.float32)
    c = jnp.zeros((h2,), jnp.float32)
    for t in range(embedded_src.shape[0]):
        h, c = cell(embedded_src[t], h, c)
    probs = []
    for t in range(embedded_trg.shape[0]):
        h, c = cell(embedded_trg[t], h, c)
        yt = h @ wy + by[0]
        probs.append(jax.nn.softmax(yt))
    return jnp.stack(probs)


if __name__ == "__main__":
    # Small shapes consistent with the module (hidden_size=512 -> h2=128).
    DIM = 128          # embedding dim (kept small; module default is 512)
    HIDDEN = 512       # -> h2 = 128
    H2 = HIDDEN // 4
    C = 256            # len(trg_word2ind)
    S_SRC = 8
    S_TRG = 8

    key = jax.random.PRNGKey(0)
    ks = jax.random.split(key, 7)

    # deterministic parameter init (uniform, PyTorch-Linear-style scale 1/sqrt(fan_in))
    fan_in = DIM + H2
    scale = 1.0 / jnp.sqrt(fan_in)
    wx = jax.random.uniform(ks[0], (DIM, 4 * H2), jnp.float32, -scale, scale)
    wh = jax.random.uniform(ks[1], (H2, 4 * H2), jnp.float32, -scale, scale)
    b = jax.random.uniform(ks[2], (1, 4 * H2), jnp.float32, -scale, scale)
    scale_y = 1.0 / jnp.sqrt(H2)
    wy = jax.random.uniform(ks[3], (H2, C), jnp.float32, -scale_y, scale_y)
    by = jax.random.uniform(ks[4], (1, C), jnp.float32, -scale_y, scale_y)

    embedded_src = jax.random.normal(ks[5], (S_SRC, DIM), jnp.float32)
    embedded_trg = jax.random.normal(ks[6], (S_TRG, DIM), jnp.float32)

    # TODO(synk): mode='test' greedy decoding (argmax + embedding-lookup feedback) and the
    # attention=True branch are not part of this train-mode forward and are not implemented.
    prob = seq2seq_lstm_forward(embedded_src, embedded_trg, wx, wh, b, wy, by)
    prob = jax.block_until_ready(prob)

    ref = reference_forward(embedded_src, embedded_trg, wx, wh, b, wy, by)
    assert prob.shape == (S_TRG, C)
    assert jnp.allclose(prob, ref, atol=1e-5, rtol=1e-5), "mismatch vs reference"

    print("KERNEL_OK")
</pallas_src>

<mosaic_0001>
module attributes {stable_mosaic.version = 11 : i64} {
  func.func @seq2seq_lstm_kernel(%arg0: memref<8x128xf32, #tpu.memory_space<vmem>>, %arg1: memref<8x128xf32, #tpu.memory_space<vmem>>, %arg2: memref<128x512xf32, #tpu.memory_space<vmem>>, %arg3: memref<128x512xf32, #tpu.memory_space<vmem>>, %arg4: memref<1x512xf32, #tpu.memory_space<vmem>>, %arg5: memref<128x256xf32, #tpu.memory_space<vmem>>, %arg6: memref<1x256xf32, #tpu.memory_space<vmem>>, %arg7: memref<8x256xf32, #tpu.memory_space<vmem>>, %arg8: memref<8x512xf32, #tpu.memory_space<vmem>>, %arg9: memref<8x512xf32, #tpu.memory_space<vmem>>, %arg10: memref<8x128xf32, #tpu.memory_space<vmem>>) attributes {dimension_semantics = [], scalar_prefetch = 0 : i64, scratch_operands = 3 : i64, tpu.core_type = #tpu.core_type<tc>} {
    %c0 = arith.constant 0 : index
    %c0_0 = arith.constant 0 : index
    %0 = vector.load %arg2[%c0, %c0_0] : memref<128x512xf32, #tpu.memory_space<vmem>>, vector<128x512xf32>
    %c0_1 = arith.constant 0 : index
    %c0_2 = arith.constant 0 : index
    %1 = vector.load %arg4[%c0_1, %c0_2] : memref<1x512xf32, #tpu.memory_space<vmem>>, vector<1x512xf32>
    %c0_3 = arith.constant 0 : index
    %c0_4 = arith.constant 0 : index
    %2 = vector.load %arg0[%c0_3, %c0_4] : memref<8x128xf32, #tpu.memory_space<vmem>>, vector<8x128xf32>
    %cst = arith.constant dense<0.000000e+00> : vector<8x512xf32>
    %3 = tpu.matmul %2, %0, %cst {dimension_numbers = #tpu.dot_dimension_numbers<[1], [0], [0], [1], [0, 0, 1, 1], [], []>} : vector<8x128xf32>, vector<128x512xf32>, vector<8x512xf32> -> vector<8x512xf32>
    %4 = vector.broadcast %1 : vector<1x512xf32> to vector<8x512xf32>
    %5 = arith.addf %3, %4 : vector<8x512xf32>
    %c0_5 = arith.constant 0 : index
    %c0_6 = arith.constant 0 : index
    %6 = vector.load %arg8[%c0_5, %c0_6] : memref<8x512xf32, #tpu.memory_space<vmem>>, vector<8x512xf32>
    tpu.vector_store %arg8[%c0_5, %c0_6], %5 {strides = array<i32>} : memref<8x512xf32, #tpu.memory_space<vmem>>, vector<8x512xf32>,
    %c0_7 = arith.constant 0 : index
    %c0_8 = arith.constant 0 : index
    %7 = vector.load %arg1[%c0_7, %c0_8] : memref<8x128xf32, #tpu.memory_space<vmem>>, vector<8x128xf32>
    %cst_9 = arith.constant dense<0.000000e+00> : vector<8x512xf32>
    %8 = tpu.matmul %7, %0, %cst_9 {dimension_numbers = #tpu.dot_dimension_numbers<[1], [0], [0], [1], [0, 0, 1, 1], [], []>} : vector<8x128xf32>, vector<128x512xf32>, vector<8x512xf32> -> vector<8x512xf32>
    %9 = vector.broadcast %1 : vector<1x512xf32> to vector<8x512xf32>
    %10 = arith.addf %8, %9 : vector<8x512xf32>
    %c0_10 = arith.constant 0 : index
    %c0_11 = arith.constant 0 : index
    %11 = vector.load %arg9[%c0_10, %c0_11] : memref<8x512xf32, #tpu.memory_space<vmem>>, vector<8x512xf32>
    tpu.vector_store %arg9[%c0_10, %c0_11], %10 {strides = array<i32>} : memref<8x512xf32, #tpu.memory_space<vmem>>, vector<8x512xf32>,
    %c0_12 = arith.constant 0 : index
    %c0_13 = arith.constant 0 : index
    %12 = vector.load %arg3[%c0_12, %c0_13] : memref<128x512xf32, #tpu.memory_space<vmem>>, vector<128x512xf32>
    %cst_14 = arith.constant 0.000000e+00 : f32
    %13 = vector.broadcast %cst_14 : f32 to vector<1x128xf32>
    %cst_15 = arith.constant 0.000000e+00 : f32
    %14 = vector.broadcast %cst_15 : f32 to vector<1x128xf32>
    %c0_16 = arith.constant 0 : index
    %c0_17 = arith.constant 0 : index
    %15 = vector.load %arg8[%c0_16, %c0_17] : memref<8x512xf32, #tpu.memory_space<vmem>>, vector<1x512xf32>
    %cst_18 = arith.constant dense<0.000000e+00> : vector<1x512xf32>
    %16 = tpu.matmul %13, %12, %cst_18 {dimension_numbers = #tpu.dot_dimension_numbers<[1], [0], [0], [1], [0, 0, 1, 1], [], []>} : vector<1x128xf32>, vector<128x512xf32>, vector<1x512xf32> -> vector<1x512xf32>
    %17 = arith.addf %15, %16 : vector<1x512xf32>
    %18 = vector.extract_strided_slice %17 {offsets = [0, 0], sizes = [1, 128], strides = [1, 1]} : vector<1x512xf32> to vector<1x128xf32>
    %19 = arith.negf %18 : vector<1x128xf32>
    %20 = math.exp %19 : vector<1x128xf32>
    %cst_19 = arith.constant 1.000000e+00 : f32
    %21 = vector.broadcast %cst_19 : f32 to vector<1x128xf32>
    %22 = arith.addf %21, %20 : vector<1x128xf32>
    %23 = arith.divf %21, %22 : vector<1x128xf32>
    %24 = vector.extract_strided_slice %17 {offsets = [0, 128], sizes = [1, 128], strides = [1, 1]} : vector<1x512xf32> to vector<1x128xf32>
    %25 = arith.negf %24 : vector<1x128xf32>
    %26 = math.exp %25 : vector<1x128xf32>
    %cst_20 = arith.constant 1.000000e+00 : f32
    %27 = vector.broadcast %cst_20 : f32 to vector<1x128xf32>
    %28 = arith.addf %27, %26 : vector<1x128xf32>
    %29 = arith.divf %27, %28 : vector<1x128xf32>
    %30 = vector.extract_strided_slice %17 {offsets = [0, 256], sizes = [1, 128], strides = [1, 1]} : vector<1x512xf32> to vector<1x128xf32>
    %31 = arith.negf %30 : vector<1x128xf32>
    %32 = math.exp %31 : vector<1x128xf32>
    %cst_21 = arith.constant 1.000000e+00 : f32
    %33 = vector.broadcast %cst_21 : f32 to vector<1x128xf32>
    %34 = arith.addf %33, %32 : vector<1x128xf32>
    %35 = arith.divf %33, %34 : vector<1x128xf32>
    %36 = vector.extract_strided_slice %17 {offsets = [0, 384], sizes = [1, 128], strides = [1, 1]} : vector<1x512xf32> to vector<1x128xf32>
    %37 = math.tanh %36 : vector<1x128xf32>
    %38 = arith.mulf %23, %14 : vector<1x128xf32>
    %39 = arith.mulf %29, %37 : vector<1x128xf32>
    %40 = arith.addf %38, %39 : vector<1x128xf32>
    %41 = math.tanh %40 : vector<1x128xf32>
    %42 = arith.mulf %35, %41 : vector<1x128xf32>
    %c1 = arith.constant 1 : index
    %c0_22 = arith.constant 0 : index
    %43 = vector.load %arg8[%c1, %c0_22] : memref<8x512xf32, #tpu.memory_space<vmem>>, vector<1x512xf32>
    %cst_23 = arith.constant dense<0.000000e+00> : vector<1x512xf32>
    %44 = tpu.matmul %42, %12, %cst_23 {dimension_numbers = #tpu.dot_dimension_numbers<[1], [0], [0], [1], [0, 0, 1, 1], [], []>} : vector<1x128xf32>, vector<128x512xf32>, vector<1x512xf32> -> vector<1x512xf32>
    %45 = arith.addf %43, %44 : vector<1x512xf32>
    %46 = vector.extract_strided_slice %45 {offsets = [0, 0], sizes = [1, 128], strides = [1, 1]} : vector<1x512xf32> to vector<1x128xf32>
    %47 = arith.negf %46 : vector<1x128xf32>
    %48 = math.exp %47 : vector<1x128xf32>
    %cst_24 = arith.constant 1.000000e+00 : f32
    %49 = vector.broadcast %cst_24 : f32 to vector<1x128xf32>
    %50 = arith.addf %49, %48 : vector<1x128xf32>
    %51 = arith.divf %49, %50 : vector<1x128xf32>
    %52 = vector.extract_strided_slice %45 {offsets = [0, 128], sizes = [1, 128], strides = [1, 1]} : vector<1x512xf32> to vector<1x128xf32>
    %53 = arith.negf %52 : vector<1x128xf32>
    %54 = math.exp %53 : vector<1x128xf32>
    %cst_25 = arith.constant 1.000000e+00 : f32
    %55 = vector.broadcast %cst_25 : f32 to vector<1x128xf32>
    %56 = arith.addf %55, %54 : vector<1x128xf32>
    %57 = arith.divf %55, %56 : vector<1x128xf32>
    %58 = vector.extract_strided_slice %45 {offsets = [0, 256], sizes = [1, 128], strides = [1, 1]} : vector<1x512xf32> to vector<1x128xf32>
    %59 = arith.negf %58 : vector<1x128xf32>
    %60 = math.exp %59 : vector<1x128xf32>
    %cst_26 = arith.constant 1.000000e+00 : f32
    %61 = vector.broadcast %cst_26 : f32 to vector<1x128xf32>
    %62 = arith.addf %61, %60 : vector<1x128xf32>
    %63 = arith.divf %61, %62 : vector<1x128xf32>
    %64 = vector.extract_strided_slice %45 {offsets = [0, 384], sizes = [1, 128], strides = [1, 1]} : vector<1x512xf32> to vector<1x128xf32>
    %65 = math.tanh %64 : vector<1x128xf32>
    %66 = arith.mulf %51, %40 : vector<1x128xf32>
    %67 = arith.mulf %57, %65 : vector<1x128xf32>
    %68 = arith.addf %66, %67 : vector<1x128xf32>
    %69 = math.tanh %68 : vector<1x128xf32>
    %70 = arith.mulf %63, %69 : vector<1x128xf32>
    %c2 = arith.constant 2 : index
    %c0_27 = arith.constant 0 : index
    %71 = vector.load %arg8[%c2, %c0_27] : memref<8x512xf32, #tpu.memory_space<vmem>>, vector<1x512xf32>
    %cst_28 = arith.constant dense<0.000000e+00> : vector<1x512xf32>
    %72 = tpu.matmul %70, %12, %cst_28 {dimension_numbers = #tpu.dot_dimension_numbers<[1], [0], [0], [1], [0, 0, 1, 1], [], []>} : vector<1x128xf32>, vector<128x512xf32>, vector<1x512xf32> -> vector<1x512xf32>
    %73 = arith.addf %71, %72 : vector<1x512xf32>
    %74 = vector.extract_strided_slice %73 {offsets = [0, 0], sizes = [1, 128], strides = [1, 1]} : vector<1x512xf32> to vector<1x128xf32>
    %75 = arith.negf %74 : vector<1x128xf32>
    %76 = math.exp %75 : vector<1x128xf32>
    %cst_29 = arith.constant 1.000000e+00 : f32
    %77 = vector.broadcast %cst_29 : f32 to vector<1x128xf32>
    %78 = arith.addf %77, %76 : vector<1x128xf32>
    %79 = arith.divf %77, %78 : vector<1x128xf32>
    %80 = vector.extract_strided_slice %73 {offsets = [0, 128], sizes = [1, 128], strides = [1, 1]} : vector<1x512xf32> to vector<1x128xf32>
    %81 = arith.negf %80 : vector<1x128xf32>
    %82 = math.exp %81 : vector<1x128xf32>
    %cst_30 = arith.constant 1.000000e+00 : f32
    %83 = vector.broadcast %cst_30 : f32 to vector<1x128xf32>
    %84 = arith.addf %83, %82 : vector<1x128xf32>
    %85 = arith.divf %83, %84 : vector<1x128xf32>
    %86 = vector.extract_strided_slice %73 {offsets = [0, 256], sizes = [1, 128], strides = [1, 1]} : vector<1x512xf32> to vector<1x128xf32>
    %87 = arith.negf %86 : vector<1x128xf32>
    %88 = math.exp %87 : vector<1x128xf32>
    %cst_31 = arith.constant 1.000000e+00 : f32
    %89 = vector.broadcast %cst_31 : f32 to vector<1x128xf32>
    %90 = arith.addf %89, %88 : vector<1x128xf32>
    %91 = arith.divf %89, %90 : vector<1x128xf32>
    %92 = vector.extract_strided_slice %73 {offsets = [0, 384], sizes = [1, 128], strides = [1, 1]} : vector<1x512xf32> to vector<1x128xf32>
    %93 = math.tanh %92 : vector<1x128xf32>
    %94 = arith.mulf %79, %68 : vector<1x128xf32>
    %95 = arith.mulf %85, %93 : vector<1x128xf32>
    %96 = arith.addf %94, %95 : vector<1x128xf32>
    %97 = math.tanh %96 : vector<1x128xf32>
    %98 = arith.mulf %91, %97 : vector<1x128xf32>
    %c3 = arith.constant 3 : index
    %c0_32 = arith.constant 0 : index
    %99 = vector.load %arg8[%c3, %c0_32] : memref<8x512xf32, #tpu.memory_space<vmem>>, vector<1x512xf32>
    %cst_33 = arith.constant dense<0.000000e+00> : vector<1x512xf32>
    %100 = tpu.matmul %98, %12, %cst_33 {dimension_numbers = #tpu.dot_dimension_numbers<[1], [0], [0], [1], [0, 0, 1, 1], [], []>} : vector<1x128xf32>, vector<128x512xf32>, vector<1x512xf32> -> vector<1x512xf32>
    %101 = arith.addf %99, %100 : vector<1x512xf32>
    %102 = vector.extract_strided_slice %101 {offsets = [0, 0], sizes = [1, 128], strides = [1, 1]} : vector<1x512xf32> to vector<1x128xf32>
    %103 = arith.negf %102 : vector<1x128xf32>
    %104 = math.exp %103 : vector<1x128xf32>
    %cst_34 = arith.constant 1.000000e+00 : f32
    %105 = vector.broadcast %cst_34 : f32 to vector<1x128xf32>
    %106 = arith.addf %105, %104 : vector<1x128xf32>
    %107 = arith.divf %105, %106 : vector<1x128xf32>
    %108 = vector.extract_strided_slice %101 {offsets = [0, 128], sizes = [1, 128], strides = [1, 1]} : vector<1x512xf32> to vector<1x128xf32>
    %109 = arith.negf %108 : vector<1x128xf32>
    %110 = math.exp %109 : vector<1x128xf32>
    %cst_35 = arith.constant 1.000000e+00 : f32
    %111 = vector.broadcast %cst_35 : f32 to vector<1x128xf32>
    %112 = arith.addf %111, %110 : vector<1x128xf32>
    %113 = arith.divf %111, %112 : vector<1x128xf32>
    %114 = vector.extract_strided_slice %101 {offsets = [0, 256], sizes = [1, 128], strides = [1, 1]} : vector<1x512xf32> to vector<1x128xf32>
    %115 = arith.negf %114 : vector<1x128xf32>
    %116 = math.exp %115 : vector<1x128xf32>
    %cst_36 = arith.constant 1.000000e+00 : f32
    %117 = vector.broadcast %cst_36 : f32 to vector<1x128xf32>
    %118 = arith.addf %117, %116 : vector<1x128xf32>
    %119 = arith.divf %117, %118 : vector<1x128xf32>
    %120 = vector.extract_strided_slice %101 {offsets = [0, 384], sizes = [1, 128], strides = [1, 1]} : vector<1x512xf32> to vector<1x128xf32>
    %121 = math.tanh %120 : vector<1x128xf32>
    %122 = arith.mulf %107, %96 : vector<1x128xf32>
    %123 = arith.mulf %113, %121 : vector<1x128xf32>
    %124 = arith.addf %122, %123 : vector<1x128xf32>
    %125 = math.tanh %124 : vector<1x128xf32>
    %126 = arith.mulf %119, %125 : vector<1x128xf32>
    %c4 = arith.constant 4 : index
    %c0_37 = arith.constant 0 : index
    %127 = vector.load %arg8[%c4, %c0_37] : memref<8x512xf32, #tpu.memory_space<vmem>>, vector<1x512xf32>
    %cst_38 = arith.constant dense<0.000000e+00> : vector<1x512xf32>
    %128 = tpu.matmul %126, %12, %cst_38 {dimension_numbers = #tpu.dot_dimension_numbers<[1], [0], [0], [1], [0, 0, 1, 1], [], []>} : vector<1x128xf32>, vector<128x512xf32>, vector<1x512xf32> -> vector<1x512xf32>
    %129 = arith.addf %127, %128 : vector<1x512xf32>
    %130 = vector.extract_strided_slice %129 {offsets = [0, 0], sizes = [1, 128], strides = [1, 1]} : vector<1x512xf32> to vector<1x128xf32>
    %131 = arith.negf %130 : vector<1x128xf32>
    %132 = math.exp %131 : vector<1x128xf32>
    %cst_39 = arith.constant 1.000000e+00 : f32
    %133 = vector.broadcast %cst_39 : f32 to vector<1x128xf32>
    %134 = arith.addf %133, %132 : vector<1x128xf32>
    %135 = arith.divf %133, %134 : vector<1x128xf32>
    %136 = vector.extract_strided_slice %129 {offsets = [0, 128], sizes = [1, 128], strides = [1, 1]} : vector<1x512xf32> to vector<1x128xf32>
    %137 = arith.negf %136 : vector<1x128xf32>
    %138 = math.exp %137 : vector<1x128xf32>
    %cst_40 = arith.constant 1.000000e+00 : f32
    %139 = vector.broadcast %cst_40 : f32 to vector<1x128xf32>
    %140 = arith.addf %139, %138 : vector<1x128xf32>
    %141 = arith.divf %139, %140 : vector<1x128xf32>
    %142 = vector.extract_strided_slice %129 {offsets = [0, 256], sizes = [1, 128], strides = [1, 1]} : vector<1x512xf32> to vector<1x128xf32>
    %143 = arith.negf %142 : vector<1x128xf32>
    %144 = math.exp %143 : vector<1x128xf32>
    %cst_41 = arith.constant 1.000000e+00 : f32
    %145 = vector.broadcast %cst_41 : f32 to vector<1x128xf32>
    %146 = arith.addf %145, %144 : vector<1x128xf32>
    %147 = arith.divf %145, %146 : vector<1x128xf32>
    %148 = vector.extract_strided_slice %129 {offsets = [0, 384], sizes = [1, 128], strides = [1, 1]} : vector<1x512xf32> to vector<1x128xf32>
    %149 = math.tanh %148 : vector<1x128xf32>
    %150 = arith.mulf %135, %124 : vector<1x128xf32>
    %151 = arith.mulf %141, %149 : vector<1x128xf32>
    %152 = arith.addf %150, %151 : vector<1x128xf32>
    %153 = math.tanh %152 : vector<1x128xf32>
    %154 = arith.mulf %147, %153 : vector<1x128xf32>
    %c5 = arith.constant 5 : index
    %c0_42 = arith.constant 0 : index
    %155 = vector.load %arg8[%c5, %c0_42] : memref<8x512xf32, #tpu.memory_space<vmem>>, vector<1x512xf32>
    %cst_43 = arith.constant dense<0.000000e+00> : vector<1x512xf32>
    %156 = tpu.matmul %154, %12, %cst_43 {dimension_numbers = #tpu.dot_dimension_numbers<[1], [0], [0], [1], [0, 0, 1, 1], [], []>} : vector<1x128xf32>, vector<128x512xf32>, vector<1x512xf32> -> vector<1x512xf32>
    %157 = arith.addf %155, %156 : vector<1x512xf32>
    %158 = vector.extract_strided_slice %157 {offsets = [0, 0], sizes = [1, 128], strides = [1, 1]} : vector<1x512xf32> to vector<1x128xf32>
    %159 = arith.negf %158 : vector<1x128xf32>
    %160 = math.exp %159 : vector<1x128xf32>
    %cst_44 = arith.constant 1.000000e+00 : f32
    %161 = vector.broadcast %cst_44 : f32 to vector<1x128xf32>
    %162 = arith.addf %161, %160 : vector<1x128xf32>
    %163 = arith.divf %161, %162 : vector<1x128xf32>
    %164 = vector.extract_strided_slice %157 {offsets = [0, 128], sizes = [1, 128], strides = [1, 1]} : vector<1x512xf32> to vector<1x128xf32>
    %165 = arith.negf %164 : vector<1x128xf32>
    %166 = math.exp %165 : vector<1x128xf32>
    %cst_45 = arith.constant 1.000000e+00 : f32
    %167 = vector.broadcast %cst_45 : f32 to vector<1x128xf32>
    %168 = arith.addf %167, %166 : vector<1x128xf32>
    %169 = arith.divf %167, %168 : vector<1x128xf32>
    %170 = vector.extract_strided_slice %157 {offsets = [0, 256], sizes = [1, 128], strides = [1, 1]} : vector<1x512xf32> to vector<1x128xf32>
    %171 = arith.negf %170 : vector<1x128xf32>
    %172 = math.exp %171 : vector<1x128xf32>
    %cst_46 = arith.constant 1.000000e+00 : f32
    %173 = vector.broadcast %cst_46 : f32 to vector<1x128xf32>
    %174 = arith.addf %173, %172 : vector<1x128xf32>
    %175 = arith.divf %173, %174 : vector<1x128xf32>
    %176 = vector.extract_strided_slice %157 {offsets = [0, 384], sizes = [1, 128], strides = [1, 1]} : vector<1x512xf32> to vector<1x128xf32>
    %177 = math.tanh %176 : vector<1x128xf32>
    %178 = arith.mulf %163, %152 : vector<1x128xf32>
    %179 = arith.mulf %169, %177 : vector<1x128xf32>
    %180 = arith.addf %178, %179 : vector<1x128xf32>
    %181 = math.tanh %180 : vector<1x128xf32>
    %182 = arith.mulf %175, %181 : vector<1x128xf32>
    %c6 = arith.constant 6 : index
    %c0_47 = arith.constant 0 : index
    %183 = vector.load %arg8[%c6, %c0_47] : memref<8x512xf32, #tpu.memory_space<vmem>>, vector<1x512xf32>
    %cst_48 = arith.constant dense<0.000000e+00> : vector<1x512xf32>
    %184 = tpu.matmul %182, %12, %cst_48 {dimension_numbers = #tpu.dot_dimension_numbers<[1], [0], [0], [1], [0, 0, 1, 1], [], []>} : vector<1x128xf32>, vector<128x512xf32>, vector<1x512xf32> -> vector<1x512xf32>
    %185 = arith.addf %183, %184 : vector<1x512xf32>
    %186 = vector.extract_strided_slice %185 {offsets = [0, 0], sizes = [1, 128], strides = [1, 1]} : vector<1x512xf32> to vector<1x128xf32>
    %187 = arith.negf %186 : vector<1x128xf32>
    %188 = math.exp %187 : vector<1x128xf32>
    %cst_49 = arith.constant 1.000000e+00 : f32
    %189 = vector.broadcast %cst_49 : f32 to vector<1x128xf32>
    %190 = arith.addf %189, %188 : vector<1x128xf32>
    %191 = arith.divf %189, %190 : vector<1x128xf32>
    %192 = vector.extract_strided_slice %185 {offsets = [0, 128], sizes = [1, 128], strides = [1, 1]} : vector<1x512xf32> to vector<1x128xf32>
    %193 = arith.negf %192 : vector<1x128xf32>
    %194 = math.exp %193 : vector<1x128xf32>
    %cst_50 = arith.constant 1.000000e+00 : f32
    %195 = vector.broadcast %cst_50 : f32 to vector<1x128xf32>
    %196 = arith.addf %195, %194 : vector<1x128xf32>
    %197 = arith.divf %195, %196 : vector<1x128xf32>
    %198 = vector.extract_strided_slice %185 {offsets = [0, 256], sizes = [1, 128], strides = [1, 1]} : vector<1x512xf32> to vector<1x128xf32>
    %199 = arith.negf %198 : vector<1x128xf32>
    %200 = math.exp %199 : vector<1x128xf32>
    %cst_51 = arith.constant 1.000000e+00 : f32
    %201 = vector.broadcast %cst_51 : f32 to vector<1x128xf32>
    %202 = arith.addf %201, %200 : vector<1x128xf32>
    %203 = arith.divf %201, %202 : vector<1x128xf32>
    %204 = vector.extract_strided_slice %185 {offsets = [0, 384], sizes = [1, 128], strides = [1, 1]} : vector<1x512xf32> to vector<1x128xf32>
    %205 = math.tanh %204 : vector<1x128xf32>
    %206 = arith.mulf %191, %180 : vector<1x128xf32>
    %207 = arith.mulf %197, %205 : vector<1x128xf32>
    %208 = arith.addf %206, %207 : vector<1x128xf32>
    %209 = math.tanh %208 : vector<1x128xf32>
    %210 = arith.mulf %203, %209 : vector<1x128xf32>
    %c7 = arith.constant 7 : index
    %c0_52 = arith.constant 0 : index
    %211 = vector.load %arg8[%c7, %c0_52] : memref<8x512xf32, #tpu.memory_space<vmem>>, vector<1x512xf32>
    %cst_53 = arith.constant dense<0.000000e+00> : vector<1x512xf32>
    %212 = tpu.matmul %210, %12, %cst_53 {dimension_numbers = #tpu.dot_dimension_numbers<[1], [0], [0], [1], [0, 0, 1, 1], [], []>} : vector<1x128xf32>, vector<128x512xf32>, vector<1x512xf32> -> vector<1x512xf32>
    %213 = arith.addf %211, %212 : vector<1x512xf32>
    %214 = vector.extract_strided_slice %213 {offsets = [0, 0], sizes = [1, 128], strides = [1, 1]} : vector<1x512xf32> to vector<1x128xf32>
    %215 = arith.negf %214 : vector<1x128xf32>
    %216 = math.exp %215 : vector<1x128xf32>
    %cst_54 = arith.constant 1.000000e+00 : f32
    %217 = vector.broadcast %cst_54 : f32 to vector<1x128xf32>
    %218 = arith.addf %217, %216 : vector<1x128xf32>
    %219 = arith.divf %217, %218 : vector<1x128xf32>
    %220 = vector.extract_strided_slice %213 {offsets = [0, 128], sizes = [1, 128], strides = [1, 1]} : vector<1x512xf32> to vector<1x128xf32>
    %221 = arith.negf %220 : vector<1x128xf32>
    %222 = math.exp %221 : vector<1x128xf32>
    %cst_55 = arith.constant 1.000000e+00 : f32
    %223 = vector.broadcast %cst_55 : f32 to vector<1x128xf32>
    %224 = arith.addf %223, %222 : vector<1x128xf32>
    %225 = arith.divf %223, %224 : vector<1x128xf32>
    %226 = vector.extract_strided_slice %213 {offsets = [0, 256], sizes = [1, 128], strides = [1, 1]} : vector<1x512xf32> to vector<1x128xf32>
    %227 = arith.negf %226 : vector<1x128xf32>
    %228 = math.exp %227 : vector<1x128xf32>
    %cst_56 = arith.constant 1.000000e+00 : f32
    %229 = vector.broadcast %cst_56 : f32 to vector<1x128xf32>
    %230 = arith.addf %229, %228 : vector<1x128xf32>
    %231 = arith.divf %229, %230 : vector<1x128xf32>
    %232 = vector.extract_strided_slice %213 {offsets = [0, 384], sizes = [1, 128], strides = [1, 1]} : vector<1x512xf32> to vector<1x128xf32>
    %233 = math.tanh %232 : vector<1x128xf32>
    %234 = arith.mulf %219, %208 : vector<1x128xf32>
    %235 = arith.mulf %225, %233 : vector<1x128xf32>
    %236 = arith.addf %234, %235 : vector<1x128xf32>
    %237 = math.tanh %236 : vector<1x128xf32>
    %238 = arith.mulf %231, %237 : vector<1x128xf32>
    %c0_57 = arith.constant 0 : index
    %c0_58 = arith.constant 0 : index
    %239 = vector.load %arg9[%c0_57, %c0_58] : memref<8x512xf32, #tpu.memory_space<vmem>>, vector<1x512xf32>
    %cst_59 = arith.constant dense<0.000000e+00> : vector<1x512xf32>
    %240 = tpu.matmul %238, %12, %cst_59 {dimension_numbers = #tpu.dot_dimension_numbers<[1], [0], [0], [1], [0, 0, 1, 1], [], []>} : vector<1x128xf32>, vector<128x512xf32>, vector<1x512xf32> -> vector<1x512xf32>
    %241 = arith.addf %239, %240 : vector<1x512xf32>
    %242 = vector.extract_strided_slice %241 {offsets = [0, 0], sizes = [1, 128], strides = [1, 1]} : vector<1x512xf32> to vector<1x128xf32>
    %243 = arith.negf %242 : vector<1x128xf32>
    %244 = math.exp %243 : vector<1x128xf32>
    %cst_60 = arith.constant 1.000000e+00 : f32
    %245 = vector.broadcast %cst_60 : f32 to vector<1x128xf32>
    %246 = arith.addf %245, %244 : vector<1x128xf32>
    %247 = arith.divf %245, %246 : vector<1x128xf32>
    %248 = vector.extract_strided_slice %241 {offsets = [0, 128], sizes = [1, 128], strides = [1, 1]} : vector<1x512xf32> to vector<1x128xf32>
    %249 = arith.negf %248 : vector<1x128xf32>
    %250 = math.exp %249 : vector<1x128xf32>
    %cst_61 = arith.constant 1.000000e+00 : f32
    %251 = vector.broadcast %cst_61 : f32 to vector<1x128xf32>
    %252 = arith.addf %251, %250 : vector<1x128xf32>
    %253 = arith.divf %251, %252 : vector<1x128xf32>
    %254 = vector.extract_strided_slice %241 {offsets = [0, 256], sizes = [1, 128], strides = [1, 1]} : vector<1x512xf32> to vector<1x128xf32>
    %255 = arith.negf %254 : vector<1x128xf32>
    %256 = math.exp %255 : vector<1x128xf32>
    %cst_62 = arith.constant 1.000000e+00 : f32
    %257 = vector.broadcast %cst_62 : f32 to vector<1x128xf32>
    %258 = arith.addf %257, %256 : vector<1x128xf32>
    %259 = arith.divf %257, %258 : vector<1x128xf32>
    %260 = vector.extract_strided_slice %241 {offsets = [0, 384], sizes = [1, 128], strides = [1, 1]} : vector<1x512xf32> to vector<1x128xf32>
    %261 = math.tanh %260 : vector<1x128xf32>
    %262 = arith.mulf %247, %236 : vector<1x128xf32>
    %263 = arith.mulf %253, %261 : vector<1x128xf32>
    %264 = arith.addf %262, %263 : vector<1x128xf32>
    %265 = math.tanh %264 : vector<1x128xf32>
    %266 = arith.mulf %259, %265 : vector<1x128xf32>
    %c0_63 = arith.constant 0 : index
    %c0_64 = arith.constant 0 : index
    %267 = vector.load %arg10[%c0_63, %c0_64] : memref<8x128xf32, #tpu.memory_space<vmem>>, vector<1x128xf32>
    tpu.vector_store %arg10[%c0_63, %c0_64], %266 {strides = array<i32>} : memref<8x128xf32, #tpu.memory_space<vmem>>, vector<1x128xf32>,
    %c1_65 = arith.constant 1 : index
    %c0_66 = arith.constant 0 : index
    %268 = vector.load %arg9[%c1_65, %c0_66] : memref<8x512xf32, #tpu.memory_space<vmem>>, vector<1x512xf32>
    %cst_67 = arith.constant dense<0.000000e+00> : vector<1x512xf32>
    %269 = tpu.matmul %266, %12, %cst_67 {dimension_numbers = #tpu.dot_dimension_numbers<[1], [0], [0], [1], [0, 0, 1, 1], [], []>} : vector<1x128xf32>, vector<128x512xf32>, vector<1x512xf32> -> vector<1x512xf32>
    %270 = arith.addf %268, %269 : vector<1x512xf32>
    %271 = vector.extract_strided_slice %270 {offsets = [0, 0], sizes = [1, 128], strides = [1, 1]} : vector<1x512xf32> to vector<1x128xf32>
    %272 = arith.negf %271 : vector<1x128xf32>
    %273 = math.exp %272 : vector<1x128xf32>
    %cst_68 = arith.constant 1.000000e+00 : f32
    %274 = vector.broadcast %cst_68 : f32 to vector<1x128xf32>
    %275 = arith.addf %274, %273 : vector<1x128xf32>
    %276 = arith.divf %274, %275 : vector<1x128xf32>
    %277 = vector.extract_strided_slice %270 {offsets = [0, 128], sizes = [1, 128], strides = [1, 1]} : vector<1x512xf32> to vector<1x128xf32>
    %278 = arith.negf %277 : vector<1x128xf32>
    %279 = math.exp %278 : vector<1x128xf32>
    %cst_69 = arith.constant 1.000000e+00 : f32
    %280 = vector.broadcast %cst_69 : f32 to vector<1x128xf32>
    %281 = arith.addf %280, %279 : vector<1x128xf32>
    %282 = arith.divf %280, %281 : vector<1x128xf32>
    %283 = vector.extract_strided_slice %270 {offsets = [0, 256], sizes = [1, 128], strides = [1, 1]} : vector<1x512xf32> to vector<1x128xf32>
    %284 = arith.negf %283 : vector<1x128xf32>
    %285 = math.exp %284 : vector<1x128xf32>
    %cst_70 = arith.constant 1.000000e+00 : f32
    %286 = vector.broadcast %cst_70 : f32 to vector<1x128xf32>
    %287 = arith.addf %286, %285 : vector<1x128xf32>
    %288 = arith.divf %286, %287 : vector<1x128xf32>
    %289 = vector.extract_strided_slice %270 {offsets = [0, 384], sizes = [1, 128], strides = [1, 1]} : vector<1x512xf32> to vector<1x128xf32>
    %290 = math.tanh %289 : vector<1x128xf32>
    %291 = arith.mulf %276, %264 : vector<1x128xf32>
    %292 = arith.mulf %282, %290 : vector<1x128xf32>
    %293 = arith.addf %291, %292 : vector<1x128xf32>
    %294 = math.tanh %293 : vector<1x128xf32>
    %295 = arith.mulf %288, %294 : vector<1x128xf32>
    %c1_71 = arith.constant 1 : index
    %c0_72 = arith.constant 0 : index
    %296 = vector.load %arg10[%c1_71, %c0_72] : memref<8x128xf32, #tpu.memory_space<vmem>>, vector<1x128xf32>
    tpu.vector_store %arg10[%c1_71, %c0_72], %295 {strides = array<i32>} : memref<8x128xf32, #tpu.memory_space<vmem>>, vector<1x128xf32>,
    %c2_73 = arith.constant 2 : index
    %c0_74 = arith.constant 0 : index
    %297 = vector.load %arg9[%c2_73, %c0_74] : memref<8x512xf32, #tpu.memory_space<vmem>>, vector<1x512xf32>
    %cst_75 = arith.constant dense<0.000000e+00> : vector<1x512xf32>
    %298 = tpu.matmul %295, %12, %cst_75 {dimension_numbers = #tpu.dot_dimension_numbers<[1], [0], [0], [1], [0, 0, 1, 1], [], []>} : vector<1x128xf32>, vector<128x512xf32>, vector<1x512xf32> -> vector<1x512xf32>
    %299 = arith.addf %297, %298 : vector<1x512xf32>
    %300 = vector.extract_strided_slice %299 {offsets = [0, 0], sizes = [1, 128], strides = [1, 1]} : vector<1x512xf32> to vector<1x128xf32>
    %301 = arith.negf %300 : vector<1x128xf32>
    %302 = math.exp %301 : vector<1x128xf32>
    %cst_76 = arith.constant 1.000000e+00 : f32
    %303 = vector.broadcast %cst_76 : f32 to vector<1x128xf32>
    %304 = arith.addf %303, %302 : vector<1x128xf32>
    %305 = arith.divf %303, %304 : vector<1x128xf32>
    %306 = vector.extract_strided_slice %299 {offsets = [0, 128], sizes = [1, 128], strides = [1, 1]} : vector<1x512xf32> to vector<1x128xf32>
    %307 = arith.negf %306 : vector<1x128xf32>
    %308 = math.exp %307 : vector<1x128xf32>
    %cst_77 = arith.constant 1.000000e+00 : f32
    %309 = vector.broadcast %cst_77 : f32 to vector<1x128xf32>
    %310 = arith.addf %309, %308 : vector<1x128xf32>
    %311 = arith.divf %309, %310 : vector<1x128xf32>
    %312 = vector.extract_strided_slice %299 {offsets = [0, 256], sizes = [1, 128], strides = [1, 1]} : vector<1x512xf32> to vector<1x128xf32>
    %313 = arith.negf %312 : vector<1x128xf32>
    %314 = math.exp %313 : vector<1x128xf32>
    %cst_78 = arith.constant 1.000000e+00 : f32
    %315 = vector.broadcast %cst_78 : f32 to vector<1x128xf32>
    %316 = arith.addf %315, %314 : vector<1x128xf32>
    %317 = arith.divf %315, %316 : vector<1x128xf32>
    %318 = vector.extract_strided_slice %299 {offsets = [0, 384], sizes = [1, 128], strides = [1, 1]} : vector<1x512xf32> to vector<1x128xf32>
    %319 = math.tanh %318 : vector<1x128xf32>
    %320 = arith.mulf %305, %293 : vector<1x128xf32>
    %321 = arith.mulf %311, %319 : vector<1x128xf32>
    %322 = arith.addf %320, %321 : vector<1x128xf32>
    %323 = math.tanh %322 : vector<1x128xf32>
    %324 = arith.mulf %317, %323 : vector<1x128xf32>
    %c2_79 = arith.constant 2 : index
    %c0_80 = arith.constant 0 : index
    %325 = vector.load %arg10[%c2_79, %c0_80] : memref<8x128xf32, #tpu.memory_space<vmem>>, vector<1x128xf32>
    tpu.vector_store %arg10[%c2_79, %c0_80], %324 {strides = array<i32>} : memref<8x128xf32, #tpu.memory_space<vmem>>, vector<1x128xf32>,
    %c3_81 = arith.constant 3 : index
    %c0_82 = arith.constant 0 : index
    %326 = vector.load %arg9[%c3_81, %c0_82] : memref<8x512xf32, #tpu.memory_space<vmem>>, vector<1x512xf32>
    %cst_83 = arith.constant dense<0.000000e+00> : vector<1x512xf32>
    %327 = tpu.matmul %324, %12, %cst_83 {dimension_numbers = #tpu.dot_dimension_numbers<[1], [0], [0], [1], [0, 0, 1, 1], [], []>} : vector<1x128xf32>, vector<128x512xf32>, vector<1x512xf32> -> vector<1x512xf32>
    %328 = arith.addf %326, %327 : vector<1x512xf32>
    %329 = vector.extract_strided_slice %328 {offsets = [0, 0], sizes = [1, 128], strides = [1, 1]} : vector<1x512xf32> to vector<1x128xf32>
    %330 = arith.negf %329 : vector<1x128xf32>
    %331 = math.exp %330 : vector<1x128xf32>
    %cst_84 = arith.constant 1.000000e+00 : f32
    %332 = vector.broadcast %cst_84 : f32 to vector<1x128xf32>
    %333 = arith.addf %332, %331 : vector<1x128xf32>
    %334 = arith.divf %332, %333 : vector<1x128xf32>
    %335 = vector.extract_strided_slice %328 {offsets = [0, 128], sizes = [1, 128], strides = [1, 1]} : vector<1x512xf32> to vector<1x128xf32>
    %336 = arith.negf %335 : vector<1x128xf32>
    %337 = math.exp %336 : vector<1x128xf32>
    %cst_85 = arith.constant 1.000000e+00 : f32
    %338 = vector.broadcast %cst_85 : f32 to vector<1x128xf32>
    %339 = arith.addf %338, %337 : vector<1x128xf32>
    %340 = arith.divf %338, %339 : vector<1x128xf32>
    %341 = vector.extract_strided_slice %328 {offsets = [0, 256], sizes = [1, 128], strides = [1, 1]} : vector<1x512xf32> to vector<1x128xf32>
    %342 = arith.negf %341 : vector<1x128xf32>
    %343 = math.exp %342 : vector<1x128xf32>
    %cst_86 = arith.constant 1.000000e+00 : f32
    %344 = vector.broadcast %cst_86 : f32 to vector<1x128xf32>
    %345 = arith.addf %344, %343 : vector<1x128xf32>
    %346 = arith.divf %344, %345 : vector<1x128xf32>
    %347 = vector.extract_strided_slice %328 {offsets = [0, 384], sizes = [1, 128], strides = [1, 1]} : vector<1x512xf32> to vector<1x128xf32>
    %348 = math.tanh %347 : vector<1x128xf32>
    %349 = arith.mulf %334, %322 : vector<1x128xf32>
    %350 = arith.mulf %340, %348 : vector<1x128xf32>
    %351 = arith.addf %349, %350 : vector<1x128xf32>
    %352 = math.tanh %351 : vector<1x128xf32>
    %353 = arith.mulf %346, %352 : vector<1x128xf32>
    %c3_87 = arith.constant 3 : index
    %c0_88 = arith.constant 0 : index
    %354 = vector.load %arg10[%c3_87, %c0_88] : memref<8x128xf32, #tpu.memory_space<vmem>>, vector<1x128xf32>
    tpu.vector_store %arg10[%c3_87, %c0_88], %353 {strides = array<i32>} : memref<8x128xf32, #tpu.memory_space<vmem>>, vector<1x128xf32>,
    %c4_89 = arith.constant 4 : index
    %c0_90 = arith.constant 0 : index
    %355 = vector.load %arg9[%c4_89, %c0_90] : memref<8x512xf32, #tpu.memory_space<vmem>>, vector<1x512xf32>
    %cst_91 = arith.constant dense<0.000000e+00> : vector<1x512xf32>
    %356 = tpu.matmul %353, %12, %cst_91 {dimension_numbers = #tpu.dot_dimension_numbers<[1], [0], [0], [1], [0, 0, 1, 1], [], []>} : vector<1x128xf32>, vector<128x512xf32>, vector<1x512xf32> -> vector<1x512xf32>
    %357 = arith.addf %355, %356 : vector<1x512xf32>
    %358 = vector.extract_strided_slice %357 {offsets = [0, 0], sizes = [1, 128], strides = [1, 1]} : vector<1x512xf32> to vector<1x128xf32>
    %359 = arith.negf %358 : vector<1x128xf32>
    %360 = math.exp %359 : vector<1x128xf32>
    %cst_92 = arith.constant 1.000000e+00 : f32
    %361 = vector.broadcast %cst_92 : f32 to vector<1x128xf32>
    %362 = arith.addf %361, %360 : vector<1x128xf32>
    %363 = arith.divf %361, %362 : vector<1x128xf32>
    %364 = vector.extract_strided_slice %357 {offsets = [0, 128], sizes = [1, 128], strides = [1, 1]} : vector<1x512xf32> to vector<1x128xf32>
    %365 = arith.negf %364 : vector<1x128xf32>
    %366 = math.exp %365 : vector<1x128xf32>
    %cst_93 = arith.constant 1.000000e+00 : f32
    %367 = vector.broadcast %cst_93 : f32 to vector<1x128xf32>
    %368 = arith.addf %367, %366 : vector<1x128xf32>
    %369 = arith.divf %367, %368 : vector<1x128xf32>
    %370 = vector.extract_strided_slice %357 {offsets = [0, 256], sizes = [1, 128], strides = [1, 1]} : vector<1x512xf32> to vector<1x128xf32>
    %371 = arith.negf %370 : vector<1x128xf32>
    %372 = math.exp %371 : vector<1x128xf32>
    %cst_94 = arith.constant 1.000000e+00 : f32
    %373 = vector.broadcast %cst_94 : f32 to vector<1x128xf32>
    %374 = arith.addf %373, %372 : vector<1x128xf32>
    %375 = arith.divf %373, %374 : vector<1x128xf32>
    %376 = vector.extract_strided_slice %357 {offsets = [0, 384], sizes = [1, 128], strides = [1, 1]} : vector<1x512xf32> to vector<1x128xf32>
    %377 = math.tanh %376 : vector<1x128xf32>
    %378 = arith.mulf %363, %351 : vector<1x128xf32>
    %379 = arith.mulf %369, %377 : vector<1x128xf32>
    %380 = arith.addf %378, %379 : vector<1x128xf32>
    %381 = math.tanh %380 : vector<1x128xf32>
    %382 = arith.mulf %375, %381 : vector<1x128xf32>
    %c4_95 = arith.constant 4 : index
    %c0_96 = arith.constant 0 : index
    %383 = vector.load %arg10[%c4_95, %c0_96] : memref<8x128xf32, #tpu.memory_space<vmem>>, vector<1x128xf32>
    tpu.vector_store %arg10[%c4_95, %c0_96], %382 {strides = array<i32>} : memref<8x128xf32, #tpu.memory_space<vmem>>, vector<1x128xf32>,
    %c5_97 = arith.constant 5 : index
    %c0_98 = arith.constant 0 : index
    %384 = vector.load %arg9[%c5_97, %c0_98] : memref<8x512xf32, #tpu.memory_space<vmem>>, vector<1x512xf32>
    %cst_99 = arith.constant dense<0.000000e+00> : vector<1x512xf32>
    %385 = tpu.matmul %382, %12, %cst_99 {dimension_numbers = #tpu.dot_dimension_numbers<[1], [0], [0], [1], [0, 0, 1, 1], [], []>} : vector<1x128xf32>, vector<128x512xf32>, vector<1x512xf32> -> vector<1x512xf32>
    %386 = arith.addf %384, %385 : vector<1x512xf32>
    %387 = vector.extract_strided_slice %386 {offsets = [0, 0], sizes = [1, 128], strides = [1, 1]} : vector<1x512xf32> to vector<1x128xf32>
    %388 = arith.negf %387 : vector<1x128xf32>
    %389 = math.exp %388 : vector<1x128xf32>
    %cst_100 = arith.constant 1.000000e+00 : f32
    %390 = vector.broadcast %cst_100 : f32 to vector<1x128xf32>
    %391 = arith.addf %390, %389 : vector<1x128xf32>
    %392 = arith.divf %390, %391 : vector<1x128xf32>
    %393 = vector.extract_strided_slice %386 {offsets = [0, 128], sizes = [1, 128], strides = [1, 1]} : vector<1x512xf32> to vector<1x128xf32>
    %394 = arith.negf %393 : vector<1x128xf32>
    %395 = math.exp %394 : vector<1x128xf32>
    %cst_101 = arith.constant 1.000000e+00 : f32
    %396 = vector.broadcast %cst_101 : f32 to vector<1x128xf32>
    %397 = arith.addf %396, %395 : vector<1x128xf32>
    %398 = arith.divf %396, %397 : vector<1x128xf32>
    %399 = vector.extract_strided_slice %386 {offsets = [0, 256], sizes = [1, 128], strides = [1, 1]} : vector<1x512xf32> to vector<1x128xf32>
    %400 = arith.negf %399 : vector<1x128xf32>
    %401 = math.exp %400 : vector<1x128xf32>
    %cst_102 = arith.constant 1.000000e+00 : f32
    %402 = vector.broadcast %cst_102 : f32 to vector<1x128xf32>
    %403 = arith.addf %402, %401 : vector<1x128xf32>
    %404 = arith.divf %402, %403 : vector<1x128xf32>
    %405 = vector.extract_strided_slice %386 {offsets = [0, 384], sizes = [1, 128], strides = [1, 1]} : vector<1x512xf32> to vector<1x128xf32>
    %406 = math.tanh %405 : vector<1x128xf32>
    %407 = arith.mulf %392, %380 : vector<1x128xf32>
    %408 = arith.mulf %398, %406 : vector<1x128xf32>
    %409 = arith.addf %407, %408 : vector<1x128xf32>
    %410 = math.tanh %409 : vector<1x128xf32>
    %411 = arith.mulf %404, %410 : vector<1x128xf32>
    %c5_103 = arith.constant 5 : index
    %c0_104 = arith.constant 0 : index
    %412 = vector.load %arg10[%c5_103, %c0_104] : memref<8x128xf32, #tpu.memory_space<vmem>>, vector<1x128xf32>
    tpu.vector_store %arg10[%c5_103, %c0_104], %411 {strides = array<i32>} : memref<8x128xf32, #tpu.memory_space<vmem>>, vector<1x128xf32>,
    %c6_105 = arith.constant 6 : index
    %c0_106 = arith.constant 0 : index
    %413 = vector.load %arg9[%c6_105, %c0_106] : memref<8x512xf32, #tpu.memory_space<vmem>>, vector<1x512xf32>
    %cst_107 = arith.constant dense<0.000000e+00> : vector<1x512xf32>
    %414 = tpu.matmul %411, %12, %cst_107 {dimension_numbers = #tpu.dot_dimension_numbers<[1], [0], [0], [1], [0, 0, 1, 1], [], []>} : vector<1x128xf32>, vector<128x512xf32>, vector<1x512xf32> -> vector<1x512xf32>
    %415 = arith.addf %413, %414 : vector<1x512xf32>
    %416 = vector.extract_strided_slice %415 {offsets = [0, 0], sizes = [1, 128], strides = [1, 1]} : vector<1x512xf32> to vector<1x128xf32>
    %417 = arith.negf %416 : vector<1x128xf32>
    %418 = math.exp %417 : vector<1x128xf32>
    %cst_108 = arith.constant 1.000000e+00 : f32
    %419 = vector.broadcast %cst_108 : f32 to vector<1x128xf32>
    %420 = arith.addf %419, %418 : vector<1x128xf32>
    %421 = arith.divf %419, %420 : vector<1x128xf32>
    %422 = vector.extract_strided_slice %415 {offsets = [0, 128], sizes = [1, 128], strides = [1, 1]} : vector<1x512xf32> to vector<1x128xf32>
    %423 = arith.negf %422 : vector<1x128xf32>
    %424 = math.exp %423 : vector<1x128xf32>
    %cst_109 = arith.constant 1.000000e+00 : f32
    %425 = vector.broadcast %cst_109 : f32 to vector<1x128xf32>
    %426 = arith.addf %425, %424 : vector<1x128xf32>
    %427 = arith.divf %425, %426 : vector<1x128xf32>
    %428 = vector.extract_strided_slice %415 {offsets = [0, 256], sizes = [1, 128], strides = [1, 1]} : vector<1x512xf32> to vector<1x128xf32>
    %429 = arith.negf %428 : vector<1x128xf32>
    %430 = math.exp %429 : vector<1x128xf32>
    %cst_110 = arith.constant 1.000000e+00 : f32
    %431 = vector.broadcast %cst_110 : f32 to vector<1x128xf32>
    %432 = arith.addf %431, %430 : vector<1x128xf32>
    %433 = arith.divf %431, %432 : vector<1x128xf32>
    %434 = vector.extract_strided_slice %415 {offsets = [0, 384], sizes = [1, 128], strides = [1, 1]} : vector<1x512xf32> to vector<1x128xf32>
    %435 = math.tanh %434 : vector<1x128xf32>
    %436 = arith.mulf %421, %409 : vector<1x128xf32>
    %437 = arith.mulf %427, %435 : vector<1x128xf32>
    %438 = arith.addf %436, %437 : vector<1x128xf32>
    %439 = math.tanh %438 : vector<1x128xf32>
    %440 = arith.mulf %433, %439 : vector<1x128xf32>
    %c6_111 = arith.constant 6 : index
    %c0_112 = arith.constant 0 : index
    %441 = vector.load %arg10[%c6_111, %c0_112] : memref<8x128xf32, #tpu.memory_space<vmem>>, vector<1x128xf32>
    tpu.vector_store %arg10[%c6_111, %c0_112], %440 {strides = array<i32>} : memref<8x128xf32, #tpu.memory_space<vmem>>, vector<1x128xf32>,
    %c7_113 = arith.constant 7 : index
    %c0_114 = arith.constant 0 : index
    %442 = vector.load %arg9[%c7_113, %c0_114] : memref<8x512xf32, #tpu.memory_space<vmem>>, vector<1x512xf32>
    %cst_115 = arith.constant dense<0.000000e+00> : vector<1x512xf32>
    %443 = tpu.matmul %440, %12, %cst_115 {dimension_numbers = #tpu.dot_dimension_numbers<[1], [0], [0], [1], [0, 0, 1, 1], [], []>} : vector<1x128xf32>, vector<128x512xf32>, vector<1x512xf32> -> vector<1x512xf32>
    %444 = arith.addf %442, %443 : vector<1x512xf32>
    %445 = vector.extract_strided_slice %444 {offsets = [0, 0], sizes = [1, 128], strides = [1, 1]} : vector<1x512xf32> to vector<1x128xf32>
    %446 = arith.negf %445 : vector<1x128xf32>
    %447 = math.exp %446 : vector<1x128xf32>
    %cst_116 = arith.constant 1.000000e+00 : f32
    %448 = vector.broadcast %cst_116 : f32 to vector<1x128xf32>
    %449 = arith.addf %448, %447 : vector<1x128xf32>
    %450 = arith.divf %448, %449 : vector<1x128xf32>
    %451 = vector.extract_strided_slice %444 {offsets = [0, 128], sizes = [1, 128], strides = [1, 1]} : vector<1x512xf32> to vector<1x128xf32>
    %452 = arith.negf %451 : vector<1x128xf32>
    %453 = math.exp %452 : vector<1x128xf32>
    %cst_117 = arith.constant 1.000000e+00 : f32
    %454 = vector.broadcast %cst_117 : f32 to vector<1x128xf32>
    %455 = arith.addf %454, %453 : vector<1x128xf32>
    %456 = arith.divf %454, %455 : vector<1x128xf32>
    %457 = vector.extract_strided_slice %444 {offsets = [0, 256], sizes = [1, 128], strides = [1, 1]} : vector<1x512xf32> to vector<1x128xf32>
    %458 = arith.negf %457 : vector<1x128xf32>
    %459 = math.exp %458 : vector<1x128xf32>
    %cst_118 = arith.constant 1.000000e+00 : f32
    %460 = vector.broadcast %cst_118 : f32 to vector<1x128xf32>
    %461 = arith.addf %460, %459 : vector<1x128xf32>
    %462 = arith.divf %460, %461 : vector<1x128xf32>
    %463 = vector.extract_strided_slice %444 {offsets = [0, 384], sizes = [1, 128], strides = [1, 1]} : vector<1x512xf32> to vector<1x128xf32>
    %464 = math.tanh %463 : vector<1x128xf32>
    %465 = arith.mulf %450, %438 : vector<1x128xf32>
    %466 = arith.mulf %456, %464 : vector<1x128xf32>
    %467 = arith.addf %465, %466 : vector<1x128xf32>
    %468 = math.tanh %467 : vector<1x128xf32>
    %469 = arith.mulf %462, %468 : vector<1x128xf32>
    %c7_119 = arith.constant 7 : index
    %c0_120 = arith.constant 0 : index
    %470 = vector.load %arg10[%c7_119, %c0_120] : memref<8x128xf32, #tpu.memory_space<vmem>>, vector<1x128xf32>
    tpu.vector_store %arg10[%c7_119, %c0_120], %469 {strides = array<i32>} : memref<8x128xf32, #tpu.memory_space<vmem>>, vector<1x128xf32>,
    %c0_121 = arith.constant 0 : index
    %c0_122 = arith.constant 0 : index
    %471 = vector.load %arg10[%c0_121, %c0_122] : memref<8x128xf32, #tpu.memory_space<vmem>>, vector<8x128xf32>
    %c0_123 = arith.constant 0 : index
    %c0_124 = arith.constant 0 : index
    %472 = vector.load %arg5[%c0_123, %c0_124] : memref<128x256xf32, #tpu.memory_space<vmem>>, vector<128x256xf32>
    %cst_125 = arith.constant dense<0.000000e+00> : vector<8x256xf32>
    %473 = tpu.matmul %471, %472, %cst_125 {dimension_numbers = #tpu.dot_dimension_numbers<[1], [0], [0], [1], [0, 0, 1, 1], [], []>} : vector<8x128xf32>, vector<128x256xf32>, vector<8x256xf32> -> vector<8x256xf32>
    %c0_126 = arith.constant 0 : index
    %c0_127 = arith.constant 0 : index
    %474 = vector.load %arg6[%c0_126, %c0_127] : memref<1x256xf32, #tpu.memory_space<vmem>>, vector<1x256xf32>
    %475 = vector.broadcast %474 : vector<1x256xf32> to vector<8x256xf32>
    %476 = arith.addf %473, %475 : vector<8x256xf32>
    %cst_128 = arith.constant dense<0xFF800000> : vector<8xf32>
    %477 = vector.multi_reduction <maximumf>, %476, %cst_128 [1] : vector<8x256xf32> to vector<8xf32>
    %478 = vector.shape_cast %477 : vector<8xf32> to vector<8x1xf32>
    %479 = vector.broadcast %478 : vector<8x1xf32> to vector<8x256xf32>
    %480 = arith.subf %476, %479 : vector<8x256xf32>
    %481 = math.exp %480 : vector<8x256xf32>
    %cst_129 = arith.constant dense<0.000000e+00> : vector<8xf32>
    %482 = vector.multi_reduction <add>, %481, %cst_129 [1] : vector<8x256xf32> to vector<8xf32>
    %483 = vector.shape_cast %482 : vector<8xf32> to vector<8x1xf32>
    %484 = tpu.reciprocal %483 : vector<8x1xf32> -> vector<8x1xf32>
    %485 = vector.broadcast %484 : vector<8x1xf32> to vector<8x256xf32>
    %486 = arith.mulf %481, %485 : vector<8x256xf32>
    %c0_130 = arith.constant 0 : index
    %c0_131 = arith.constant 0 : index
    %487 = vector.load %arg7[%c0_130, %c0_131] : memref<8x256xf32, #tpu.memory_space<vmem>>, vector<8x256xf32>
    tpu.vector_store %arg7[%c0_130, %c0_131], %486 {strides = array<i32>} : memref<8x256xf32, #tpu.memory_space<vmem>>, vector<8x256xf32>,
    return
  }
}

</mosaic_0001>

<bundles_post_ra>
// kernel: tpu_custom_call.1
= control target key start
LH: loop header
LB: loop body
LE: loop exit
PB: predicated region body
PF: predicated region fallthrough
CT: control target
= control target key end

     0   :  { %12 = vsyncpa [#allocation6], 0  ;;  %s6453_s0 = inlined_call_operand.hbm [shape: f32[8,128], index: 0, kind: input, shape index: {}]   ;;  %s6454_s1 = inlined_call_operand.hbm [shape: f32[8,128], index: 1, kind: input, shape index: {}]   ;;  %s6455_s2 = inlined_call_operand.hbm [shape: f32[128,512], index: 2, kind: input, shape index: {}]   ;;  %s6456_s3 = inlined_call_operand.hbm [shape: f32[128,512], index: 3, kind: input, shape index: {}]   ;;  %s6457_s4 = inlined_call_operand.vmem [shape: f32[1,512], index: 4, kind: input, shape index: {}]   ;;  %s6458_s5 = inlined_call_operand.hbm [shape: f32[128,256], index: 5, kind: input, shape index: {}]   ;;  %s6459_s6 = inlined_call_operand.vmem [shape: f32[1,256], index: 6, kind: input, shape index: {}]   ;;  %s6460_s7 = inlined_call_operand.hbm [shape: f32[8,256], index: 7, kind: output, shape index: {}]  }
   0x1   :  { %13 = vsyncpa [#allocation9], 0 }
   0x2   :  { %14 = vsyncpa [#allocation12], 0 }
   0x3   :  { %15 = vsyncpa [#allocation7], 0  ;;  %s4613_s24 = smov [#allocation8]  }
   0x4   :  { %s32_s25 = sshll.u32 %s4613_s24, 4  ;;  %s33_s25 = int_to_ptr.vmem [resolvable:$true] %s32_s25 }
   0x5   :  { %s4493_s26 = scalar_lea.vmem %s33_s25, 128  ;;  %p4498_p1 = scmp.lt.s32.totalorder %s33_s25, %s33_s25 }
   0x6   :  { %p4494_p0 = scmp.ne.s32.totalorder %s33_s25, %s4493_s26  ;;  %p4499_p2 = scmp.lt.s32.totalorder %s4493_s26, %s4493_s26 }
   0x8   :  { %p4500_p3 = por %p4499_p2, %p4498_p1 }
   0xa   :  { %p4501_p4 = pnand %p4500_p3, %p4494_p0 }
   0xc   :  { %4504 = shalt.err (!%p4501_p4)
}
   0xd   :  { %35 = dma.hbm_to_vmem [thread:$0]  %s6454_s1, 128, %s33_s25, [#allocation9]  }
   0xe   :  { %s4614_s29 = smov [#allocation11]   ;;  %s4615_s8 = smov [#allocation5]  }
   0xf   :  { %s53_s30 = sshll.u32 %s4614_s29, 4  ;;  %s22_s9 = sshll.u32 %s4615_s8, 4  ;;  %s54_s30 = int_to_ptr.vmem [resolvable:$true] %s53_s30  ;;  %s23_s9 = int_to_ptr.vmem [resolvable:$true] %s22_s9 }
  0x10   :  { %s4513_s10 = scalar_lea.vmem %s54_s30, 8192  ;;  %p4518_p6 = scmp.lt.s32.totalorder %s54_s30, %s54_s30 }
  0x11   :  { %p4514_p5 = scmp.ne.s32.totalorder %s54_s30, %s4513_s10  ;;  %p4519_p7 = scmp.lt.s32.totalorder %s4513_s10, %s4513_s10 }
  0x13   :  { %p4520_p8 = por %p4519_p7, %p4518_p6 }
  0x15   :  { %p4521_p9 = pnand %p4520_p8, %p4514_p5 }
  0x17   :  { %4524 = shalt.err (!%p4521_p9)
}
  0x18   :  { %s4616_s11 = smov 512   ;;  %s4617_s12 = smov 32  }
  0x19   :  { %59 = dma.hbm_to_vmem [thread:$0]  %s6456_s3, 8192, %s54_s30, [#allocation12], %s4616_s11, %s4616_s11, %s4617_s12  }
  0x1a   :  { %s4533_s1 = scalar_lea.vmem %s23_s9, 128  ;;  %p4538_p11 = scmp.lt.s32.totalorder %s23_s9, %s23_s9 }
  0x1b   :  { %p4534_p10 = scmp.ne.s32.totalorder %s23_s9, %s4533_s1  ;;  %p4539_p12 = scmp.lt.s32.totalorder %s4533_s1, %s4533_s1 }
  0x1d   :  { %p4540_p13 = por %p4539_p12, %p4538_p11 }
  0x1f   :  { %p4541_p0 = pnand %p4540_p13, %p4534_p10 }
  0x21   :  { %4544 = shalt.err (!%p4541_p0)
}
  0x22   :  { %25 = dma.hbm_to_vmem [thread:$0]  %s6453_s0, 128, %s23_s9, [#allocation6]  }
  0x23   :  { %s4618_s17 = smov [#allocation10]   ;;  %s4619_s19 = smov [#allocation13]  }
  0x24   :  { %s41_s18 = sshll.u32 %s4618_s17, 4  ;;  %s67_s20 = sshll.u32 %s4619_s19, 4  ;;  %s42_s18 = int_to_ptr.vmem [resolvable:$true] %s41_s18  ;;  %s68_s20 = int_to_ptr.vmem [resolvable:$true] %s67_s20 }
  0x25   :  { %s4553_s21 = scalar_lea.vmem %s42_s18, 8192  ;;  %p4558_p2 = scmp.lt.s32.totalorder %s42_s18, %s42_s18 }
  0x26   :  { %p4554_p1 = scmp.ne.s32.totalorder %s42_s18, %s4553_s21  ;;  %p4559_p3 = scmp.lt.s32.totalorder %s4553_s21, %s4553_s21 }
  0x28   :  { %p4560_p4 = por %p4559_p3, %p4558_p2 }
  0x2a   :  { %p4561_p5 = pnand %p4560_p4, %p4554_p1 }
  0x2c   :  { %4564 = shalt.err (!%p4561_p5)
}
  0x2d   :  { %47 = dma.hbm_to_vmem [thread:$0]  %s6455_s2, 8192, %s42_s18, [#allocation9], %s4616_s11, %s4616_s11, %s4617_s12  }
  0x2e   :  { %s4573_s23 = scalar_lea.vmem %s68_s20, 4096  ;;  %p4578_p7 = scmp.lt.s32.totalorder %s68_s20, %s68_s20 }
  0x2f   :  { %p4574_p6 = scmp.ne.s32.totalorder %s68_s20, %s4573_s23  ;;  %p4579_p8 = scmp.lt.s32.totalorder %s4573_s23, %s4573_s23 }
  0x31   :  { %p4580_p9 = por %p4579_p8, %p4578_p7 }
  0x33   :  { %p4581_p10 = pnand %p4580_p9, %p4574_p6 }
  0x35   :  { %4584 = shalt.err (!%p4581_p10)
}
  0x36   :  { %s4620_s0 = smov 256   ;;  %s4621_s24 = smov 16  }
  0x37   :  { %73 = dma.hbm_to_vmem [thread:$0]  %s6458_s5, 4096, %s68_s20, [#allocation12], %s4620_s0, %s4620_s0, %s4621_s24  }
  0x38   :  { %4605 = dma.done.wait [#allocation6], 128  }
  0x39   :  { %4606 = vsyncadd [#allocation6], 4294967168 }
  0x3a   :  { %4607 = dma.done.wait [#allocation9], 8320  }
  0x3b   :  { %4608 = vsyncadd [#allocation9], 4294958976 }
  0x3c   :  { %4609 = dma.done.wait [#allocation12], 12288  }
  0x3d   :  { %4610 = vsyncadd [#allocation12], 4294955008  ;;  %v6461_v0 = vmov 0.0   ;;  %v4682_v1 = vld [vmem:[#allocation10 + $0x1e8] sm:$0xff]  ;;  %v4684_v2 = vld [vmem:[#allocation10 + $0x1f8] sm:$0xff] }
  0x3e   :  { %242 = vmatprep.mubr.f32.mxu0 %v6461_v0  ;;  %313 = vmatprep.mubr.f32.mxu1 %v6461_v0  ;;  %v4686_v3 = vld [vmem:[#allocation10 + $0x1e0] sm:$0xff]  ;;  %v4690_v4 = vld [vmem:[#allocation10 + $0x1f0] sm:$0xff]  ;;  %v4692_v5 = vld [vmem:[#allocation10 + $0x1c8] sm:$0xff] }
  0x3f   :  { %178 = vmatprep.subr.mxu0 %v4682_v1  ;;  %249 = vmatprep.subr.mxu1 %v4684_v2  ;;  %v4694_v6 = vld [vmem:[#allocation10 + $0x1d8] sm:$0xff]  ;;  %v4698_v7 = vld [vmem:[#allocation10 + $0x1c0] sm:$0xff]  ;;  %v4700_v8 = vld [vmem:[#allocation10 + $0x1d0] sm:$0xff] }
  0x40   :  { %179 = vmatpush1.msra.mxu0 %v4686_v3  ;;  %250 = vmatpush1.msra.mxu1 %v4690_v4  ;;  %v4702_v9 = vld [vmem:[#allocation10 + $0x1a8] sm:$0xff]  ;;  %v4706_v10 = vld [vmem:[#allocation10 + $0x1b8] sm:$0xff]  ;;  %v4708_v11 = vld [vmem:[#allocation10 + $0x1a0] sm:$0xff] }
  0x41   :  { %180 = vmatprep.subr.mxu0 %v4692_v5  ;;  %251 = vmatprep.subr.mxu1 %v4694_v6  ;;  %v4710_v12 = vld [vmem:[#allocation10 + $0x1b0] sm:$0xff]  ;;  %v4714_v13 = vld [vmem:[#allocation10 + $0x188] sm:$0xff]  ;;  %v4716_v14 = vld [vmem:[#allocation10 + $0x198] sm:$0xff] }
  0x42   :  { %181 = vmatpush1.msra.mxu0 %v4698_v7  ;;  %252 = vmatpush1.msra.mxu1 %v4700_v8  ;;  %v4720_v15 = vld [vmem:[#allocation10 + $0x180] sm:$0xff]  ;;  %v4722_v16 = vld [vmem:[#allocation10 + $0x190] sm:$0xff]  ;;  %v4726_v17 = vld [vmem:[#allocation10 + $0x168] sm:$0xff] }
  0x43   :  { %182 = vmatprep.subr.mxu0 %v4702_v9  ;;  %253 = vmatprep.subr.mxu1 %v4706_v10  ;;  %v4728_v18 = vld [vmem:[#allocation10 + $0x178] sm:$0xff]  ;;  %v4732_v19 = vld [vmem:[#allocation10 + $0x160] sm:$0xff]  ;;  %v4734_v20 = vld [vmem:[#allocation10 + $0x170] sm:$0xff] }
  0x44   :  { %183 = vmatpush1.msra.mxu0 %v4708_v11  ;;  %254 = vmatpush1.msra.mxu1 %v4710_v12  ;;  %v4738_v21 = vld [vmem:[#allocation10 + $0x148] sm:$0xff]  ;;  %v4740_v22 = vld [vmem:[#allocation10 + $0x158] sm:$0xff]  ;;  %v4744_v23 = vld [vmem:[#allocation10 + $0x140] sm:$0xff] }
  0x45   :  { %184 = vmatprep.subr.mxu0 %v4714_v13  ;;  %255 = vmatprep.subr.mxu1 %v4716_v14  ;;  %v4746_v24 = vld [vmem:[#allocation10 + $0x150] sm:$0xff]  ;;  %v4750_v25 = vld [vmem:[#allocation10 + $0x128] sm:$0xff]  ;;  %v4752_v26 = vld [vmem:[#allocation10 + $0x138] sm:$0xff] }
  0x46   :  { %185 = vmatpush1.msra.mxu0 %v4720_v15  ;;  %256 = vmatpush1.msra.mxu1 %v4722_v16  ;;  %v4756_v27 = vld [vmem:[#allocation10 + $0x120] sm:$0xff]  ;;  %v4758_v28 = vld [vmem:[#allocation10 + $0x130] sm:$0xff]  ;;  %v4762_v29 = vld [vmem:[#allocation10 + $0x108] sm:$0xff] }
  0x47   :  { %186 = vmatprep.subr.mxu0 %v4726_v17  ;;  %257 = vmatprep.subr.mxu1 %v4728_v18  ;;  %v4764_v30 = vld [vmem:[#allocation10 + $0x118] sm:$0xff]  ;;  %v4768_v31 = vld [vmem:[#allocation10 + $0x100] sm:$0xff]  ;;  %v4770_v32 = vld [vmem:[#allocation10 + $0x110] sm:$0xff] }
  0x48   :  { %187 = vmatpush1.msra.mxu0 %v4732_v19  ;;  %258 = vmatpush1.msra.mxu1 %v4734_v20  ;;  %v4774_v33 = vld [vmem:[#allocation10 + $0xe8] sm:$0xff]  ;;  %v4776_v34 = vld [vmem:[#allocation10 + $0xf8] sm:$0xff]  ;;  %v4780_v35 = vld [vmem:[#allocation10 + $0xe0] sm:$0xff] }
  0x49   :  { %188 = vmatprep.subr.mxu0 %v4738_v21  ;;  %259 = vmatprep.subr.mxu1 %v4740_v22  ;;  %v4782_v36 = vld [vmem:[#allocation10 + $0xf0] sm:$0xff]  ;;  %v4786_v37 = vld [vmem:[#allocation10 + $0xc8] sm:$0xff]  ;;  %v4788_v38 = vld [vmem:[#allocation10 + $0xd8] sm:$0xff] }
  0x4a   :  { %189 = vmatpush1.msra.mxu0 %v4744_v23  ;;  %260 = vmatpush1.msra.mxu1 %v4746_v24  ;;  %v4792_v39 = vld [vmem:[#allocation10 + $0xc0] sm:$0xff]  ;;  %v4794_v40 = vld [vmem:[#allocation10 + $0xd0] sm:$0xff]  ;;  %v4798_v41 = vld [vmem:[#allocation10 + $0xa8] sm:$0xff] }
  0x4b   :  { %190 = vmatprep.subr.mxu0 %v4750_v25  ;;  %261 = vmatprep.subr.mxu1 %v4752_v26  ;;  %v4800_v42 = vld [vmem:[#allocation10 + $0xb8] sm:$0xff]  ;;  %v4804_v43 = vld [vmem:[#allocation10 + $0xa0] sm:$0xff]  ;;  %v4806_v44 = vld [vmem:[#allocation10 + $0xb0] sm:$0xff] }
  0x4c   :  { %191 = vmatpush1.msra.mxu0 %v4756_v27  ;;  %262 = vmatpush1.msra.mxu1 %v4758_v28  ;;  %v4810_v45 = vld [vmem:[#allocation10 + $0x88] sm:$0xff]  ;;  %v4812_v46 = vld [vmem:[#allocation10 + $0x98] sm:$0xff]  ;;  %v4816_v47 = vld [vmem:[#allocation10 + $0x80] sm:$0xff] }
  0x4d   :  { %192 = vmatprep.subr.mxu0 %v4762_v29  ;;  %263 = vmatprep.subr.mxu1 %v4764_v30  ;;  %v4818_v48 = vld [vmem:[#allocation10 + $0x90] sm:$0xff]  ;;  %v4822_v49 = vld [vmem:[#allocation10 + $0x68] sm:$0xff]  ;;  %v4824_v50 = vld [vmem:[#allocation10 + $0x78] sm:$0xff] }
  0x4e   :  { %193 = vmatpush1.msra.mxu0 %v4768_v31  ;;  %264 = vmatpush1.msra.mxu1 %v4770_v32  ;;  %v4828_v51 = vld [vmem:[#allocation10 + $0x60] sm:$0xff]  ;;  %v4830_v52 = vld [vmem:[#allocation10 + $0x70] sm:$0xff]  ;;  %v4834_v53 = vld [vmem:[#allocation10 + $0x48] sm:$0xff] }
  0x4f   :  { %194 = vmatprep.subr.mxu0 %v4774_v33  ;;  %265 = vmatprep.subr.mxu1 %v4776_v34  ;;  %v4836_v54 = vld [vmem:[#allocation10 + $0x58] sm:$0xff]  ;;  %v4840_v55 = vld [vmem:[#allocation10 + $0x40] sm:$0xff]  ;;  %v4842_v56 = vld [vmem:[#allocation10 + $0x50] sm:$0xff] }
  0x50   :  { %195 = vmatpush1.msra.mxu0 %v4780_v35  ;;  %266 = vmatpush1.msra.mxu1 %v4782_v36  ;;  %6607 = vst [vmem:[#allocation19_spill] sm:$0xff] %v4836_v54  ;;  %v4846_v57 = vld [vmem:[#allocation10 + $0x28] sm:$0xff]  ;;  %v4848_v58 = vld [vmem:[#allocation10 + $0x38] sm:$0xff]  ;;  %v4852_v59 = vld [vmem:[#allocation10 + $0x20] sm:$0xff] }
  0x51   :  { %196 = vmatprep.subr.mxu0 %v4786_v37  ;;  %267 = vmatprep.subr.mxu1 %v4788_v38  ;;  %v4854_v60 = vld [vmem:[#allocation10 + $0x30] sm:$0xff]  ;;  %v4858_v61 = vld [vmem:[#allocation10 + $0x8] sm:$0xff]  ;;  %v4860_v62 = vld [vmem:[#allocation10 + $0x18] sm:$0xff] }
  0x52   :  { %197 = vmatpush1.msra.mxu0 %v4792_v39  ;;  %268 = vmatpush1.msra.mxu1 %v4794_v40  ;;  %v4864_v63 = vld [vmem:[#allocation10] sm:$0xff]  ;;  %v4866_v0 = vld [vmem:[#allocation10 + $0x10] sm:$0xff] }
  0x53   :  { %198 = vmatprep.subr.mxu0 %v4798_v41  ;;  %269 = vmatprep.subr.mxu1 %v4800_v42 }
  0x54   :  { %199 = vmatpush1.msra.mxu0 %v4804_v43  ;;  %270 = vmatpush1.msra.mxu1 %v4806_v44 }
  0x55   :  { %200 = vmatprep.subr.mxu0 %v4810_v45  ;;  %271 = vmatprep.subr.mxu1 %v4812_v46 }
  0x56   :  { %201 = vmatpush1.msra.mxu0 %v4816_v47  ;;  %272 = vmatpush1.msra.mxu1 %v4818_v48 }
  0x57   :  { %202 = vmatprep.subr.mxu0 %v4822_v49  ;;  %273 = vmatprep.subr.mxu1 %v4824_v50 }
  0x58   :  { %203 = vmatpush1.msra.mxu0 %v4828_v51  ;;  %274 = vmatpush1.msra.mxu1 %v4830_v52 }
  0x59   :  { %204 = vmatprep.subr.mxu0 %v4834_v53  ;;  %275 = vmatprep.subr.mxu1 %v4836_v54  ;;  %v156_v54 = vld [vmem:[#allocation5] sm:$0xff] }
  0x5a   :  { %205 = vmatpush1.msra.mxu0 %v4840_v55  ;;  %276 = vmatpush1.msra.mxu1 %v4842_v56 }
  0x5b   :  { %206 = vmatprep.subr.mxu0 %v4846_v57  ;;  %277 = vmatprep.subr.mxu1 %v4848_v58 }
  0x5c   :  { %207 = vmatpush1.msra.mxu0 %v4852_v59  ;;  %278 = vmatpush1.msra.mxu1 %v4854_v60 }
  0x5d   :  { %208 = vmatprep.subr.mxu0 %v4858_v61  ;;  %279 = vmatprep.subr.mxu1 %v4860_v62 }
  0x5e   :  { %209 = vmatpush1.msra.mxu0 %v4864_v63  ;;  %280 = vmatpush1.msra.mxu1 %v4866_v0 }
  0x5f   :  { %243 = vmatmul.mubr.f32.vlgmr.msra.gmra.mxu0 %v156_v54  ;;  %314 = vmatmul.mubr.f32.vlgmr.msra.gmra.mxu1 %v156_v54  ;;  %v5088_v54 = vld [vmem:[#allocation11 + $0x70] sm:$0xff] }
  0x60   :  { %325 = vmatprep.subr.mxu0 %v4682_v1  ;;  %396 = vmatprep.subr.mxu1 %v4684_v2  ;;  %v6608_v1 = vld [vmem:[#allocation19_spill] sm:$0xff]  ;;  %v324_v2 = vld [vmem:[#allocation8] sm:$0xff]  ;;  %6619 = vst [vmem:[#allocation28_spill] sm:$0xff] %v5088_v54 }
  0x61   :  { %326 = vmatpush1.msra.mxu0 %v4686_v3  ;;  %397 = vmatpush1.msra.mxu1 %v4690_v4  ;;  %v6609_v3 = vmov 0.0   ;;  %v4938_v4 = vld [vmem:[#allocation11 + $0x1e8] sm:$0xff] }
  0x62   :  { %327 = vmatprep.subr.mxu0 %v4692_v5  ;;  %398 = vmatprep.subr.mxu1 %v4694_v6  ;;  %6610 = vst [vmem:[#allocation19_spill] sm:$0xff] %v4938_v4  ;;  %v4940_v5 = vld [vmem:[#allocation11 + $0x1f8] sm:$0xff]  ;;  %v4944_v6 = vld [vmem:[#allocation11 + $0x1e0] sm:$0xff] }
  0x63   :  { %328 = vmatpush1.msra.mxu0 %v4698_v7  ;;  %399 = vmatpush1.msra.mxu1 %v4700_v8  ;;  %6611 = vst [vmem:[#allocation20_spill] sm:$0xff] %v4940_v5  ;;  %v4946_v7 = vld [vmem:[#allocation11 + $0x1f0] sm:$0xff]  ;;  %v4948_v8 = vld [vmem:[#allocation11 + $0x1c8] sm:$0xff] }
  0x64   :  { %329 = vmatprep.subr.mxu0 %v4702_v9  ;;  %400 = vmatprep.subr.mxu1 %v4706_v10  ;;  %v4950_v9 = vld [vmem:[#allocation11 + $0x1d8] sm:$0xff]  ;;  %v4954_v10 = vld [vmem:[#allocation11 + $0x1c0] sm:$0xff] }
  0x65   :  { %330 = vmatpush1.msra.mxu0 %v4708_v11  ;;  %401 = vmatpush1.msra.mxu1 %v4710_v12  ;;  %v4956_v11 = vld [vmem:[#allocation11 + $0x1d0] sm:$0xff]  ;;  %v4962_v12 = vld [vmem:[#allocation11 + $0x1b8] sm:$0xff] }
  0x66   :  { %331 = vmatprep.subr.mxu0 %v4714_v13  ;;  %402 = vmatprep.subr.mxu1 %v4716_v14  ;;  %v4966_v13 = vld [vmem:[#allocation11 + $0x1a0] sm:$0xff]  ;;  %v4968_v14 = vld [vmem:[#allocation11 + $0x1b0] sm:$0xff] }
  0x67   :  { %332 = vmatpush1.msra.mxu0 %v4720_v15  ;;  %403 = vmatpush1.msra.mxu1 %v4722_v16  ;;  %v4972_v15 = vld [vmem:[#allocation11 + $0x188] sm:$0xff]  ;;  %v4974_v16 = vld [vmem:[#allocation11 + $0x198] sm:$0xff] }
  0x68   :  { %333 = vmatprep.subr.mxu0 %v4726_v17  ;;  %404 = vmatprep.subr.mxu1 %v4728_v18  ;;  %v4978_v17 = vld [vmem:[#allocation11 + $0x180] sm:$0xff]  ;;  %v4980_v18 = vld [vmem:[#allocation11 + $0x190] sm:$0xff] }
  0x69   :  { %334 = vmatpush1.msra.mxu0 %v4732_v19  ;;  %405 = vmatpush1.msra.mxu1 %v4734_v20  ;;  %v4984_v19 = vld [vmem:[#allocation11 + $0x168] sm:$0xff]  ;;  %v4986_v20 = vld [vmem:[#allocation11 + $0x178] sm:$0xff] }
  0x6a   :  { %335 = vmatprep.subr.mxu0 %v4738_v21  ;;  %406 = vmatprep.subr.mxu1 %v4740_v22  ;;  %v4990_v21 = vld [vmem:[#allocation11 + $0x160] sm:$0xff]  ;;  %v4992_v22 = vld [vmem:[#allocation11 + $0x170] sm:$0xff] }
  0x6b   :  { %336 = vmatpush1.msra.mxu0 %v4744_v23  ;;  %407 = vmatpush1.msra.mxu1 %v4746_v24  ;;  %v4996_v23 = vld [vmem:[#allocation11 + $0x148] sm:$0xff]  ;;  %v4998_v24 = vld [vmem:[#allocation11 + $0x158] sm:$0xff] }
  0x6c   :  { %337 = vmatprep.subr.mxu0 %v4750_v25  ;;  %408 = vmatprep.subr.mxu1 %v4752_v26  ;;  %v5002_v25 = vld [vmem:[#allocation11 + $0x140] sm:$0xff]  ;;  %v5004_v26 = vld [vmem:[#allocation11 + $0x150] sm:$0xff] }
  0x6d   :  { %338 = vmatpush1.msra.mxu0 %v4756_v27  ;;  %409 = vmatpush1.msra.mxu1 %v4758_v28  ;;  %v5008_v27 = vld [vmem:[#allocation11 + $0x128] sm:$0xff]  ;;  %v5010_v28 = vld [vmem:[#allocation11 + $0x138] sm:$0xff] }
  0x6e   :  { %339 = vmatprep.subr.mxu0 %v4762_v29  ;;  %410 = vmatprep.subr.mxu1 %v4764_v30  ;;  %v5014_v29 = vld [vmem:[#allocation11 + $0x120] sm:$0xff]  ;;  %v5016_v30 = vld [vmem:[#allocation11 + $0x130] sm:$0xff] }
  0x6f   :  { %340 = vmatpush1.msra.mxu0 %v4768_v31  ;;  %411 = vmatpush1.msra.mxu1 %v4770_v32  ;;  %v5020_v31 = vld [vmem:[#allocation11 + $0x108] sm:$0xff]  ;;  %v5022_v32 = vld [vmem:[#allocation11 + $0x118] sm:$0xff] }
  0x70   :  { %341 = vmatprep.subr.mxu0 %v4774_v33  ;;  %412 = vmatprep.subr.mxu1 %v4776_v34  ;;  %v5026_v33 = vld [vmem:[#allocation11 + $0x100] sm:$0xff]  ;;  %v5028_v34 = vld [vmem:[#allocation11 + $0x110] sm:$0xff] }
  0x71   :  { %342 = vmatpush1.msra.mxu0 %v4780_v35  ;;  %413 = vmatpush1.msra.mxu1 %v4782_v36  ;;  %v5032_v35 = vld [vmem:[#allocation11 + $0xe8] sm:$0xff]  ;;  %v5034_v36 = vld [vmem:[#allocation11 + $0xf8] sm:$0xff] }
  0x72   :  { %343 = vmatprep.subr.mxu0 %v4786_v37  ;;  %414 = vmatprep.subr.mxu1 %v4788_v38  ;;  %v5038_v37 = vld [vmem:[#allocation11 + $0xe0] sm:$0xff]  ;;  %v5040_v38 = vld [vmem:[#allocation11 + $0xf0] sm:$0xff] }
  0x73   :  { %344 = vmatpush1.msra.mxu0 %v4792_v39  ;;  %415 = vmatpush1.msra.mxu1 %v4794_v40  ;;  %v5044_v39 = vld [vmem:[#allocation11 + $0xc8] sm:$0xff]  ;;  %v5046_v40 = vld [vmem:[#allocation11 + $0xd8] sm:$0xff] }
  0x74   :  { %345 = vmatprep.subr.mxu0 %v4798_v41  ;;  %416 = vmatprep.subr.mxu1 %v4800_v42  ;;  %v5050_v41 = vld [vmem:[#allocation11 + $0xc0] sm:$0xff]  ;;  %v5052_v42 = vld [vmem:[#allocation11 + $0xd0] sm:$0xff] }
  0x75   :  { %346 = vmatpush1.msra.mxu0 %v4804_v43  ;;  %417 = vmatpush1.msra.mxu1 %v4806_v44  ;;  %v5056_v43 = vld [vmem:[#allocation11 + $0xa8] sm:$0xff]  ;;  %v5058_v44 = vld [vmem:[#allocation11 + $0xb8] sm:$0xff] }
  0x76   :  { %347 = vmatprep.subr.mxu0 %v4810_v45  ;;  %418 = vmatprep.subr.mxu1 %v4812_v46  ;;  %v5062_v45 = vld [vmem:[#allocation11 + $0xa0] sm:$0xff]  ;;  %v5064_v46 = vld [vmem:[#allocation11 + $0xb0] sm:$0xff] }
  0x77   :  { %348 = vmatpush1.msra.mxu0 %v4816_v47  ;;  %419 = vmatpush1.msra.mxu1 %v4818_v48  ;;  %6612 = vst [vmem:[#allocation21_spill] sm:$0xff] %v5062_v45  ;;  %v5068_v47 = vld [vmem:[#allocation11 + $0x88] sm:$0xff]  ;;  %v5070_v48 = vld [vmem:[#allocation11 + $0x98] sm:$0xff] }
  0x78   :  { %349 = vmatprep.subr.mxu0 %v4822_v49  ;;  %420 = vmatprep.subr.mxu1 %v4824_v50  ;;  %6613 = vst [vmem:[#allocation22_spill] sm:$0xff] %v5070_v48  ;;  %v5074_v49 = vld [vmem:[#allocation11 + $0x80] sm:$0xff]  ;;  %v5076_v50 = vld [vmem:[#allocation11 + $0x90] sm:$0xff] }
  0x79   :  { %350 = vmatpush1.msra.mxu0 %v4828_v51  ;;  %421 = vmatpush1.msra.mxu1 %v4830_v52  ;;  %6614 = vst [vmem:[#allocation23_spill] sm:$0xff] %v5074_v49  ;;  %6615 = vst [vmem:[#allocation24_spill] sm:$0xff] %v5076_v50  ;;  %v5080_v51 = vld [vmem:[#allocation11 + $0x68] sm:$0xff]  ;;  %v5082_v52 = vld [vmem:[#allocation11 + $0x78] sm:$0xff] }
  0x7a   :  { %351 = vmatprep.subr.mxu0 %v4834_v53  ;;  %422 = vmatprep.subr.mxu1 %v6608_v1  ;;  %6616 = vst [vmem:[#allocation25_spill] sm:$0xff] %v5080_v51  ;;  %6617 = vst [vmem:[#allocation26_spill] sm:$0xff] %v5082_v52  ;;  %v5086_v53 = vld [vmem:[#allocation11 + $0x60] sm:$0xff]  ;;  %v5118_v1 = vld [vmem:[#allocation11 + $0x18] sm:$0xff] }
  0x7b   :  { %352 = vmatpush1.msra.mxu0 %v4840_v55  ;;  %423 = vmatpush1.msra.mxu1 %v4842_v56  ;;  %6618 = vst [vmem:[#allocation27_spill] sm:$0xff] %v5086_v53  ;;  %v5092_v55 = vld [vmem:[#allocation11 + $0x48] sm:$0xff]  ;;  %v5094_v56 = vld [vmem:[#allocation11 + $0x58] sm:$0xff]  ;;  %6629 = vst [vmem:[#allocation38_spill] sm:$0xff] %v5118_v1 }
  0x7c   :  { %353 = vmatprep.subr.mxu0 %v4846_v57  ;;  %424 = vmatprep.subr.mxu1 %v4848_v58  ;;  %6620 = vst [vmem:[#allocation29_spill] sm:$0xff] %v5092_v55  ;;  %6621 = vst [vmem:[#allocation30_spill] sm:$0xff] %v5094_v56  ;;  %v5098_v57 = vld [vmem:[#allocation11 + $0x40] sm:$0xff]  ;;  %v5100_v58 = vld [vmem:[#allocation11 + $0x50] sm:$0xff] }
  0x7d   :  { %354 = vmatpush1.msra.mxu0 %v4852_v59  ;;  %425 = vmatpush1.msra.mxu1 %v4854_v60  ;;  %6622 = vst [vmem:[#allocation31_spill] sm:$0xff] %v5098_v57  ;;  %6623 = vst [vmem:[#allocation32_spill] sm:$0xff] %v5100_v58  ;;  %v5104_v59 = vld [vmem:[#allocation11 + $0x28] sm:$0xff]  ;;  %v5106_v60 = vld [vmem:[#allocation11 + $0x38] sm:$0xff] }
  0x7e   :  { %355 = vmatprep.subr.mxu0 %v4858_v61  ;;  %426 = vmatprep.subr.mxu1 %v4860_v62  ;;  %6624 = vst [vmem:[#allocation33_spill] sm:$0xff] %v5104_v59  ;;  %6625 = vst [vmem:[#allocation34_spill] sm:$0xff] %v5106_v60  ;;  %v5110_v61 = vld [vmem:[#allocation11 + $0x20] sm:$0xff]  ;;  %v5112_v62 = vld [vmem:[#allocation11 + $0x30] sm:$0xff] }
  0x7f   :  { %356 = vmatpush1.msra.mxu0 %v4864_v63  ;;  %389 = vmatprep.mubr.f32.mxu0 %v6609_v3  ;;  %6626 = vst [vmem:[#allocation35_spill] sm:$0xff] %v5110_v61  ;;  %6627 = vst [vmem:[#allocation36_spill] sm:$0xff] %v5112_v62  ;;  %v5116_v63 = vld [vmem:[#allocation11 + $0x8] sm:$0xff] }
  0x80   :  { %427 = vmatpush1.msra.mxu1 %v4866_v0  ;;  %460 = vmatprep.mubr.f32.mxu1 %v6609_v3  ;;  %v4960_v0 = vld [vmem:[#allocation11 + $0x1a8] sm:$0xff]  ;;  %6628 = vst [vmem:[#allocation37_spill] sm:$0xff] %v5116_v63 }
  0x81   :  { %390 = vmatmul.mubr.f32.vlgmr.msra.gmra.mxu0 %v324_v2  ;;  %461 = vmatmul.mubr.f32.vlgmr.msra.gmra.mxu1 %v324_v2  ;;  %v5122_v2 = vld [vmem:[#allocation11] sm:$0xff] }
  0x82   :  { %536 = vmatprep.subr.mxu0 %v4938_v4  ;;  %607 = vmatprep.subr.mxu1 %v4940_v5  ;;  %6630 = vst [vmem:[#allocation39_spill] sm:$0xff] %v5122_v2 }
  0x83   :  { %537 = vmatpush1.msra.mxu0 %v4944_v6  ;;  %608 = vmatpush1.msra.mxu1 %v4946_v7 }
  0x84   :  { %538 = vmatprep.subr.mxu0 %v4948_v8  ;;  %609 = vmatprep.subr.mxu1 %v4950_v9 }
  0x85   :  { %539 = vmatpush1.msra.mxu0 %v4954_v10  ;;  %610 = vmatpush1.msra.mxu1 %v4956_v11 }
  0x86   :  { %540 = vmatprep.subr.mxu0 %v4960_v0  ;;  %611 = vmatprep.subr.mxu1 %v4962_v12 }
  0x87   :  { %541 = vmatpush1.msra.mxu0 %v4966_v13  ;;  %612 = vmatpush1.msra.mxu1 %v4968_v14 }
  0x88   :  { %542 = vmatprep.subr.mxu0 %v4972_v15  ;;  %613 = vmatprep.subr.mxu1 %v4974_v16 }
  0x89   :  { %543 = vmatpush1.msra.mxu0 %v4978_v17  ;;  %614 = vmatpush1.msra.mxu1 %v4980_v18 }
  0x8a   :  { %544 = vmatprep.subr.mxu0 %v4984_v19  ;;  %615 = vmatprep.subr.mxu1 %v4986_v20 }
  0x8b   :  { %545 = vmatpush1.msra.mxu0 %v4990_v21  ;;  %616 = vmatpush1.msra.mxu1 %v4992_v22 }
  0x8c   :  { %546 = vmatprep.subr.mxu0 %v4996_v23  ;;  %617 = vmatprep.subr.mxu1 %v4998_v24 }
  0x8d   :  { %547 = vmatpush1.msra.mxu0 %v5002_v25  ;;  %618 = vmatpush1.msra.mxu1 %v5004_v26 }
  0x8e   :  { %548 = vmatprep.subr.mxu0 %v5008_v27  ;;  %619 = vmatprep.subr.mxu1 %v5010_v28 }
  0x8f   :  { %549 = vmatpush1.msra.mxu0 %v5014_v29  ;;  %620 = vmatpush1.msra.mxu1 %v5016_v30 }
  0x90   :  { %550 = vmatprep.subr.mxu0 %v5020_v31  ;;  %621 = vmatprep.subr.mxu1 %v5022_v32 }
  0x91   :  { %551 = vmatpush1.msra.mxu0 %v5026_v33  ;;  %622 = vmatpush1.msra.mxu1 %v5028_v34 }
  0x92   :  { %552 = vmatprep.subr.mxu0 %v5032_v35  ;;  %623 = vmatprep.subr.mxu1 %v5034_v36 }
  0x93   :  { %553 = vmatpush1.msra.mxu0 %v5038_v37  ;;  %624 = vmatpush1.msra.mxu1 %v5040_v38 }
  0x94   :  { %554 = vmatprep.subr.mxu0 %v5044_v39  ;;  %625 = vmatprep.subr.mxu1 %v5046_v40 }
  0x95   :  { %555 = vmatpush1.msra.mxu0 %v5050_v41  ;;  %626 = vmatpush1.msra.mxu1 %v5052_v42 }
  0x96   :  { %556 = vmatprep.subr.mxu0 %v5056_v43  ;;  %627 = vmatprep.subr.mxu1 %v5058_v44 }
  0x97   :  { %557 = vmatpush1.msra.mxu0 %v5062_v45  ;;  %628 = vmatpush1.msra.mxu1 %v5064_v46 }
  0x98   :  { %558 = vmatprep.subr.mxu0 %v5068_v47  ;;  %629 = vmatprep.subr.mxu1 %v5070_v48 }
  0x99   :  { %559 = vmatpush1.msra.mxu0 %v5074_v49  ;;  %630 = vmatpush1.msra.mxu1 %v5076_v50 }
  0x9a   :  { %560 = vmatprep.subr.mxu0 %v5080_v51  ;;  %631 = vmatprep.subr.mxu1 %v5082_v52 }
  0x9b   :  { %561 = vmatpush1.msra.mxu0 %v5086_v53  ;;  %632 = vmatpush1.msra.mxu1 %v5088_v54 }
  0x9c   :  { %562 = vmatprep.subr.mxu0 %v5092_v55  ;;  %633 = vmatprep.subr.mxu1 %v5094_v56  ;;  %v5126_v56 = vld [vmem:[#allocation11 + $0x10] sm:$0xff] }
  0x9d   :  { %563 = vmatpush1.msra.mxu0 %v5098_v57  ;;  %634 = vmatpush1.msra.mxu1 %v5100_v58  ;;  %6631 = vst [vmem:[#allocation40_spill] sm:$0xff] %v5126_v56 }
  0x9e   :  { %564 = vmatprep.subr.mxu0 %v5104_v59  ;;  %635 = vmatprep.subr.mxu1 %v5106_v60 }
  0x9f   :  { %565 = vmatpush1.msra.mxu0 %v5110_v61  ;;  %636 = vmatpush1.msra.mxu1 %v5112_v62 }
  0xa0   :  { %566 = vmatprep.subr.mxu0 %v5116_v63  ;;  %637 = vmatprep.subr.mxu1 %v5118_v1 }
  0xa1   :  { %567 = vmatpush1.msra.mxu0 %v5122_v2  ;;  %600 = vmatprep.mubr.f32.mxu0 %v6609_v3 }
  0xa2   :  { %638 = vmatpush1.msra.mxu1 %v5126_v56  ;;  %671 = vmatprep.mubr.f32.mxu1 %v6609_v3 }
  0xa3   :  { %601 = vmatmul.mubr.f32.vlgmr.msra.gmra.mxu0 %v6609_v3  ;;  %672 = vmatmul.mubr.f32.vlgmr.msra.gmra.mxu1 %v6609_v3 }
  0xa4   :  { %741 = vmatprep.subr.mxu0 %v4938_v4  ;;  %812 = vmatprep.subr.mxu1 %v4940_v5 }
  0xa5   :  { %742 = vmatpush1.msra.mxu0 %v4944_v6  ;;  %813 = vmatpush1.msra.mxu1 %v4946_v7 }
  0xa6   :  { %743 = vmatprep.subr.mxu0 %v4948_v8  ;;  %814 = vmatprep.subr.mxu1 %v4950_v9 }
  0xa7   :  { %744 = vmatpush1.msra.mxu0 %v4954_v10  ;;  %815 = vmatpush1.msra.mxu1 %v4956_v11 }
  0xa8   :  { %745 = vmatprep.subr.mxu0 %v4960_v0  ;;  %816 = vmatprep.subr.mxu1 %v4962_v12 }
  0xa9   :  { %746 = vmatpush1.msra.mxu0 %v4966_v13  ;;  %817 = vmatpush1.msra.mxu1 %v4968_v14 }
  0xaa   :  { %747 = vmatprep.subr.mxu0 %v4972_v15  ;;  %818 = vmatprep.subr.mxu1 %v4974_v16 }
  0xab   :  { %748 = vmatpush1.msra.mxu0 %v4978_v17  ;;  %819 = vmatpush1.msra.mxu1 %v4980_v18 }
  0xac   :  { %749 = vmatprep.subr.mxu0 %v4984_v19  ;;  %820 = vmatprep.subr.mxu1 %v4986_v20 }
  0xad   :  { %750 = vmatpush1.msra.mxu0 %v4990_v21  ;;  %821 = vmatpush1.msra.mxu1 %v4992_v22 }
  0xae   :  { %751 = vmatprep.subr.mxu0 %v4996_v23  ;;  %822 = vmatprep.subr.mxu1 %v4998_v24 }
  0xaf   :  { %752 = vmatpush1.msra.mxu0 %v5002_v25  ;;  %823 = vmatpush1.msra.mxu1 %v5004_v26 }
  0xb0   :  { %753 = vmatprep.subr.mxu0 %v5008_v27  ;;  %824 = vmatprep.subr.mxu1 %v5010_v28 }
  0xb1   :  { %754 = vmatpush1.msra.mxu0 %v5014_v29  ;;  %825 = vmatpush1.msra.mxu1 %v5016_v30 }
  0xb2   :  { %755 = vmatprep.subr.mxu0 %v5020_v31  ;;  %826 = vmatprep.subr.mxu1 %v5022_v32 }
  0xb3   :  { %756 = vmatpush1.msra.mxu0 %v5026_v33  ;;  %827 = vmatpush1.msra.mxu1 %v5028_v34 }
  0xb4   :  { %757 = vmatprep.subr.mxu0 %v5032_v35  ;;  %828 = vmatprep.subr.mxu1 %v5034_v36 }
  0xb5   :  { %758 = vmatpush1.msra.mxu0 %v5038_v37  ;;  %829 = vmatpush1.msra.mxu1 %v5040_v38 }
  0xb6   :  { %759 = vmatprep.subr.mxu0 %v5044_v39  ;;  %830 = vmatprep.subr.mxu1 %v5046_v40 }
  0xb7   :  { %760 = vmatpush1.msra.mxu0 %v5050_v41  ;;  %831 = vmatpush1.msra.mxu1 %v5052_v42 }
  0xb8   :  { %761 = vmatprep.subr.mxu0 %v5056_v43  ;;  %832 = vmatprep.subr.mxu1 %v5058_v44 }
  0xb9   :  { %762 = vmatpush1.msra.mxu0 %v5062_v45  ;;  %833 = vmatpush1.msra.mxu1 %v5064_v46  ;;  %v6632_v45 = vld [vmem:[#allocation30_spill] sm:$0xff] }
  0xba   :  { %763 = vmatprep.subr.mxu0 %v5068_v47  ;;  %834 = vmatprep.subr.mxu1 %v5070_v48 }
  0xbb   :  { %764 = vmatpush1.msra.mxu0 %v5074_v49  ;;  %835 = vmatpush1.msra.mxu1 %v5076_v50 }
  0xbc   :  { %765 = vmatprep.subr.mxu0 %v5080_v51  ;;  %836 = vmatprep.subr.mxu1 %v5082_v52 }
  0xbd   :  { %766 = vmatpush1.msra.mxu0 %v5086_v53  ;;  %837 = vmatpush1.msra.mxu1 %v5088_v54 }
  0xbe   :  { %767 = vmatprep.subr.mxu0 %v5092_v55  ;;  %838 = vmatprep.subr.mxu1 %v6632_v45 }
  0xbf   :  { %768 = vmatpush1.msra.mxu0 %v5098_v57  ;;  %839 = vmatpush1.msra.mxu1 %v5100_v58 }
  0xc0   :  { %769 = vmatprep.subr.mxu0 %v5104_v59  ;;  %840 = vmatprep.subr.mxu1 %v5106_v60  ;;  %v158_v60 = vlaneseq }
  0xc1   :  { %770 = vmatpush1.msra.mxu0 %v5110_v61  ;;  %841 = vmatpush1.msra.mxu1 %v5112_v62 }
  0xc2   :  { %771 = vmatprep.subr.mxu0 %v5116_v63  ;;  %842 = vmatprep.subr.mxu1 %v5118_v1  ;;  %v5204_v61 = vshrl.u32 %v158_v60, 7 }
  0xc3   :  { %772 = vmatpush1.msra.mxu0 %v5122_v2  ;;  %805 = vmatprep.mubr.f32.mxu0 %v6609_v3  ;;  %v155_v2 = vld [vmem:[%s6457_s4] sm:$0xf] }
  0xc4   :  { %843 = vmatpush1.msra.mxu1 %v5126_v56  ;;  %876 = vmatprep.mubr.f32.mxu1 %v6609_v3  ;;  %6633 = vst [vmem:[#allocation41_spill] sm:$0xff] %v5204_v61  ;;  %v6505_v62 = vsub.s32 0, %v5204_v61  ;;  %v168_v63 = vsub.s32 2, %v5204_v61  ;;  %v6510_v1 = vsub.s32 1, %v5204_v61  ;;  %v172_v56 = vsub.s32 3, %v5204_v61 }
  0xc5   :  { %946 = vmatprep.subr.mxu0 %v4938_v4  ;;  %1017 = vmatprep.subr.mxu1 %v4940_v5 }
  0xc6   :  { %v161_v4 = vrot.slane %v155_v2, %v6505_v62  ;;  %v169_v3 = vrot.slane %v155_v2, %v168_v63  ;;  %v165_v60 = vrot.slane %v155_v2, %v6510_v1  ;;  %v173_v5 = vrot.slane %v155_v2, %v172_v56  ;;  %v6652_v1 = vld [vmem:[#allocation39_spill] sm:$0xff] }
 0x11f   :  { %v244_v59 = vpop.f32.mrf.mxu0  ;;  %v315_v58 = vpop.f32.mrf.mxu1 }
 0x120   :  { %v245_v57 = vadd.f32 %v244_v59, %v161_v4  ;;  %v316_v45 = vadd.f32 %v315_v58, %v169_v3  ;;  %v4623_v58 = vmov 1966171168  }
 0x121   :  { %v246_v55 = vpop.f32.mrf.mxu0  ;;  %v317_v54 = vpop.f32.mrf.mxu1  ;;  %v685_v59 = vunpack.c.l.s4 %v4623_v58 }
 0x122   :  { %320 = vst [vmem:[#allocation2] sm:$0xff] %v245_v57  ;;  %322 = vst [vmem:[#allocation2 + $0x10] sm:$0xff] %v316_v45  ;;  %v247_v53 = vadd.f32 %v246_v55, %v165_v60  ;;  %v318_v52 = vadd.f32 %v317_v54, %v173_v5 }
 0x123   :  { %v686_v57 = vunpack.c.0.s8 %v685_v59 }
 0x124   :  { %321 = vst [vmem:[#allocation2 + $0x8] sm:$0xff] %v247_v53  ;;  %323 = vst [vmem:[#allocation2 + $0x18] sm:$0xff] %v318_v52 }
 0x125   :  { %v5218_v53 = vsub.s32 %v686_v57, %v5204_v61  ;;  %v6653_v61 = vmov 0.0  }
 0x141   :  { %v391_v51 = vpop.f32.mrf.mxu0  ;;  %v462_v50 = vpop.f32.mrf.mxu1 }
 0x142   :  { %v392_v62 = vadd.f32 %v391_v51, %v161_v4  ;;  %v463_v63 = vadd.f32 %v462_v50, %v169_v3 }
 0x143   :  { %v393_v49 = vpop.f32.mrf.mxu0  ;;  %v464_v48 = vpop.f32.mrf.mxu1 }
 0x144   :  { %467 = vst [vmem:[#allocation3] sm:$0xff] %v392_v62  ;;  %469 = vst [vmem:[#allocation3 + $0x10] sm:$0xff] %v463_v63  ;;  %v394_v56 = vadd.f32 %v393_v49, %v165_v60  ;;  %v465_v2 = vadd.f32 %v464_v48, %v173_v5  ;;  %v535_v48 = vld [vmem:[#allocation2] ss:$8 sm:$0xf] }
 0x146   :  { %468 = vst [vmem:[#allocation3 + $0x8] sm:$0xff] %v394_v56  ;;  %470 = vst [vmem:[#allocation3 + $0x18] sm:$0xff] %v465_v2 }
 0x163   :  { %v602_v45 = vpop.f32.mrf.mxu0  ;;  %v673_v55 = vpop.f32.mrf.mxu1 }
 0x165   :  { %v604_v52 = vpop.f32.mrf.mxu0  ;;  %v675_v54 = vpop.f32.mrf.mxu1 }
 0x166   :  { %v682_v4 = vcombine.low %v602_v45, %v604_v52  ;;  %v683_v3 = vcombine.low %v673_v55, %v675_v54 }
 0x168   :  { %v690_v50 = vrot.slane %v682_v4, %v5218_v53  ;;  %v697_v51 = vrot.slane %v683_v3, %v5218_v53 }
 0x16a   :  { %v698_v49 = vcombine.low %v690_v50, %v697_v51 }
 0x16c   :  { %v705_v5 = vrot.slane %v698_v49, %v5218_v53 }
 0x16e   :  { %v707_v62 = vadd.f32 %v705_v5, %v535_v48 }
 0x170   :  { %v3971_v60 = vmul.f32 -1.442695, %v707_v62  ;;  %v715_v63 = vrot.slane %v707_v62, 1  ;;  %v723_v2 = vrot.slane %v707_v62, 2  ;;  %v731_v57 = vrot.slane %v707_v62, 3 }
 0x172   :  { %4031 = vpow2.f32 %v3971_v60  ;;  %v3972_v56 = vmul.f32 -1.442695, %v715_v63  ;;  %v3973_v58 = vmul.f32 -1.442695, %v723_v2  ;;  %v6635_v2 = vld [vmem:[#allocation22_spill] sm:$0xff] }
 0x174   :  { %4033 = vpow2.f32 %v3972_v56  ;;  %v6634_v56 = vld [vmem:[#allocation21_spill] sm:$0xff] }
 0x175   :  { %4035 = vpow2.f32 %v3973_v58  ;;  %v6636_v58 = vld [vmem:[#allocation23_spill] sm:$0xff] }
 0x17f   :  { %v4032_v59 = vpop.eup %4031 }
 0x180   :  { %v711_v45 = vadd.f32 1.0, %v4032_v59  ;;  %v6637_v59 = vld [vmem:[#allocation24_spill] sm:$0xff] }
 0x181   :  { %v4034_v55 = vpop.eup %4033 }
 0x182   :  { %4037 = vrcp.f32 %v711_v45  ;;  %v720_v52 = vadd.f32 1.0, %v4034_v55  ;;  %v4036_v54 = vpop.eup %4035  ;;  %v6639_v45 = vld [vmem:[#allocation26_spill] sm:$0xff]  ;;  %v6640_v55 = vld [vmem:[#allocation27_spill] sm:$0xff] }
 0x183   :  { %4039 = vtanh.f32 %v731_v57  ;;  %v728_v51 = vadd.f32 1.0, %v4036_v54  ;;  %v6638_v57 = vld [vmem:[#allocation25_spill] sm:$0xff] }
 0x184   :  { %4041 = vrcp.f32 %v720_v52  ;;  %v6641_v52 = vld [vmem:[#allocation28_spill] sm:$0xff]  ;;  %v6642_v54 = vld [vmem:[#allocation29_spill] sm:$0xff] }
 0x185   :  { %4043 = vrcp.f32 %v728_v51  ;;  %v6646_v51 = vld [vmem:[#allocation33_spill] sm:$0xff] }
 0x18f   :  { %v4038_v4 = vpop.eup %4037 }
 0x190   :  { %v4040_v3 = vpop.eup %4039  ;;  %v734_v49 = vmul.f32 0.0, %v4038_v4  ;;  %v6643_v4 = vld [vmem:[#allocation30_spill] sm:$0xff] }
 0x191   :  { %v4042_v50 = vpop.eup %4041 }
 0x192   :  { %v735_v5 = vmul.f32 %v4042_v50, %v4040_v3  ;;  %v4044_v62 = vpop.eup %4043  ;;  %v6644_v3 = vld [vmem:[#allocation31_spill] sm:$0xff]  ;;  %v6645_v50 = vld [vmem:[#allocation32_spill] sm:$0xff] }
 0x194   :  { %v5223_v48 = vadd.f32 %v735_v5, %v734_v49  ;;  %v6647_v49 = vld [vmem:[#allocation34_spill] sm:$0xff]  ;;  %v6648_v5 = vld [vmem:[#allocation35_spill] sm:$0xff] }
 0x196   :  { %4045 = vtanh.f32 %v5223_v48 }
 0x1a3   :  { %v4046_v60 = vpop.eup %4045 }
 0x1a4   :  { %v738_v63 = vmul.f32 %v4046_v60, %v4044_v62  ;;  %v6649_v62 = vld [vmem:[#allocation36_spill] sm:$0xff]  ;;  %v6650_v60 = vld [vmem:[#allocation37_spill] sm:$0xff] }
 0x1a6   :  { %806 = vmatmul.mubr.f32.vlgmr.msra.gmra.mxu0 %v738_v63  ;;  %877 = vmatmul.mubr.f32.vlgmr.msra.gmra.mxu1 %v738_v63  ;;  %v6651_v63 = vld [vmem:[#allocation38_spill] sm:$0xff] }
 0x1a7   :  { %947 = vmatpush1.msra.mxu0 %v4944_v6  ;;  %1018 = vmatpush1.msra.mxu1 %v4946_v7 }
 0x1a8   :  { %948 = vmatprep.subr.mxu0 %v4948_v8  ;;  %1019 = vmatprep.subr.mxu1 %v4950_v9 }
 0x1a9   :  { %949 = vmatpush1.msra.mxu0 %v4954_v10  ;;  %1020 = vmatpush1.msra.mxu1 %v4956_v11 }
 0x1aa   :  { %950 = vmatprep.subr.mxu0 %v4960_v0  ;;  %1021 = vmatprep.subr.mxu1 %v4962_v12 }
 0x1ab   :  { %951 = vmatpush1.msra.mxu0 %v4966_v13  ;;  %1022 = vmatpush1.msra.mxu1 %v4968_v14 }
 0x1ac   :  { %952 = vmatprep.subr.mxu0 %v4972_v15  ;;  %1023 = vmatprep.subr.mxu1 %v4974_v16 }
 0x1ad   :  { %953 = vmatpush1.msra.mxu0 %v4978_v17  ;;  %1024 = vmatpush1.msra.mxu1 %v4980_v18 }
 0x1ae   :  { %954 = vmatprep.subr.mxu0 %v4984_v19  ;;  %1025 = vmatprep.subr.mxu1 %v4986_v20 }
 0x1af   :  { %955 = vmatpush1.msra.mxu0 %v4990_v21  ;;  %1026 = vmatpush1.msra.mxu1 %v4992_v22 }
 0x1b0   :  { %956 = vmatprep.subr.mxu0 %v4996_v23  ;;  %1027 = vmatprep.subr.mxu1 %v4998_v24 }
 0x1b1   :  { %957 = vmatpush1.msra.mxu0 %v5002_v25  ;;  %1028 = vmatpush1.msra.mxu1 %v5004_v26 }
 0x1b2   :  { %958 = vmatprep.subr.mxu0 %v5008_v27  ;;  %1029 = vmatprep.subr.mxu1 %v5010_v28 }
 0x1b3   :  { %959 = vmatpush1.msra.mxu0 %v5014_v29  ;;  %1030 = vmatpush1.msra.mxu1 %v5016_v30 }
 0x1b4   :  { %960 = vmatprep.subr.mxu0 %v5020_v31  ;;  %1031 = vmatprep.subr.mxu1 %v5022_v32 }
 0x1b5   :  { %961 = vmatpush1.msra.mxu0 %v5026_v33  ;;  %1032 = vmatpush1.msra.mxu1 %v5028_v34 }
 0x1b6   :  { %962 = vmatprep.subr.mxu0 %v5032_v35  ;;  %1033 = vmatprep.subr.mxu1 %v5034_v36 }
 0x1b7   :  { %963 = vmatpush1.msra.mxu0 %v5038_v37  ;;  %1034 = vmatpush1.msra.mxu1 %v5040_v38 }
 0x1b8   :  { %964 = vmatprep.subr.mxu0 %v5044_v39  ;;  %1035 = vmatprep.subr.mxu1 %v5046_v40 }
 0x1b9   :  { %965 = vmatpush1.msra.mxu0 %v5050_v41  ;;  %1036 = vmatpush1.msra.mxu1 %v5052_v42 }
 0x1ba   :  { %966 = vmatprep.subr.mxu0 %v5056_v43  ;;  %1037 = vmatprep.subr.mxu1 %v5058_v44 }
 0x1bb   :  { %967 = vmatpush1.msra.mxu0 %v6634_v56  ;;  %1038 = vmatpush1.msra.mxu1 %v5064_v46 }
 0x1bc   :  { %968 = vmatprep.subr.mxu0 %v5068_v47  ;;  %1039 = vmatprep.subr.mxu1 %v6635_v2 }
 0x1bd   :  { %969 = vmatpush1.msra.mxu0 %v6636_v58  ;;  %1040 = vmatpush1.msra.mxu1 %v6637_v59 }
 0x1be   :  { %970 = vmatprep.subr.mxu0 %v6638_v57  ;;  %1041 = vmatprep.subr.mxu1 %v6639_v45 }
 0x1bf   :  { %971 = vmatpush1.msra.mxu0 %v6640_v55  ;;  %1042 = vmatpush1.msra.mxu1 %v6641_v52 }
 0x1c0   :  { %972 = vmatprep.subr.mxu0 %v6642_v54  ;;  %1043 = vmatprep.subr.mxu1 %v6643_v4  ;;  %v6654_v4 = vld [vmem:[#allocation40_spill] sm:$0xff] }
 0x1c1   :  { %973 = vmatpush1.msra.mxu0 %v6644_v3  ;;  %1044 = vmatpush1.msra.mxu1 %v6645_v50  ;;  %v6655_v50 = vld [vmem:[#allocation19_spill] sm:$0xff] }
 0x1c2   :  { %974 = vmatprep.subr.mxu0 %v6646_v51  ;;  %1045 = vmatprep.subr.mxu1 %v6647_v49  ;;  %v6656_v51 = vld [vmem:[#allocation20_spill] sm:$0xff] }
 0x1c3   :  { %975 = vmatpush1.msra.mxu0 %v6648_v5  ;;  %1046 = vmatpush1.msra.mxu1 %v6649_v62 }
 0x1c4   :  { %976 = vmatprep.subr.mxu0 %v6650_v60  ;;  %1047 = vmatprep.subr.mxu1 %v6651_v63 }
 0x1c5   :  { %977 = vmatpush1.msra.mxu0 %v6652_v1  ;;  %1010 = vmatprep.mubr.f32.mxu0 %v6653_v61 }
 0x1c6   :  { %1048 = vmatpush1.msra.mxu1 %v6654_v4  ;;  %1081 = vmatprep.mubr.f32.mxu1 %v6653_v61  ;;  %v740_v4 = vld [vmem:[#allocation2 + $0x1] ss:$8 sm:$0xf] }
 0x1c7   :  { %1151 = vmatprep.subr.mxu0 %v6655_v50  ;;  %1222 = vmatprep.subr.mxu1 %v6656_v51 }
 0x266   :  { %v807_v49 = vpop.f32.mrf.mxu0  ;;  %v878_v5 = vpop.f32.mrf.mxu1 }
 0x268   :  { %v809_v3 = vpop.f32.mrf.mxu0  ;;  %v880_v62 = vpop.f32.mrf.mxu1 }
 0x269   :  { %v887_v54 = vcombine.low %v807_v49, %v809_v3  ;;  %v888_v60 = vcombine.low %v878_v5, %v880_v62  ;;  %v6660_v62 = vld [vmem:[#allocation25_spill] sm:$0xff] }
 0x26b   :  { %v895_v63 = vrot.slane %v887_v54, %v5218_v53  ;;  %v902_v1 = vrot.slane %v888_v60, %v5218_v53  ;;  %v6661_v60 = vld [vmem:[#allocation26_spill] sm:$0xff] }
 0x26d   :  { %v903_v52 = vcombine.low %v895_v63, %v902_v1  ;;  %v6662_v63 = vld [vmem:[#allocation27_spill] sm:$0xff] }
 0x26f   :  { %v910_v55 = vrot.slane %v903_v52, %v5218_v53 }
 0x271   :  { %v912_v45 = vadd.f32 %v910_v55, %v740_v4 }
 0x273   :  { %v3974_v61 = vmul.f32 -1.442695, %v912_v45  ;;  %v920_v57 = vrot.slane %v912_v45, 1  ;;  %v928_v51 = vrot.slane %v912_v45, 2  ;;  %v936_v2 = vrot.slane %v912_v45, 3 }
 0x275   :  { %4047 = vpow2.f32 %v3974_v61  ;;  %v3975_v50 = vmul.f32 -1.442695, %v920_v57  ;;  %v3976_v59 = vmul.f32 -1.442695, %v928_v51  ;;  %v6659_v51 = vld [vmem:[#allocation24_spill] sm:$0xff] }
 0x277   :  { %4049 = vpow2.f32 %v3975_v50 }
 0x278   :  { %4051 = vpow2.f32 %v3976_v59 }
 0x282   :  { %v4048_v58 = vpop.eup %4047 }
 0x283   :  { %v916_v3 = vadd.f32 1.0, %v4048_v58 }
 0x284   :  { %v4050_v49 = vpop.eup %4049 }
 0x285   :  { %4053 = vrcp.f32 %v916_v3  ;;  %v925_v54 = vadd.f32 1.0, %v4050_v49  ;;  %v4052_v1 = vpop.eup %4051  ;;  %v6663_v3 = vld [vmem:[#allocation28_spill] sm:$0xff]  ;;  %v6664_v49 = vld [vmem:[#allocation29_spill] sm:$0xff] }
 0x286   :  { %4055 = vtanh.f32 %v936_v2  ;;  %v933_v4 = vadd.f32 1.0, %v4052_v1  ;;  %v6658_v2 = vld [vmem:[#allocation23_spill] sm:$0xff] }
 0x287   :  { %4057 = vrcp.f32 %v925_v54  ;;  %v6665_v54 = vld [vmem:[#allocation30_spill] sm:$0xff]  ;;  %v6666_v1 = vld [vmem:[#allocation31_spill] sm:$0xff] }
 0x288   :  { %4059 = vrcp.f32 %v933_v4  ;;  %v6670_v4 = vld [vmem:[#allocation35_spill] sm:$0xff] }
 0x292   :  { %v4054_v52 = vpop.eup %4053 }
 0x293   :  { %v4056_v5 = vpop.eup %4055  ;;  %v939_v61 = vmul.f32 %v4054_v52, %v5223_v48  ;;  %v6657_v48 = vld [vmem:[#allocation22_spill] sm:$0xff]  ;;  %v6667_v52 = vld [vmem:[#allocation32_spill] sm:$0xff] }
 0x294   :  { %v4058_v55 = vpop.eup %4057 }
 0x295   :  { %v940_v57 = vmul.f32 %v4058_v55, %v4056_v5  ;;  %v4060_v58 = vpop.eup %4059  ;;  %v6668_v5 = vld [vmem:[#allocation33_spill] sm:$0xff]  ;;  %v6669_v55 = vld [vmem:[#allocation34_spill] sm:$0xff] }
 0x297   :  { %v5296_v50 = vadd.f32 %v940_v57, %v939_v61  ;;  %v6671_v61 = vld [vmem:[#allocation36_spill] sm:$0xff]  ;;  %v6672_v57 = vld [vmem:[#allocation37_spill] sm:$0xff] }
 0x299   :  { %4061 = vtanh.f32 %v5296_v50 }
 0x2a6   :  { %v4062_v45 = vpop.eup %4061 }
 0x2a7   :  { %v943_v59 = vmul.f32 %v4062_v45, %v4060_v58  ;;  %v6673_v58 = vld [vmem:[#allocation38_spill] sm:$0xff]  ;;  %v6674_v45 = vld [vmem:[#allocation39_spill] sm:$0xff] }
 0x2a9   :  { %1011 = vmatmul.mubr.f32.vlgmr.msra.gmra.mxu0 %v943_v59  ;;  %1082 = vmatmul.mubr.f32.vlgmr.msra.gmra.mxu1 %v943_v59  ;;  %v6675_v59 = vmov 0.0  }
 0x2aa   :  { %1152 = vmatpush1.msra.mxu0 %v4944_v6  ;;  %1223 = vmatpush1.msra.mxu1 %v4946_v7 }
 0x2ab   :  { %1153 = vmatprep.subr.mxu0 %v4948_v8  ;;  %1224 = vmatprep.subr.mxu1 %v4950_v9 }
 0x2ac   :  { %1154 = vmatpush1.msra.mxu0 %v4954_v10  ;;  %1225 = vmatpush1.msra.mxu1 %v4956_v11 }
 0x2ad   :  { %1155 = vmatprep.subr.mxu0 %v4960_v0  ;;  %1226 = vmatprep.subr.mxu1 %v4962_v12 }
 0x2ae   :  { %1156 = vmatpush1.msra.mxu0 %v4966_v13  ;;  %1227 = vmatpush1.msra.mxu1 %v4968_v14 }
 0x2af   :  { %1157 = vmatprep.subr.mxu0 %v4972_v15  ;;  %1228 = vmatprep.subr.mxu1 %v4974_v16 }
 0x2b0   :  { %1158 = vmatpush1.msra.mxu0 %v4978_v17  ;;  %1229 = vmatpush1.msra.mxu1 %v4980_v18 }
 0x2b1   :  { %1159 = vmatprep.subr.mxu0 %v4984_v19  ;;  %1230 = vmatprep.subr.mxu1 %v4986_v20 }
 0x2b2   :  { %1160 = vmatpush1.msra.mxu0 %v4990_v21  ;;  %1231 = vmatpush1.msra.mxu1 %v4992_v22 }
 0x2b3   :  { %1161 = vmatprep.subr.mxu0 %v4996_v23  ;;  %1232 = vmatprep.subr.mxu1 %v4998_v24 }
 0x2b4   :  { %1162 = vmatpush1.msra.mxu0 %v5002_v25  ;;  %1233 = vmatpush1.msra.mxu1 %v5004_v26 }
 0x2b5   :  { %1163 = vmatprep.subr.mxu0 %v5008_v27  ;;  %1234 = vmatprep.subr.mxu1 %v5010_v28 }
 0x2b6   :  { %1164 = vmatpush1.msra.mxu0 %v5014_v29  ;;  %1235 = vmatpush1.msra.mxu1 %v5016_v30 }
 0x2b7   :  { %1165 = vmatprep.subr.mxu0 %v5020_v31  ;;  %1236 = vmatprep.subr.mxu1 %v5022_v32 }
 0x2b8   :  { %1166 = vmatpush1.msra.mxu0 %v5026_v33  ;;  %1237 = vmatpush1.msra.mxu1 %v5028_v34 }
 0x2b9   :  { %1167 = vmatprep.subr.mxu0 %v5032_v35  ;;  %1238 = vmatprep.subr.mxu1 %v5034_v36 }
 0x2ba   :  { %1168 = vmatpush1.msra.mxu0 %v5038_v37  ;;  %1239 = vmatpush1.msra.mxu1 %v5040_v38 }
 0x2bb   :  { %1169 = vmatprep.subr.mxu0 %v5044_v39  ;;  %1240 = vmatprep.subr.mxu1 %v5046_v40 }
 0x2bc   :  { %1170 = vmatpush1.msra.mxu0 %v5050_v41  ;;  %1241 = vmatpush1.msra.mxu1 %v5052_v42 }
 0x2bd   :  { %1171 = vmatprep.subr.mxu0 %v5056_v43  ;;  %1242 = vmatprep.subr.mxu1 %v5058_v44 }
 0x2be   :  { %1172 = vmatpush1.msra.mxu0 %v6634_v56  ;;  %1243 = vmatpush1.msra.mxu1 %v5064_v46 }
 0x2bf   :  { %1173 = vmatprep.subr.mxu0 %v5068_v47  ;;  %1244 = vmatprep.subr.mxu1 %v6657_v48 }
 0x2c0   :  { %1174 = vmatpush1.msra.mxu0 %v6658_v2  ;;  %1245 = vmatpush1.msra.mxu1 %v6659_v51 }
 0x2c1   :  { %1175 = vmatprep.subr.mxu0 %v6660_v62  ;;  %1246 = vmatprep.subr.mxu1 %v6661_v60 }
 0x2c2   :  { %1176 = vmatpush1.msra.mxu0 %v6662_v63  ;;  %1247 = vmatpush1.msra.mxu1 %v6663_v3 }
 0x2c3   :  { %1177 = vmatprep.subr.mxu0 %v6664_v49  ;;  %1248 = vmatprep.subr.mxu1 %v6665_v54  ;;  %v6676_v54 = vld [vmem:[#allocation40_spill] sm:$0xff] }
 0x2c4   :  { %1178 = vmatpush1.msra.mxu0 %v6666_v1  ;;  %1249 = vmatpush1.msra.mxu1 %v6667_v52  ;;  %v6677_v52 = vld [vmem:[#allocation19_spill] sm:$0xff] }
 0x2c5   :  { %1179 = vmatprep.subr.mxu0 %v6668_v5  ;;  %1250 = vmatprep.subr.mxu1 %v6669_v55  ;;  %v6678_v5 = vld [vmem:[#allocation20_spill] sm:$0xff] }
 0x2c6   :  { %1180 = vmatpush1.msra.mxu0 %v6670_v4  ;;  %1251 = vmatpush1.msra.mxu1 %v6671_v61 }
 0x2c7   :  { %1181 = vmatprep.subr.mxu0 %v6672_v57  ;;  %1252 = vmatprep.subr.mxu1 %v6673_v58 }
 0x2c8   :  { %1182 = vmatpush1.msra.mxu0 %v6674_v45  ;;  %1215 = vmatprep.mubr.f32.mxu0 %v6675_v59 }
 0x2c9   :  { %1253 = vmatpush1.msra.mxu1 %v6676_v54  ;;  %1286 = vmatprep.mubr.f32.mxu1 %v6675_v59  ;;  %v945_v54 = vld [vmem:[#allocation2 + $0x2] ss:$8 sm:$0xf] }
 0x2ca   :  { %1356 = vmatprep.subr.mxu0 %v6677_v52  ;;  %1427 = vmatprep.subr.mxu1 %v6678_v5 }
 0x369   :  { %v1012_v55 = vpop.f32.mrf.mxu0  ;;  %v1083_v4 = vpop.f32.mrf.mxu1 }
 0x36b   :  { %v1014_v1 = vpop.f32.mrf.mxu0  ;;  %v1085_v61 = vpop.f32.mrf.mxu1 }
 0x36c   :  { %v1092_v49 = vcombine.low %v1012_v55, %v1014_v1  ;;  %v1093_v57 = vcombine.low %v1083_v4, %v1085_v61 }
 0x36e   :  { %v1100_v58 = vrot.slane %v1092_v49, %v5218_v53  ;;  %v1107_v45 = vrot.slane %v1093_v57, %v5218_v53 }
 0x370   :  { %v1108_v3 = vcombine.low %v1100_v58, %v1107_v45 }
 0x372   :  { %v1115_v63 = vrot.slane %v1108_v3, %v5218_v53 }
 0x374   :  { %v1117_v60 = vadd.f32 %v1115_v63, %v945_v54 }
 0x376   :  { %v3977_v59 = vmul.f32 -1.442695, %v1117_v60  ;;  %v1125_v62 = vrot.slane %v1117_v60, 1  ;;  %v1133_v5 = vrot.slane %v1117_v60, 2  ;;  %v1141_v48 = vrot.slane %v1117_v60, 3 }
 0x378   :  { %4063 = vpow2.f32 %v3977_v59  ;;  %v3978_v52 = vmul.f32 -1.442695, %v1125_v62  ;;  %v3979_v51 = vmul.f32 -1.442695, %v1133_v5 }
 0x37a   :  { %4065 = vpow2.f32 %v3978_v52 }
 0x37b   :  { %4067 = vpow2.f32 %v3979_v51 }
 0x385   :  { %v4064_v2 = vpop.eup %4063 }
 0x386   :  { %v1121_v1 = vadd.f32 1.0, %v4064_v2 }
 0x387   :  { %v4066_v55 = vpop.eup %4065 }
 0x388   :  { %4069 = vrcp.f32 %v1121_v1  ;;  %v1130_v49 = vadd.f32 1.0, %v4066_v55  ;;  %v4068_v4 = vpop.eup %4067 }
 0x389   :  { %4071 = vtanh.f32 %v1141_v48  ;;  %v1138_v54 = vadd.f32 1.0, %v4068_v4 }
 0x38a   :  { %4073 = vrcp.f32 %v1130_v49 }
 0x38b   :  { %4075 = vrcp.f32 %v1138_v54  ;;  %v5452_v54 = vld [vmem:[#allocation11 + $0x1f0] sm:$0xff] }
 0x395   :  { %v4070_v3 = vpop.eup %4069 }
 0x396   :  { %v4072_v61 = vpop.eup %4071  ;;  %v1144_v57 = vmul.f32 %v4070_v3, %v5296_v50 }
 0x397   :  { %v4074_v63 = vpop.eup %4073 }
 0x398   :  { %v1145_v62 = vmul.f32 %v4074_v63, %v4072_v61  ;;  %v4076_v2 = vpop.eup %4075  ;;  %v5449_v63 = vld [vmem:[#allocation11 + $0x1e0] sm:$0xff] }
 0x39a   :  { %v5369_v58 = vadd.f32 %v1145_v62, %v1144_v57  ;;  %v5455_v57 = vld [vmem:[#allocation11 + $0x1c8] sm:$0xff]  ;;  %v5458_v62 = vld [vmem:[#allocation11 + $0x1d8] sm:$0xff] }
 0x39c   :  { %4077 = vtanh.f32 %v5369_v58 }
 0x3a9   :  { %v4078_v60 = vpop.eup %4077 }
 0x3aa   :  { %v1148_v51 = vmul.f32 %v4078_v60, %v4076_v2  ;;  %v5464_v2 = vld [vmem:[#allocation11 + $0x1d0] sm:$0xff]  ;;  %v5467_v60 = vld [vmem:[#allocation11 + $0x1a8] sm:$0xff] }
 0x3ac   :  { %1216 = vmatmul.mubr.f32.vlgmr.msra.gmra.mxu0 %v1148_v51  ;;  %1287 = vmatmul.mubr.f32.vlgmr.msra.gmra.mxu1 %v1148_v51  ;;  %v5470_v51 = vld [vmem:[#allocation11 + $0x1b8] sm:$0xff] }
 0x3ad   :  { %1357 = vmatpush1.msra.mxu0 %v4944_v6  ;;  %1428 = vmatpush1.msra.mxu1 %v4946_v7  ;;  %v6679_v6 = vld [vmem:[#allocation22_spill] sm:$0xff]  ;;  %v6680_v7 = vld [vmem:[#allocation23_spill] sm:$0xff] }
 0x3ae   :  { %1358 = vmatprep.subr.mxu0 %v4948_v8  ;;  %1429 = vmatprep.subr.mxu1 %v4950_v9  ;;  %v6681_v8 = vld [vmem:[#allocation24_spill] sm:$0xff]  ;;  %v6682_v9 = vld [vmem:[#allocation25_spill] sm:$0xff] }
 0x3af   :  { %1359 = vmatpush1.msra.mxu0 %v4954_v10  ;;  %1430 = vmatpush1.msra.mxu1 %v4956_v11  ;;  %v6683_v10 = vld [vmem:[#allocation26_spill] sm:$0xff]  ;;  %v6684_v11 = vld [vmem:[#allocation27_spill] sm:$0xff] }
 0x3b0   :  { %1360 = vmatprep.subr.mxu0 %v4960_v0  ;;  %1431 = vmatprep.subr.mxu1 %v4962_v12  ;;  %v6685_v0 = vld [vmem:[#allocation28_spill] sm:$0xff]  ;;  %v6686_v12 = vld [vmem:[#allocation29_spill] sm:$0xff] }
 0x3b1   :  { %1361 = vmatpush1.msra.mxu0 %v4966_v13  ;;  %1432 = vmatpush1.msra.mxu1 %v4968_v14  ;;  %v6687_v13 = vld [vmem:[#allocation30_spill] sm:$0xff]  ;;  %v6688_v14 = vld [vmem:[#allocation31_spill] sm:$0xff] }
 0x3b2   :  { %1362 = vmatprep.subr.mxu0 %v4972_v15  ;;  %1433 = vmatprep.subr.mxu1 %v4974_v16  ;;  %v6689_v15 = vld [vmem:[#allocation32_spill] sm:$0xff]  ;;  %v6690_v16 = vld [vmem:[#allocation33_spill] sm:$0xff] }
 0x3b3   :  { %1363 = vmatpush1.msra.mxu0 %v4978_v17  ;;  %1434 = vmatpush1.msra.mxu1 %v4980_v18  ;;  %v6691_v17 = vld [vmem:[#allocation34_spill] sm:$0xff]  ;;  %v6692_v18 = vld [vmem:[#allocation35_spill] sm:$0xff] }
 0x3b4   :  { %1364 = vmatprep.subr.mxu0 %v4984_v19  ;;  %1435 = vmatprep.subr.mxu1 %v4986_v20  ;;  %v6693_v19 = vld [vmem:[#allocation36_spill] sm:$0xff]  ;;  %v6694_v20 = vld [vmem:[#allocation37_spill] sm:$0xff] }
 0x3b5   :  { %1365 = vmatpush1.msra.mxu0 %v4990_v21  ;;  %1436 = vmatpush1.msra.mxu1 %v4992_v22  ;;  %v6695_v21 = vld [vmem:[#allocation38_spill] sm:$0xff]  ;;  %v6696_v22 = vld [vmem:[#allocation39_spill] sm:$0xff] }
 0x3b6   :  { %1366 = vmatprep.subr.mxu0 %v4996_v23  ;;  %1437 = vmatprep.subr.mxu1 %v4998_v24  ;;  %v6697_v23 = vmov 0.0   ;;  %v6698_v24 = vld [vmem:[#allocation40_spill] sm:$0xff] }
 0x3b7   :  { %1367 = vmatpush1.msra.mxu0 %v5002_v25  ;;  %1438 = vmatpush1.msra.mxu1 %v5004_v26  ;;  %v5436_v25 = vld [vmem:[#allocation11 + $0x1e8] sm:$0xff]  ;;  %v5439_v26 = vld [vmem:[#allocation11 + $0x1f8] sm:$0xff] }
 0x3b8   :  { %1368 = vmatprep.subr.mxu0 %v5008_v27  ;;  %1439 = vmatprep.subr.mxu1 %v5010_v28  ;;  %6699 = vst [vmem:[#allocation21_spill] sm:$0xff] %v5436_v25  ;;  %6700 = vst [vmem:[#allocation19_spill] sm:$0xff] %v5439_v26 }
 0x3b9   :  { %1369 = vmatpush1.msra.mxu0 %v5014_v29  ;;  %1440 = vmatpush1.msra.mxu1 %v5016_v30 }
 0x3ba   :  { %1370 = vmatprep.subr.mxu0 %v5020_v31  ;;  %1441 = vmatprep.subr.mxu1 %v5022_v32 }
 0x3bb   :  { %1371 = vmatpush1.msra.mxu0 %v5026_v33  ;;  %1442 = vmatpush1.msra.mxu1 %v5028_v34 }
 0x3bc   :  { %1372 = vmatprep.subr.mxu0 %v5032_v35  ;;  %1443 = vmatprep.subr.mxu1 %v5034_v36 }
 0x3bd   :  { %1373 = vmatpush1.msra.mxu0 %v5038_v37  ;;  %1444 = vmatpush1.msra.mxu1 %v5040_v38  ;;  %v1150_v37 = vld [vmem:[#allocation2 + $0x3] ss:$8 sm:$0xf] }
 0x3be   :  { %1374 = vmatprep.subr.mxu0 %v5044_v39  ;;  %1445 = vmatprep.subr.mxu1 %v5046_v40 }
 0x3bf   :  { %1375 = vmatpush1.msra.mxu0 %v5050_v41  ;;  %1446 = vmatpush1.msra.mxu1 %v5052_v42 }
 0x3c0   :  { %1376 = vmatprep.subr.mxu0 %v5056_v43  ;;  %1447 = vmatprep.subr.mxu1 %v5058_v44 }
 0x3c1   :  { %1377 = vmatpush1.msra.mxu0 %v6634_v56  ;;  %1448 = vmatpush1.msra.mxu1 %v5064_v46 }
 0x3c2   :  { %1378 = vmatprep.subr.mxu0 %v5068_v47  ;;  %1449 = vmatprep.subr.mxu1 %v6679_v6  ;;  %v5473_v6 = vld [vmem:[#allocation11 + $0x1a0] sm:$0xff] }
 0x3c3   :  { %1379 = vmatpush1.msra.mxu0 %v6680_v7  ;;  %1450 = vmatpush1.msra.mxu1 %v6681_v8  ;;  %v5476_v7 = vld [vmem:[#allocation11 + $0x1b0] sm:$0xff]  ;;  %v5479_v8 = vld [vmem:[#allocation11 + $0x188] sm:$0xff] }
 0x3c4   :  { %1380 = vmatprep.subr.mxu0 %v6682_v9  ;;  %1451 = vmatprep.subr.mxu1 %v6683_v10  ;;  %v5482_v9 = vld [vmem:[#allocation11 + $0x198] sm:$0xff]  ;;  %v5485_v10 = vld [vmem:[#allocation11 + $0x180] sm:$0xff] }
 0x3c5   :  { %1381 = vmatpush1.msra.mxu0 %v6684_v11  ;;  %1452 = vmatpush1.msra.mxu1 %v6685_v0  ;;  %v5488_v11 = vld [vmem:[#allocation11 + $0x190] sm:$0xff]  ;;  %v5491_v0 = vld [vmem:[#allocation11 + $0x168] sm:$0xff] }
 0x3c6   :  { %1382 = vmatprep.subr.mxu0 %v6686_v12  ;;  %1453 = vmatprep.subr.mxu1 %v6687_v13  ;;  %v5494_v12 = vld [vmem:[#allocation11 + $0x178] sm:$0xff]  ;;  %v5497_v13 = vld [vmem:[#allocation11 + $0x160] sm:$0xff] }
 0x3c7   :  { %1383 = vmatpush1.msra.mxu0 %v6688_v14  ;;  %1454 = vmatpush1.msra.mxu1 %v6689_v15  ;;  %v5500_v14 = vld [vmem:[#allocation11 + $0x170] sm:$0xff]  ;;  %v5503_v15 = vld [vmem:[#allocation11 + $0x148] sm:$0xff] }
 0x3c8   :  { %1384 = vmatprep.subr.mxu0 %v6690_v16  ;;  %1455 = vmatprep.subr.mxu1 %v6691_v17  ;;  %v5506_v16 = vld [vmem:[#allocation11 + $0x158] sm:$0xff]  ;;  %v5509_v17 = vld [vmem:[#allocation11 + $0x140] sm:$0xff] }
 0x3c9   :  { %1385 = vmatpush1.msra.mxu0 %v6692_v18  ;;  %1456 = vmatpush1.msra.mxu1 %v6693_v19  ;;  %v5512_v18 = vld [vmem:[#allocation11 + $0x150] sm:$0xff]  ;;  %v5515_v19 = vld [vmem:[#allocation11 + $0x128] sm:$0xff] }
 0x3ca   :  { %1386 = vmatprep.subr.mxu0 %v6694_v20  ;;  %1457 = vmatprep.subr.mxu1 %v6695_v21  ;;  %v5518_v20 = vld [vmem:[#allocation11 + $0x138] sm:$0xff]  ;;  %v5521_v21 = vld [vmem:[#allocation11 + $0x120] sm:$0xff] }
 0x3cb   :  { %1387 = vmatpush1.msra.mxu0 %v6696_v22  ;;  %1420 = vmatprep.mubr.f32.mxu0 %v6697_v23  ;;  %v5524_v22 = vld [vmem:[#allocation11 + $0x130] sm:$0xff] }
 0x3cc   :  { %1458 = vmatpush1.msra.mxu1 %v6698_v24  ;;  %1491 = vmatprep.mubr.f32.mxu1 %v6697_v23  ;;  %v5527_v24 = vld [vmem:[#allocation11 + $0x108] sm:$0xff] }
 0x3cd   :  { %1561 = vmatprep.subr.mxu0 %v5436_v25  ;;  %1632 = vmatprep.subr.mxu1 %v5439_v26 }
 0x46c   :  { %v1217_v27 = vpop.f32.mrf.mxu0  ;;  %v1288_v28 = vpop.f32.mrf.mxu1 }
 0x46e   :  { %v1219_v29 = vpop.f32.mrf.mxu0  ;;  %v1290_v30 = vpop.f32.mrf.mxu1 }
 0x46f   :  { %v1297_v31 = vcombine.low %v1217_v27, %v1219_v29  ;;  %v1298_v32 = vcombine.low %v1288_v28, %v1290_v30  ;;  %v5530_v27 = vld [vmem:[#allocation11 + $0x118] sm:$0xff]  ;;  %v5533_v28 = vld [vmem:[#allocation11 + $0x100] sm:$0xff]  ;;  %v5536_v29 = vld [vmem:[#allocation11 + $0x110] sm:$0xff] }
 0x470   :  { %v5539_v30 = vld [vmem:[#allocation11 + $0xe8] sm:$0xff] }
 0x471   :  { %v1305_v33 = vrot.slane %v1297_v31, %v5218_v53  ;;  %v1312_v34 = vrot.slane %v1298_v32, %v5218_v53  ;;  %v5542_v31 = vld [vmem:[#allocation11 + $0xf8] sm:$0xff]  ;;  %v5545_v32 = vld [vmem:[#allocation11 + $0xe0] sm:$0xff] }
 0x473   :  { %v1313_v35 = vcombine.low %v1305_v33, %v1312_v34  ;;  %v5548_v33 = vld [vmem:[#allocation11 + $0xf0] sm:$0xff]  ;;  %v5551_v34 = vld [vmem:[#allocation11 + $0xc8] sm:$0xff] }
 0x475   :  { %v1320_v36 = vrot.slane %v1313_v35, %v5218_v53  ;;  %v5554_v35 = vld [vmem:[#allocation11 + $0xd8] sm:$0xff] }
 0x477   :  { %v1322_v38 = vadd.f32 %v1320_v36, %v1150_v37  ;;  %v5557_v36 = vld [vmem:[#allocation11 + $0xc0] sm:$0xff]  ;;  %v5560_v37 = vld [vmem:[#allocation11 + $0xd0] sm:$0xff] }
 0x479   :  { %v3980_v39 = vmul.f32 -1.442695, %v1322_v38  ;;  %v1330_v40 = vrot.slane %v1322_v38, 1  ;;  %v1338_v42 = vrot.slane %v1322_v38, 2  ;;  %v1346_v46 = vrot.slane %v1322_v38, 3  ;;  %v5563_v38 = vld [vmem:[#allocation11 + $0xa8] sm:$0xff] }
 0x47b   :  { %4079 = vpow2.f32 %v3980_v39  ;;  %v3981_v41 = vmul.f32 -1.442695, %v1330_v40  ;;  %v3982_v43 = vmul.f32 -1.442695, %v1338_v42  ;;  %v5566_v39 = vld [vmem:[#allocation11 + $0xb8] sm:$0xff]  ;;  %v5569_v40 = vld [vmem:[#allocation11 + $0xa0] sm:$0xff] }
 0x47c   :  { %v5575_v42 = vld [vmem:[#allocation11 + $0x88] sm:$0xff] }
 0x47d   :  { %4081 = vpow2.f32 %v3981_v41  ;;  %v5572_v41 = vld [vmem:[#allocation11 + $0xb0] sm:$0xff] }
 0x47e   :  { %4083 = vpow2.f32 %v3982_v43  ;;  %v5578_v43 = vld [vmem:[#allocation11 + $0x98] sm:$0xff] }
 0x47f   :  { %6701 = vst [vmem:[#allocation20_spill] sm:$0xff] %v5578_v43 }
 0x488   :  { %v4080_v44 = vpop.eup %4079 }
 0x489   :  { %v1326_v47 = vadd.f32 1.0, %v4080_v44  ;;  %v5581_v44 = vld [vmem:[#allocation11 + $0x80] sm:$0xff] }
 0x48a   :  { %v4082_v56 = vpop.eup %4081  ;;  %6702 = vst [vmem:[#allocation22_spill] sm:$0xff] %v5581_v44 }
 0x48b   :  { %4085 = vrcp.f32 %v1326_v47  ;;  %v1335_v50 = vadd.f32 1.0, %v4082_v56  ;;  %v4084_v48 = vpop.eup %4083  ;;  %v5587_v47 = vld [vmem:[#allocation11 + $0x68] sm:$0xff]  ;;  %v5590_v56 = vld [vmem:[#allocation11 + $0x78] sm:$0xff] }
 0x48c   :  { %4087 = vtanh.f32 %v1346_v46  ;;  %v1343_v5 = vadd.f32 1.0, %v4084_v48  ;;  %v5584_v46 = vld [vmem:[#allocation11 + $0x90] sm:$0xff]  ;;  %6704 = vst [vmem:[#allocation24_spill] sm:$0xff] %v5587_v47  ;;  %6705 = vst [vmem:[#allocation25_spill] sm:$0xff] %v5590_v56 }
 0x48d   :  { %4089 = vrcp.f32 %v1335_v50  ;;  %6703 = vst [vmem:[#allocation23_spill] sm:$0xff] %v5584_v46  ;;  %v5593_v50 = vld [vmem:[#allocation11 + $0x60] sm:$0xff]  ;;  %v5596_v48 = vld [vmem:[#allocation11 + $0x70] sm:$0xff] }
 0x48e   :  { %4091 = vrcp.f32 %v1343_v5  ;;  %6706 = vst [vmem:[#allocation26_spill] sm:$0xff] %v5593_v50  ;;  %6707 = vst [vmem:[#allocation27_spill] sm:$0xff] %v5596_v48  ;;  %v5608_v5 = vld [vmem:[#allocation11 + $0x50] sm:$0xff] }
 0x48f   :  { %6711 = vst [vmem:[#allocation31_spill] sm:$0xff] %v5608_v5 }
 0x498   :  { %v4086_v45 = vpop.eup %4085 }
 0x499   :  { %v4088_v59 = vpop.eup %4087  ;;  %v1349_v1 = vmul.f32 %v4086_v45, %v5369_v58  ;;  %v5461_v58 = vld [vmem:[#allocation11 + $0x1c0] sm:$0xff]  ;;  %v5599_v45 = vld [vmem:[#allocation11 + $0x48] sm:$0xff] }
 0x49a   :  { %v4090_v52 = vpop.eup %4089  ;;  %6708 = vst [vmem:[#allocation28_spill] sm:$0xff] %v5599_v45 }
 0x49b   :  { %v1350_v55 = vmul.f32 %v4090_v52, %v4088_v59  ;;  %v4092_v4 = vpop.eup %4091  ;;  %v5602_v59 = vld [vmem:[#allocation11 + $0x58] sm:$0xff]  ;;  %v5605_v52 = vld [vmem:[#allocation11 + $0x40] sm:$0xff] }
 0x49c   :  { %6709 = vst [vmem:[#allocation29_spill] sm:$0xff] %v5602_v59  ;;  %6710 = vst [vmem:[#allocation30_spill] sm:$0xff] %v5605_v52 }
 0x49d   :  { %v5446_v49 = vadd.f32 %v1350_v55, %v1349_v1  ;;  %v5611_v1 = vld [vmem:[#allocation11 + $0x28] sm:$0xff]  ;;  %v5614_v55 = vld [vmem:[#allocation11 + $0x38] sm:$0xff] }
 0x49e   :  { %6712 = vst [vmem:[#allocation32_spill] sm:$0xff] %v5611_v1  ;;  %6713 = vst [vmem:[#allocation33_spill] sm:$0xff] %v5614_v55 }
 0x49f   :  { %4093 = vtanh.f32 %v5446_v49 }
 0x4ac   :  { %v4094_v3 = vpop.eup %4093 }
 0x4ad   :  { %v1353_v61 = vmul.f32 %v4094_v3, %v4092_v4  ;;  %v5617_v4 = vld [vmem:[#allocation11 + $0x20] sm:$0xff]  ;;  %v5620_v3 = vld [vmem:[#allocation11 + $0x30] sm:$0xff] }
 0x4ae   :  { %6714 = vst [vmem:[#allocation34_spill] sm:$0xff] %v5617_v4  ;;  %6715 = vst [vmem:[#allocation35_spill] sm:$0xff] %v5620_v3 }
 0x4af   :  { %1421 = vmatmul.mubr.f32.vlgmr.msra.gmra.mxu0 %v1353_v61  ;;  %1492 = vmatmul.mubr.f32.vlgmr.msra.gmra.mxu1 %v1353_v61  ;;  %v5623_v61 = vld [vmem:[#allocation11 + $0x8] sm:$0xff] }
 0x4b0   :  { %1562 = vmatpush1.msra.mxu0 %v5449_v63  ;;  %1633 = vmatpush1.msra.mxu1 %v5452_v54  ;;  %6716 = vst [vmem:[#allocation36_spill] sm:$0xff] %v5623_v61 }
 0x4b1   :  { %1563 = vmatprep.subr.mxu0 %v5455_v57  ;;  %1634 = vmatprep.subr.mxu1 %v5458_v62 }
 0x4b2   :  { %1564 = vmatpush1.msra.mxu0 %v5461_v58  ;;  %1635 = vmatpush1.msra.mxu1 %v5464_v2 }
 0x4b3   :  { %1565 = vmatprep.subr.mxu0 %v5467_v60  ;;  %1636 = vmatprep.subr.mxu1 %v5470_v51 }
 0x4b4   :  { %1566 = vmatpush1.msra.mxu0 %v5473_v6  ;;  %1637 = vmatpush1.msra.mxu1 %v5476_v7 }
 0x4b5   :  { %1567 = vmatprep.subr.mxu0 %v5479_v8  ;;  %1638 = vmatprep.subr.mxu1 %v5482_v9 }
 0x4b6   :  { %1568 = vmatpush1.msra.mxu0 %v5485_v10  ;;  %1639 = vmatpush1.msra.mxu1 %v5488_v11 }
 0x4b7   :  { %1569 = vmatprep.subr.mxu0 %v5491_v0  ;;  %1640 = vmatprep.subr.mxu1 %v5494_v12 }
 0x4b8   :  { %1570 = vmatpush1.msra.mxu0 %v5497_v13  ;;  %1641 = vmatpush1.msra.mxu1 %v5500_v14 }
 0x4b9   :  { %1571 = vmatprep.subr.mxu0 %v5503_v15  ;;  %1642 = vmatprep.subr.mxu1 %v5506_v16 }
 0x4ba   :  { %1572 = vmatpush1.msra.mxu0 %v5509_v17  ;;  %1643 = vmatpush1.msra.mxu1 %v5512_v18 }
 0x4bb   :  { %1573 = vmatprep.subr.mxu0 %v5515_v19  ;;  %1644 = vmatprep.subr.mxu1 %v5518_v20 }
 0x4bc   :  { %1574 = vmatpush1.msra.mxu0 %v5521_v21  ;;  %1645 = vmatpush1.msra.mxu1 %v5524_v22 }
 0x4bd   :  { %1575 = vmatprep.subr.mxu0 %v5527_v24  ;;  %1646 = vmatprep.subr.mxu1 %v5530_v27 }
 0x4be   :  { %1576 = vmatpush1.msra.mxu0 %v5533_v28  ;;  %1647 = vmatpush1.msra.mxu1 %v5536_v29 }
 0x4bf   :  { %1577 = vmatprep.subr.mxu0 %v5539_v30  ;;  %1648 = vmatprep.subr.mxu1 %v5542_v31 }
 0x4c0   :  { %1578 = vmatpush1.msra.mxu0 %v5545_v32  ;;  %1649 = vmatpush1.msra.mxu1 %v5548_v33 }
 0x4c1   :  { %1579 = vmatprep.subr.mxu0 %v5551_v34  ;;  %1650 = vmatprep.subr.mxu1 %v5554_v35 }
 0x4c2   :  { %1580 = vmatpush1.msra.mxu0 %v5557_v36  ;;  %1651 = vmatpush1.msra.mxu1 %v5560_v37 }
 0x4c3   :  { %1581 = vmatprep.subr.mxu0 %v5563_v38  ;;  %1652 = vmatprep.subr.mxu1 %v5566_v39 }
 0x4c4   :  { %1582 = vmatpush1.msra.mxu0 %v5569_v40  ;;  %1653 = vmatpush1.msra.mxu1 %v5572_v41 }
 0x4c5   :  { %1583 = vmatprep.subr.mxu0 %v5575_v42  ;;  %1654 = vmatprep.subr.mxu1 %v5578_v43 }
 0x4c6   :  { %1584 = vmatpush1.msra.mxu0 %v5581_v44  ;;  %1655 = vmatpush1.msra.mxu1 %v5584_v46 }
 0x4c7   :  { %1585 = vmatprep.subr.mxu0 %v5587_v47  ;;  %1656 = vmatprep.subr.mxu1 %v5590_v56 }
 0x4c8   :  { %1586 = vmatpush1.msra.mxu0 %v5593_v50  ;;  %1657 = vmatpush1.msra.mxu1 %v5596_v48 }
 0x4c9   :  { %1587 = vmatprep.subr.mxu0 %v5599_v45  ;;  %1658 = vmatprep.subr.mxu1 %v5602_v59 }
 0x4ca   :  { %1588 = vmatpush1.msra.mxu0 %v5605_v52  ;;  %1659 = vmatpush1.msra.mxu1 %v5608_v5  ;;  %v5626_v5 = vld [vmem:[#allocation11 + $0x18] sm:$0xff] }
 0x4cb   :  { %1589 = vmatprep.subr.mxu0 %v5611_v1  ;;  %1660 = vmatprep.subr.mxu1 %v5614_v55  ;;  %6717 = vst [vmem:[#allocation37_spill] sm:$0xff] %v5626_v5  ;;  %v5629_v1 = vld [vmem:[#allocation11] sm:$0xff]  ;;  %v5633_v55 = vld [vmem:[#allocation11 + $0x10] sm:$0xff] }
 0x4cc   :  { %1590 = vmatpush1.msra.mxu0 %v5617_v4  ;;  %1661 = vmatpush1.msra.mxu1 %v5620_v3  ;;  %6718 = vst [vmem:[#allocation38_spill] sm:$0xff] %v5629_v1  ;;  %6719 = vst [vmem:[#allocation39_spill] sm:$0xff] %v5633_v55 }
 0x4cd   :  { %1591 = vmatprep.subr.mxu0 %v5623_v61  ;;  %1662 = vmatprep.subr.mxu1 %v5626_v5 }
 0x4ce   :  { %1592 = vmatpush1.msra.mxu0 %v5629_v1  ;;  %1625 = vmatprep.mubr.f32.mxu0 %v6697_v23 }
 0x4cf   :  { %1663 = vmatpush1.msra.mxu1 %v5633_v55  ;;  %1696 = vmatprep.mubr.f32.mxu1 %v6697_v23  ;;  %v1355_v55 = vld [vmem:[#allocation2 + $0x4] ss:$8 sm:$0xf] }
 0x4d0   :  { %1766 = vmatprep.subr.mxu0 %v5436_v25  ;;  %1837 = vmatprep.subr.mxu1 %v5439_v26 }
 0x56f   :  { %v1422_v61 = vpop.f32.mrf.mxu0  ;;  %v1493_v3 = vpop.f32.mrf.mxu1 }
 0x571   :  { %v1424_v4 = vpop.f32.mrf.mxu0  ;;  %v1495_v5 = vpop.f32.mrf.mxu1 }
 0x572   :  { %v1502_v52 = vcombine.low %v1422_v61, %v1424_v4  ;;  %v1503_v59 = vcombine.low %v1493_v3, %v1495_v5  ;;  %v6724_v3 = vld [vmem:[#allocation25_spill] sm:$0xff]  ;;  %v6725_v61 = vld [vmem:[#allocation26_spill] sm:$0xff] }
 0x574   :  { %v1510_v1 = vrot.slane %v1502_v52, %v5218_v53  ;;  %v1517_v45 = vrot.slane %v1503_v59, %v5218_v53 }
 0x576   :  { %v1518_v48 = vcombine.low %v1510_v1, %v1517_v45 }
 0x578   :  { %v1525_v50 = vrot.slane %v1518_v48, %v5218_v53 }
 0x57a   :  { %v1527_v56 = vadd.f32 %v1525_v50, %v1355_v55  ;;  %v6723_v55 = vld [vmem:[#allocation24_spill] sm:$0xff] }
 0x57c   :  { %v3983_v23 = vmul.f32 -1.442695, %v1527_v56  ;;  %v1535_v47 = vrot.slane %v1527_v56, 1  ;;  %v1543_v26 = vrot.slane %v1527_v56, 2  ;;  %v1551_v43 = vrot.slane %v1527_v56, 3  ;;  %v6722_v56 = vld [vmem:[#allocation23_spill] sm:$0xff] }
 0x57e   :  { %4095 = vpow2.f32 %v3983_v23  ;;  %v3984_v25 = vmul.f32 -1.442695, %v1535_v47  ;;  %v3985_v46 = vmul.f32 -1.442695, %v1543_v26 }
 0x580   :  { %4097 = vpow2.f32 %v3984_v25 }
 0x581   :  { %4099 = vpow2.f32 %v3985_v46 }
 0x58b   :  { %v4096_v44 = vpop.eup %4095 }
 0x58c   :  { %v1531_v4 = vadd.f32 1.0, %v4096_v44 }
 0x58d   :  { %v4098_v5 = vpop.eup %4097 }
 0x58e   :  { %4101 = vrcp.f32 %v1531_v4  ;;  %v1540_v52 = vadd.f32 1.0, %v4098_v5  ;;  %v4100_v45 = vpop.eup %4099  ;;  %v6726_v4 = vld [vmem:[#allocation27_spill] sm:$0xff]  ;;  %v6727_v5 = vld [vmem:[#allocation28_spill] sm:$0xff] }
 0x58f   :  { %4103 = vtanh.f32 %v1551_v43  ;;  %v1548_v1 = vadd.f32 1.0, %v4100_v45  ;;  %v6721_v43 = vld [vmem:[#allocation22_spill] sm:$0xff] }
 0x590   :  { %4105 = vrcp.f32 %v1540_v52  ;;  %v6728_v52 = vld [vmem:[#allocation29_spill] sm:$0xff]  ;;  %v6729_v45 = vld [vmem:[#allocation30_spill] sm:$0xff] }
 0x591   :  { %4107 = vrcp.f32 %v1548_v1  ;;  %v6733_v1 = vld [vmem:[#allocation34_spill] sm:$0xff] }
 0x59b   :  { %v4102_v48 = vpop.eup %4101 }
 0x59c   :  { %v4104_v59 = vpop.eup %4103  ;;  %v1554_v23 = vmul.f32 %v4102_v48, %v5446_v49  ;;  %v6720_v49 = vld [vmem:[#allocation20_spill] sm:$0xff]  ;;  %v6730_v48 = vld [vmem:[#allocation31_spill] sm:$0xff] }
 0x59d   :  { %v4106_v50 = vpop.eup %4105 }
 0x59e   :  { %v1555_v47 = vmul.f32 %v4106_v50, %v4104_v59  ;;  %v4108_v26 = vpop.eup %4107  ;;  %v6731_v59 = vld [vmem:[#allocation32_spill] sm:$0xff]  ;;  %v6732_v50 = vld [vmem:[#allocation33_spill] sm:$0xff] }
 0x5a0   :  { %v5643_v25 = vadd.f32 %v1555_v47, %v1554_v23  ;;  %v6734_v23 = vld [vmem:[#allocation35_spill] sm:$0xff]  ;;  %v6735_v47 = vld [vmem:[#allocation36_spill] sm:$0xff] }
 0x5a2   :  { %4109 = vtanh.f32 %v5643_v25 }
 0x5af   :  { %v4110_v44 = vpop.eup %4109 }
 0x5b0   :  { %v1558_v46 = vmul.f32 %v4110_v44, %v4108_v26  ;;  %v6736_v26 = vld [vmem:[#allocation37_spill] sm:$0xff]  ;;  %v6737_v44 = vld [vmem:[#allocation38_spill] sm:$0xff] }
 0x5b2   :  { %1626 = vmatmul.mubr.f32.vlgmr.msra.gmra.mxu0 %v1558_v46  ;;  %1697 = vmatmul.mubr.f32.vlgmr.msra.gmra.mxu1 %v1558_v46  ;;  %v6738_v46 = vmov 0.0  }
 0x5b3   :  { %1767 = vmatpush1.msra.mxu0 %v5449_v63  ;;  %1838 = vmatpush1.msra.mxu1 %v5452_v54 }
 0x5b4   :  { %1768 = vmatprep.subr.mxu0 %v5455_v57  ;;  %1839 = vmatprep.subr.mxu1 %v5458_v62 }
 0x5b5   :  { %1769 = vmatpush1.msra.mxu0 %v5461_v58  ;;  %1840 = vmatpush1.msra.mxu1 %v5464_v2 }
 0x5b6   :  { %1770 = vmatprep.subr.mxu0 %v5467_v60  ;;  %1841 = vmatprep.subr.mxu1 %v5470_v51 }
 0x5b7   :  { %1771 = vmatpush1.msra.mxu0 %v5473_v6  ;;  %1842 = vmatpush1.msra.mxu1 %v5476_v7 }
 0x5b8   :  { %1772 = vmatprep.subr.mxu0 %v5479_v8  ;;  %1843 = vmatprep.subr.mxu1 %v5482_v9 }
 0x5b9   :  { %1773 = vmatpush1.msra.mxu0 %v5485_v10  ;;  %1844 = vmatpush1.msra.mxu1 %v5488_v11 }
 0x5ba   :  { %1774 = vmatprep.subr.mxu0 %v5491_v0  ;;  %1845 = vmatprep.subr.mxu1 %v5494_v12 }
 0x5bb   :  { %1775 = vmatpush1.msra.mxu0 %v5497_v13  ;;  %1846 = vmatpush1.msra.mxu1 %v5500_v14 }
 0x5bc   :  { %1776 = vmatprep.subr.mxu0 %v5503_v15  ;;  %1847 = vmatprep.subr.mxu1 %v5506_v16 }
 0x5bd   :  { %1777 = vmatpush1.msra.mxu0 %v5509_v17  ;;  %1848 = vmatpush1.msra.mxu1 %v5512_v18 }
 0x5be   :  { %1778 = vmatprep.subr.mxu0 %v5515_v19  ;;  %1849 = vmatprep.subr.mxu1 %v5518_v20 }
 0x5bf   :  { %1779 = vmatpush1.msra.mxu0 %v5521_v21  ;;  %1850 = vmatpush1.msra.mxu1 %v5524_v22 }
 0x5c0   :  { %1780 = vmatprep.subr.mxu0 %v5527_v24  ;;  %1851 = vmatprep.subr.mxu1 %v5530_v27 }
 0x5c1   :  { %1781 = vmatpush1.msra.mxu0 %v5533_v28  ;;  %1852 = vmatpush1.msra.mxu1 %v5536_v29 }
 0x5c2   :  { %1782 = vmatprep.subr.mxu0 %v5539_v30  ;;  %1853 = vmatprep.subr.mxu1 %v5542_v31 }
 0x5c3   :  { %1783 = vmatpush1.msra.mxu0 %v5545_v32  ;;  %1854 = vmatpush1.msra.mxu1 %v5548_v33 }
 0x5c4   :  { %1784 = vmatprep.subr.mxu0 %v5551_v34  ;;  %1855 = vmatprep.subr.mxu1 %v5554_v35 }
 0x5c5   :  { %1785 = vmatpush1.msra.mxu0 %v5557_v36  ;;  %1856 = vmatpush1.msra.mxu1 %v5560_v37 }
 0x5c6   :  { %1786 = vmatprep.subr.mxu0 %v5563_v38  ;;  %1857 = vmatprep.subr.mxu1 %v5566_v39 }
 0x5c7   :  { %1787 = vmatpush1.msra.mxu0 %v5569_v40  ;;  %1858 = vmatpush1.msra.mxu1 %v5572_v41 }
 0x5c8   :  { %1788 = vmatprep.subr.mxu0 %v5575_v42  ;;  %1859 = vmatprep.subr.mxu1 %v6720_v49 }
 0x5c9   :  { %1789 = vmatpush1.msra.mxu0 %v6721_v43  ;;  %1860 = vmatpush1.msra.mxu1 %v6722_v56 }
 0x5ca   :  { %1790 = vmatprep.subr.mxu0 %v6723_v55  ;;  %1861 = vmatprep.subr.mxu1 %v6724_v3 }
 0x5cb   :  { %1791 = vmatpush1.msra.mxu0 %v6725_v61  ;;  %1862 = vmatpush1.msra.mxu1 %v6726_v4 }
 0x5cc   :  { %1792 = vmatprep.subr.mxu0 %v6727_v5  ;;  %1863 = vmatprep.subr.mxu1 %v6728_v52  ;;  %v6739_v52 = vld [vmem:[#allocation39_spill] sm:$0xff] }
 0x5cd   :  { %1793 = vmatpush1.msra.mxu0 %v6729_v45  ;;  %1864 = vmatpush1.msra.mxu1 %v6730_v48  ;;  %v6740_v48 = vld [vmem:[#allocation21_spill] sm:$0xff] }
 0x5ce   :  { %1794 = vmatprep.subr.mxu0 %v6731_v59  ;;  %1865 = vmatprep.subr.mxu1 %v6732_v50  ;;  %v6741_v59 = vld [vmem:[#allocation19_spill] sm:$0xff] }
 0x5cf   :  { %1795 = vmatpush1.msra.mxu0 %v6733_v1  ;;  %1866 = vmatpush1.msra.mxu1 %v6734_v23 }
 0x5d0   :  { %1796 = vmatprep.subr.mxu0 %v6735_v47  ;;  %1867 = vmatprep.subr.mxu1 %v6736_v26 }
 0x5d1   :  { %1797 = vmatpush1.msra.mxu0 %v6737_v44  ;;  %1830 = vmatprep.mubr.f32.mxu0 %v6738_v46 }
 0x5d2   :  { %1868 = vmatpush1.msra.mxu1 %v6739_v52  ;;  %1901 = vmatprep.mubr.f32.mxu1 %v6738_v46  ;;  %v1560_v52 = vld [vmem:[#allocation2 + $0x5] ss:$8 sm:$0xf] }
 0x5d3   :  { %1971 = vmatprep.subr.mxu0 %v6740_v48  ;;  %2042 = vmatprep.subr.mxu1 %v6741_v59 }
 0x672   :  { %v1627_v50 = vpop.f32.mrf.mxu0  ;;  %v1698_v1 = vpop.f32.mrf.mxu1 }
 0x674   :  { %v1629_v45 = vpop.f32.mrf.mxu0  ;;  %v1700_v23 = vpop.f32.mrf.mxu1 }
 0x675   :  { %v1707_v5 = vcombine.low %v1627_v50, %v1629_v45  ;;  %v1708_v47 = vcombine.low %v1698_v1, %v1700_v23 }
 0x677   :  { %v1715_v26 = vrot.slane %v1707_v5, %v5218_v53  ;;  %v1722_v44 = vrot.slane %v1708_v47, %v5218_v53 }
 0x679   :  { %v1723_v4 = vcombine.low %v1715_v26, %v1722_v44  ;;  %v6745_v26 = vld [vmem:[#allocation24_spill] sm:$0xff]  ;;  %v6746_v44 = vld [vmem:[#allocation25_spill] sm:$0xff] }
 0x67b   :  { %v1730_v61 = vrot.slane %v1723_v4, %v5218_v53 }
 0x67d   :  { %v1732_v3 = vadd.f32 %v1730_v61, %v1560_v52 }
 0x67f   :  { %v3986_v46 = vmul.f32 -1.442695, %v1732_v3  ;;  %v1740_v55 = vrot.slane %v1732_v3, 1  ;;  %v1748_v59 = vrot.slane %v1732_v3, 2  ;;  %v1756_v49 = vrot.slane %v1732_v3, 3 }
 0x681   :  { %4111 = vpow2.f32 %v3986_v46  ;;  %v3987_v48 = vmul.f32 -1.442695, %v1740_v55  ;;  %v3988_v56 = vmul.f32 -1.442695, %v1748_v59  ;;  %v6744_v59 = vld [vmem:[#allocation23_spill] sm:$0xff]  ;;  %v6747_v46 = vld [vmem:[#allocation26_spill] sm:$0xff] }
 0x683   :  { %4113 = vpow2.f32 %v3987_v48 }
 0x684   :  { %4115 = vpow2.f32 %v3988_v56 }
 0x68e   :  { %v4112_v43 = vpop.eup %4111 }
 0x68f   :  { %v1736_v45 = vadd.f32 1.0, %v4112_v43 }
 0x690   :  { %v4114_v50 = vpop.eup %4113 }
 0x691   :  { %4117 = vrcp.f32 %v1736_v45  ;;  %v1745_v5 = vadd.f32 1.0, %v4114_v50  ;;  %v4116_v1 = vpop.eup %4115  ;;  %v6748_v45 = vld [vmem:[#allocation27_spill] sm:$0xff]  ;;  %v6749_v50 = vld [vmem:[#allocation28_spill] sm:$0xff] }
 0x692   :  { %4119 = vtanh.f32 %v1756_v49  ;;  %v1753_v52 = vadd.f32 1.0, %v4116_v1  ;;  %v6743_v49 = vld [vmem:[#allocation22_spill] sm:$0xff] }
 0x693   :  { %4121 = vrcp.f32 %v1745_v5  ;;  %v6750_v5 = vld [vmem:[#allocation29_spill] sm:$0xff]  ;;  %v6751_v1 = vld [vmem:[#allocation30_spill] sm:$0xff] }
 0x694   :  { %4123 = vrcp.f32 %v1753_v52  ;;  %v6755_v52 = vld [vmem:[#allocation34_spill] sm:$0xff] }
 0x69e   :  { %v4118_v4 = vpop.eup %4117 }
 0x69f   :  { %v4120_v23 = vpop.eup %4119  ;;  %v1759_v47 = vmul.f32 %v4118_v4, %v5643_v25  ;;  %v6742_v25 = vld [vmem:[#allocation20_spill] sm:$0xff]  ;;  %v6752_v4 = vld [vmem:[#allocation31_spill] sm:$0xff] }
 0x6a0   :  { %v4122_v61 = vpop.eup %4121 }
 0x6a1   :  { %v1760_v55 = vmul.f32 %v4122_v61, %v4120_v23  ;;  %v4124_v43 = vpop.eup %4123  ;;  %v6753_v23 = vld [vmem:[#allocation32_spill] sm:$0xff]  ;;  %v6754_v61 = vld [vmem:[#allocation33_spill] sm:$0xff] }
 0x6a3   :  { %v5716_v48 = vadd.f32 %v1760_v55, %v1759_v47  ;;  %v6756_v47 = vld [vmem:[#allocation35_spill] sm:$0xff]  ;;  %v6757_v55 = vld [vmem:[#allocation36_spill] sm:$0xff] }
 0x6a5   :  { %4125 = vtanh.f32 %v5716_v48 }
 0x6b2   :  { %v4126_v3 = vpop.eup %4125 }
 0x6b3   :  { %v1763_v56 = vmul.f32 %v4126_v3, %v4124_v43  ;;  %v6758_v43 = vld [vmem:[#allocation37_spill] sm:$0xff]  ;;  %v6759_v3 = vld [vmem:[#allocation38_spill] sm:$0xff] }
 0x6b5   :  { %1831 = vmatmul.mubr.f32.vlgmr.msra.gmra.mxu0 %v1763_v56  ;;  %1902 = vmatmul.mubr.f32.vlgmr.msra.gmra.mxu1 %v1763_v56  ;;  %v6760_v56 = vmov 0.0  }
 0x6b6   :  { %1972 = vmatpush1.msra.mxu0 %v5449_v63  ;;  %2043 = vmatpush1.msra.mxu1 %v5452_v54 }
 0x6b7   :  { %1973 = vmatprep.subr.mxu0 %v5455_v57  ;;  %2044 = vmatprep.subr.mxu1 %v5458_v62 }
 0x6b8   :  { %1974 = vmatpush1.msra.mxu0 %v5461_v58  ;;  %2045 = vmatpush1.msra.mxu1 %v5464_v2 }
 0x6b9   :  { %1975 = vmatprep.subr.mxu0 %v5467_v60  ;;  %2046 = vmatprep.subr.mxu1 %v5470_v51 }
 0x6ba   :  { %1976 = vmatpush1.msra.mxu0 %v5473_v6  ;;  %2047 = vmatpush1.msra.mxu1 %v5476_v7 }
 0x6bb   :  { %1977 = vmatprep.subr.mxu0 %v5479_v8  ;;  %2048 = vmatprep.subr.mxu1 %v5482_v9 }
 0x6bc   :  { %1978 = vmatpush1.msra.mxu0 %v5485_v10  ;;  %2049 = vmatpush1.msra.mxu1 %v5488_v11 }
 0x6bd   :  { %1979 = vmatprep.subr.mxu0 %v5491_v0  ;;  %2050 = vmatprep.subr.mxu1 %v5494_v12 }
 0x6be   :  { %1980 = vmatpush1.msra.mxu0 %v5497_v13  ;;  %2051 = vmatpush1.msra.mxu1 %v5500_v14 }
 0x6bf   :  { %1981 = vmatprep.subr.mxu0 %v5503_v15  ;;  %2052 = vmatprep.subr.mxu1 %v5506_v16 }
 0x6c0   :  { %1982 = vmatpush1.msra.mxu0 %v5509_v17  ;;  %2053 = vmatpush1.msra.mxu1 %v5512_v18 }
 0x6c1   :  { %1983 = vmatprep.subr.mxu0 %v5515_v19  ;;  %2054 = vmatprep.subr.mxu1 %v5518_v20 }
 0x6c2   :  { %1984 = vmatpush1.msra.mxu0 %v5521_v21  ;;  %2055 = vmatpush1.msra.mxu1 %v5524_v22 }
 0x6c3   :  { %1985 = vmatprep.subr.mxu0 %v5527_v24  ;;  %2056 = vmatprep.subr.mxu1 %v5530_v27 }
 0x6c4   :  { %1986 = vmatpush1.msra.mxu0 %v5533_v28  ;;  %2057 = vmatpush1.msra.mxu1 %v5536_v29 }
 0x6c5   :  { %1987 = vmatprep.subr.mxu0 %v5539_v30  ;;  %2058 = vmatprep.subr.mxu1 %v5542_v31 }
 0x6c6   :  { %1988 = vmatpush1.msra.mxu0 %v5545_v32  ;;  %2059 = vmatpush1.msra.mxu1 %v5548_v33 }
 0x6c7   :  { %1989 = vmatprep.subr.mxu0 %v5551_v34  ;;  %2060 = vmatprep.subr.mxu1 %v5554_v35 }
 0x6c8   :  { %1990 = vmatpush1.msra.mxu0 %v5557_v36  ;;  %2061 = vmatpush1.msra.mxu1 %v5560_v37 }
 0x6c9   :  { %1991 = vmatprep.subr.mxu0 %v5563_v38  ;;  %2062 = vmatprep.subr.mxu1 %v5566_v39 }
 0x6ca   :  { %1992 = vmatpush1.msra.mxu0 %v5569_v40  ;;  %2063 = vmatpush1.msra.mxu1 %v5572_v41 }
 0x6cb   :  { %1993 = vmatprep.subr.mxu0 %v5575_v42  ;;  %2064 = vmatprep.subr.mxu1 %v6742_v25 }
 0x6cc   :  { %1994 = vmatpush1.msra.mxu0 %v6743_v49  ;;  %2065 = vmatpush1.msra.mxu1 %v6744_v59 }
 0x6cd   :  { %1995 = vmatprep.subr.mxu0 %v6745_v26  ;;  %2066 = vmatprep.subr.mxu1 %v6746_v44 }
 0x6ce   :  { %1996 = vmatpush1.msra.mxu0 %v6747_v46  ;;  %2067 = vmatpush1.msra.mxu1 %v6748_v45 }
 0x6cf   :  { %1997 = vmatprep.subr.mxu0 %v6749_v50  ;;  %2068 = vmatprep.subr.mxu1 %v6750_v5  ;;  %v6761_v5 = vld [vmem:[#allocation39_spill] sm:$0xff] }
 0x6d0   :  { %1998 = vmatpush1.msra.mxu0 %v6751_v1  ;;  %2069 = vmatpush1.msra.mxu1 %v6752_v4  ;;  %v6762_v4 = vld [vmem:[#allocation21_spill] sm:$0xff] }
 0x6d1   :  { %1999 = vmatprep.subr.mxu0 %v6753_v23  ;;  %2070 = vmatprep.subr.mxu1 %v6754_v61  ;;  %v6763_v23 = vld [vmem:[#allocation19_spill] sm:$0xff] }
 0x6d2   :  { %2000 = vmatpush1.msra.mxu0 %v6755_v52  ;;  %2071 = vmatpush1.msra.mxu1 %v6756_v47 }
 0x6d3   :  { %2001 = vmatprep.subr.mxu0 %v6757_v55  ;;  %2072 = vmatprep.subr.mxu1 %v6758_v43 }
 0x6d4   :  { %2002 = vmatpush1.msra.mxu0 %v6759_v3  ;;  %2035 = vmatprep.mubr.f32.mxu0 %v6760_v56 }
 0x6d5   :  { %2073 = vmatpush1.msra.mxu1 %v6761_v5  ;;  %2106 = vmatprep.mubr.f32.mxu1 %v6760_v56  ;;  %v1765_v5 = vld [vmem:[#allocation2 + $0x6] ss:$8 sm:$0xf] }
 0x6d6   :  { %2175 = vmatprep.subr.mxu0 %v6762_v4  ;;  %2246 = vmatprep.subr.mxu1 %v6763_v23 }
 0x775   :  { %v1832_v61 = vpop.f32.mrf.mxu0  ;;  %v1903_v52 = vpop.f32.mrf.mxu1 }
 0x777   :  { %v1834_v1 = vpop.f32.mrf.mxu0  ;;  %v1905_v47 = vpop.f32.mrf.mxu1 }
 0x778   :  { %v1912_v50 = vcombine.low %v1832_v61, %v1834_v1  ;;  %v1913_v55 = vcombine.low %v1903_v52, %v1905_v47 }
 0x77a   :  { %v1920_v43 = vrot.slane %v1912_v50, %v5218_v53  ;;  %v1927_v3 = vrot.slane %v1913_v55, %v5218_v53 }
 0x77c   :  { %v1928_v45 = vcombine.low %v1920_v43, %v1927_v3  ;;  %v6767_v43 = vld [vmem:[#allocation24_spill] sm:$0xff]  ;;  %v6768_v3 = vld [vmem:[#allocation25_spill] sm:$0xff] }
 0x77e   :  { %v1935_v46 = vrot.slane %v1928_v45, %v5218_v53 }
 0x780   :  { %v1937_v44 = vadd.f32 %v1935_v46, %v1765_v5 }
 0x782   :  { %v3989_v56 = vmul.f32 -1.442695, %v1937_v44  ;;  %v1945_v26 = vrot.slane %v1937_v44, 1  ;;  %v1953_v23 = vrot.slane %v1937_v44, 2  ;;  %v1961_v25 = vrot.slane %v1937_v44, 3 }
 0x784   :  { %4127 = vpow2.f32 %v3989_v56  ;;  %v3990_v4 = vmul.f32 -1.442695, %v1945_v26  ;;  %v3991_v59 = vmul.f32 -1.442695, %v1953_v23  ;;  %v6766_v23 = vld [vmem:[#allocation23_spill] sm:$0xff]  ;;  %v6769_v56 = vld [vmem:[#allocation26_spill] sm:$0xff] }
 0x786   :  { %4129 = vpow2.f32 %v3990_v4 }
 0x787   :  { %4131 = vpow2.f32 %v3991_v59 }
 0x791   :  { %v4128_v49 = vpop.eup %4127 }
 0x792   :  { %v1941_v1 = vadd.f32 1.0, %v4128_v49 }
 0x793   :  { %v4130_v61 = vpop.eup %4129 }
 0x794   :  { %4133 = vrcp.f32 %v1941_v1  ;;  %v1950_v50 = vadd.f32 1.0, %v4130_v61  ;;  %v4132_v52 = vpop.eup %4131  ;;  %v6770_v1 = vld [vmem:[#allocation27_spill] sm:$0xff]  ;;  %v6771_v61 = vld [vmem:[#allocation28_spill] sm:$0xff] }
 0x795   :  { %4135 = vtanh.f32 %v1961_v25  ;;  %v1958_v5 = vadd.f32 1.0, %v4132_v52  ;;  %v6765_v25 = vld [vmem:[#allocation22_spill] sm:$0xff] }
 0x796   :  { %4137 = vrcp.f32 %v1950_v50  ;;  %v6772_v50 = vld [vmem:[#allocation29_spill] sm:$0xff]  ;;  %v6773_v52 = vld [vmem:[#allocation30_spill] sm:$0xff] }
 0x797   :  { %4139 = vrcp.f32 %v1958_v5  ;;  %v6777_v5 = vld [vmem:[#allocation34_spill] sm:$0xff] }
 0x7a1   :  { %v4134_v45 = vpop.eup %4133 }
 0x7a2   :  { %v4136_v47 = vpop.eup %4135  ;;  %v1964_v55 = vmul.f32 %v4134_v45, %v5716_v48  ;;  %v6764_v48 = vld [vmem:[#allocation20_spill] sm:$0xff]  ;;  %v6774_v45 = vld [vmem:[#allocation31_spill] sm:$0xff] }
 0x7a3   :  { %v4138_v46 = vpop.eup %4137 }
 0x7a4   :  { %v1965_v26 = vmul.f32 %v4138_v46, %v4136_v47  ;;  %v4140_v49 = vpop.eup %4139  ;;  %v6775_v47 = vld [vmem:[#allocation32_spill] sm:$0xff]  ;;  %v6776_v46 = vld [vmem:[#allocation33_spill] sm:$0xff] }
 0x7a6   :  { %v5789_v4 = vadd.f32 %v1965_v26, %v1964_v55  ;;  %v6778_v55 = vld [vmem:[#allocation35_spill] sm:$0xff]  ;;  %v6779_v26 = vld [vmem:[#allocation36_spill] sm:$0xff] }
 0x7a8   :  { %4141 = vtanh.f32 %v5789_v4 }
 0x7b5   :  { %v4142_v44 = vpop.eup %4141 }
 0x7b6   :  { %v1968_v59 = vmul.f32 %v4142_v44, %v4140_v49  ;;  %v6780_v49 = vld [vmem:[#allocation37_spill] sm:$0xff]  ;;  %v6781_v44 = vld [vmem:[#allocation38_spill] sm:$0xff] }
 0x7b8   :  { %2036 = vmatmul.mubr.f32.vlgmr.msra.gmra.mxu0 %v1968_v59  ;;  %2107 = vmatmul.mubr.f32.vlgmr.msra.gmra.mxu1 %v1968_v59  ;;  %v6782_v59 = vmov 0.0  }
 0x7b9   :  { %2176 = vmatpush1.msra.mxu0 %v5449_v63  ;;  %2247 = vmatpush1.msra.mxu1 %v5452_v54 }
 0x7ba   :  { %2177 = vmatprep.subr.mxu0 %v5455_v57  ;;  %2248 = vmatprep.subr.mxu1 %v5458_v62 }
 0x7bb   :  { %2178 = vmatpush1.msra.mxu0 %v5461_v58  ;;  %2249 = vmatpush1.msra.mxu1 %v5464_v2 }
 0x7bc   :  { %2179 = vmatprep.subr.mxu0 %v5467_v60  ;;  %2250 = vmatprep.subr.mxu1 %v5470_v51 }
 0x7bd   :  { %2180 = vmatpush1.msra.mxu0 %v5473_v6  ;;  %2251 = vmatpush1.msra.mxu1 %v5476_v7 }
 0x7be   :  { %2181 = vmatprep.subr.mxu0 %v5479_v8  ;;  %2252 = vmatprep.subr.mxu1 %v5482_v9 }
 0x7bf   :  { %2182 = vmatpush1.msra.mxu0 %v5485_v10  ;;  %2253 = vmatpush1.msra.mxu1 %v5488_v11 }
 0x7c0   :  { %2183 = vmatprep.subr.mxu0 %v5491_v0  ;;  %2254 = vmatprep.subr.mxu1 %v5494_v12 }
 0x7c1   :  { %2184 = vmatpush1.msra.mxu0 %v5497_v13  ;;  %2255 = vmatpush1.msra.mxu1 %v5500_v14 }
 0x7c2   :  { %2185 = vmatprep.subr.mxu0 %v5503_v15  ;;  %2256 = vmatprep.subr.mxu1 %v5506_v16 }
 0x7c3   :  { %2186 = vmatpush1.msra.mxu0 %v5509_v17  ;;  %2257 = vmatpush1.msra.mxu1 %v5512_v18 }
 0x7c4   :  { %2187 = vmatprep.subr.mxu0 %v5515_v19  ;;  %2258 = vmatprep.subr.mxu1 %v5518_v20 }
 0x7c5   :  { %2188 = vmatpush1.msra.mxu0 %v5521_v21  ;;  %2259 = vmatpush1.msra.mxu1 %v5524_v22 }
 0x7c6   :  { %2189 = vmatprep.subr.mxu0 %v5527_v24  ;;  %2260 = vmatprep.subr.mxu1 %v5530_v27 }
 0x7c7   :  { %2190 = vmatpush1.msra.mxu0 %v5533_v28  ;;  %2261 = vmatpush1.msra.mxu1 %v5536_v29 }
 0x7c8   :  { %2191 = vmatprep.subr.mxu0 %v5539_v30  ;;  %2262 = vmatprep.subr.mxu1 %v5542_v31 }
 0x7c9   :  { %2192 = vmatpush1.msra.mxu0 %v5545_v32  ;;  %2263 = vmatpush1.msra.mxu1 %v5548_v33 }
 0x7ca   :  { %2193 = vmatprep.subr.mxu0 %v5551_v34  ;;  %2264 = vmatprep.subr.mxu1 %v5554_v35 }
 0x7cb   :  { %2194 = vmatpush1.msra.mxu0 %v5557_v36  ;;  %2265 = vmatpush1.msra.mxu1 %v5560_v37 }
 0x7cc   :  { %2195 = vmatprep.subr.mxu0 %v5563_v38  ;;  %2266 = vmatprep.subr.mxu1 %v5566_v39 }
 0x7cd   :  { %2196 = vmatpush1.msra.mxu0 %v5569_v40  ;;  %2267 = vmatpush1.msra.mxu1 %v5572_v41 }
 0x7ce   :  { %2197 = vmatprep.subr.mxu0 %v5575_v42  ;;  %2268 = vmatprep.subr.mxu1 %v6764_v48 }
 0x7cf   :  { %2198 = vmatpush1.msra.mxu0 %v6765_v25  ;;  %2269 = vmatpush1.msra.mxu1 %v6766_v23 }
 0x7d0   :  { %2199 = vmatprep.subr.mxu0 %v6767_v43  ;;  %2270 = vmatprep.subr.mxu1 %v6768_v3 }
 0x7d1   :  { %2200 = vmatpush1.msra.mxu0 %v6769_v56  ;;  %2271 = vmatpush1.msra.mxu1 %v6770_v1 }
 0x7d2   :  { %2201 = vmatprep.subr.mxu0 %v6771_v61  ;;  %2272 = vmatprep.subr.mxu1 %v6772_v50  ;;  %v6783_v50 = vld [vmem:[#allocation39_spill] sm:$0xff] }
 0x7d3   :  { %2202 = vmatpush1.msra.mxu0 %v6773_v52  ;;  %2273 = vmatpush1.msra.mxu1 %v6774_v45  ;;  %v6784_v45 = vld [vmem:[#allocation21_spill] sm:$0xff] }
 0x7d4   :  { %2203 = vmatprep.subr.mxu0 %v6775_v47  ;;  %2274 = vmatprep.subr.mxu1 %v6776_v46  ;;  %v6785_v47 = vld [vmem:[#allocation19_spill] sm:$0xff] }
 0x7d5   :  { %2204 = vmatpush1.msra.mxu0 %v6777_v5  ;;  %2275 = vmatpush1.msra.mxu1 %v6778_v55 }
 0x7d6   :  { %2205 = vmatprep.subr.mxu0 %v6779_v26  ;;  %2276 = vmatprep.subr.mxu1 %v6780_v49 }
 0x7d7   :  { %2206 = vmatpush1.msra.mxu0 %v6781_v44  ;;  %2239 = vmatprep.mubr.f32.mxu0 %v6782_v59 }
 0x7d8   :  { %2277 = vmatpush1.msra.mxu1 %v6783_v50  ;;  %2310 = vmatprep.mubr.f32.mxu1 %v6782_v59  ;;  %v1970_v50 = vld [vmem:[#allocation2 + $0x7] ss:$8 sm:$0xf] }
 0x7d9   :  { %2381 = vmatprep.subr.mxu0 %v6784_v45  ;;  %2452 = vmatprep.subr.mxu1 %v6785_v47 }
 0x878   :  { %v2037_v46 = vpop.f32.mrf.mxu0  ;;  %v2108_v5 = vpop.f32.mrf.mxu1 }
 0x87a   :  { %v2039_v52 = vpop.f32.mrf.mxu0  ;;  %v2110_v55 = vpop.f32.mrf.mxu1 }
 0x87b   :  { %v2117_v61 = vcombine.low %v2037_v46, %v2039_v52  ;;  %v2118_v26 = vcombine.low %v2108_v5, %v2110_v55 }
 0x87d   :  { %v2125_v49 = vrot.slane %v2117_v61, %v5218_v53  ;;  %v2132_v44 = vrot.slane %v2118_v26, %v5218_v53 }
 0x87f   :  { %v2133_v1 = vcombine.low %v2125_v49, %v2132_v44 }
 0x881   :  { %v2140_v56 = vrot.slane %v2133_v1, %v5218_v53 }
 0x883   :  { %v2142_v3 = vadd.f32 %v2140_v56, %v1970_v50 }
 0x885   :  { %v3992_v59 = vmul.f32 -1.442695, %v2142_v3  ;;  %v2150_v43 = vrot.slane %v2142_v3, 1  ;;  %v2158_v47 = vrot.slane %v2142_v3, 2  ;;  %v2166_v48 = vrot.slane %v2142_v3, 3 }
 0x887   :  { %4143 = vpow2.f32 %v3992_v59  ;;  %v3993_v45 = vmul.f32 -1.442695, %v2150_v43  ;;  %v3994_v23 = vmul.f32 -1.442695, %v2158_v47 }
 0x889   :  { %4145 = vpow2.f32 %v3993_v45 }
 0x88a   :  { %4147 = vpow2.f32 %v3994_v23 }
 0x894   :  { %v4144_v25 = vpop.eup %4143 }
 0x895   :  { %v2146_v52 = vadd.f32 1.0, %v4144_v25 }
 0x896   :  { %v4146_v46 = vpop.eup %4145 }
 0x897   :  { %4149 = vrcp.f32 %v2146_v52  ;;  %v2155_v61 = vadd.f32 1.0, %v4146_v46  ;;  %v4148_v5 = vpop.eup %4147 }
 0x898   :  { %4151 = vtanh.f32 %v2166_v48  ;;  %v2163_v50 = vadd.f32 1.0, %v4148_v5 }
 0x899   :  { %4153 = vrcp.f32 %v2155_v61 }
 0x89a   :  { %4155 = vrcp.f32 %v2163_v50  ;;  %v5945_v50 = vld [vmem:[#allocation11 + $0x1f0] sm:$0xff] }
 0x8a4   :  { %v4150_v1 = vpop.eup %4149 }
 0x8a5   :  { %v4152_v55 = vpop.eup %4151  ;;  %v2169_v26 = vmul.f32 %v4150_v1, %v5789_v4 }
 0x8a6   :  { %v4154_v56 = vpop.eup %4153 }
 0x8a7   :  { %v2170_v43 = vmul.f32 %v4154_v56, %v4152_v55  ;;  %v4156_v25 = vpop.eup %4155  ;;  %v5942_v56 = vld [vmem:[#allocation11 + $0x1e0] sm:$0xff] }
 0x8a9   :  { %v5862_v49 = vadd.f32 %v2170_v43, %v2169_v26  ;;  %v5948_v26 = vld [vmem:[#allocation11 + $0x1c8] sm:$0xff]  ;;  %v5951_v43 = vld [vmem:[#allocation11 + $0x1d8] sm:$0xff] }
 0x8ab   :  { %4157 = vtanh.f32 %v5862_v49 }
 0x8b8   :  { %v4158_v3 = vpop.eup %4157 }
 0x8b9   :  { %v2173_v23 = vmul.f32 %v4158_v3, %v4156_v25  ;;  %v5957_v25 = vld [vmem:[#allocation11 + $0x1d0] sm:$0xff]  ;;  %v5960_v3 = vld [vmem:[#allocation11 + $0x1a8] sm:$0xff] }
 0x8bb   :  { %2240 = vmatmul.mubr.f32.vlgmr.msra.gmra.mxu0 %v2173_v23  ;;  %2311 = vmatmul.mubr.f32.vlgmr.msra.gmra.mxu1 %v2173_v23  ;;  %v5963_v23 = vld [vmem:[#allocation11 + $0x1b8] sm:$0xff] }
 0x8bc   :  { %2382 = vmatpush1.msra.mxu0 %v5449_v63  ;;  %2453 = vmatpush1.msra.mxu1 %v5452_v54  ;;  %v6786_v63 = vld [vmem:[#allocation20_spill] sm:$0xff]  ;;  %v6787_v54 = vld [vmem:[#allocation22_spill] sm:$0xff] }
 0x8bd   :  { %2383 = vmatprep.subr.mxu0 %v5455_v57  ;;  %2454 = vmatprep.subr.mxu1 %v5458_v62  ;;  %v6788_v57 = vld [vmem:[#allocation23_spill] sm:$0xff]  ;;  %v6789_v62 = vld [vmem:[#allocation24_spill] sm:$0xff] }
 0x8be   :  { %2384 = vmatpush1.msra.mxu0 %v5461_v58  ;;  %2455 = vmatpush1.msra.mxu1 %v5464_v2  ;;  %v6790_v58 = vld [vmem:[#allocation25_spill] sm:$0xff]  ;;  %v6791_v2 = vld [vmem:[#allocation26_spill] sm:$0xff] }
 0x8bf   :  { %2385 = vmatprep.subr.mxu0 %v5467_v60  ;;  %2456 = vmatprep.subr.mxu1 %v5470_v51  ;;  %v6792_v60 = vld [vmem:[#allocation27_spill] sm:$0xff]  ;;  %v6793_v51 = vld [vmem:[#allocation28_spill] sm:$0xff] }
 0x8c0   :  { %2386 = vmatpush1.msra.mxu0 %v5473_v6  ;;  %2457 = vmatpush1.msra.mxu1 %v5476_v7  ;;  %v6794_v6 = vld [vmem:[#allocation29_spill] sm:$0xff]  ;;  %v6795_v7 = vld [vmem:[#allocation30_spill] sm:$0xff] }
 0x8c1   :  { %2387 = vmatprep.subr.mxu0 %v5479_v8  ;;  %2458 = vmatprep.subr.mxu1 %v5482_v9  ;;  %v6796_v8 = vld [vmem:[#allocation31_spill] sm:$0xff]  ;;  %v6797_v9 = vld [vmem:[#allocation32_spill] sm:$0xff] }
 0x8c2   :  { %2388 = vmatpush1.msra.mxu0 %v5485_v10  ;;  %2459 = vmatpush1.msra.mxu1 %v5488_v11  ;;  %v6798_v10 = vld [vmem:[#allocation33_spill] sm:$0xff]  ;;  %v6799_v11 = vld [vmem:[#allocation34_spill] sm:$0xff] }
 0x8c3   :  { %2389 = vmatprep.subr.mxu0 %v5491_v0  ;;  %2460 = vmatprep.subr.mxu1 %v5494_v12  ;;  %v6800_v0 = vld [vmem:[#allocation35_spill] sm:$0xff]  ;;  %v6801_v12 = vld [vmem:[#allocation36_spill] sm:$0xff] }
 0x8c4   :  { %2390 = vmatpush1.msra.mxu0 %v5497_v13  ;;  %2461 = vmatpush1.msra.mxu1 %v5500_v14  ;;  %v6802_v13 = vld [vmem:[#allocation37_spill] sm:$0xff]  ;;  %v6803_v14 = vld [vmem:[#allocation38_spill] sm:$0xff] }
 0x8c5   :  { %2391 = vmatprep.subr.mxu0 %v5503_v15  ;;  %2462 = vmatprep.subr.mxu1 %v5506_v16  ;;  %v6804_v15 = vmov 0.0   ;;  %v6805_v16 = vld [vmem:[#allocation39_spill] sm:$0xff] }
 0x8c6   :  { %2392 = vmatpush1.msra.mxu0 %v5509_v17  ;;  %2463 = vmatpush1.msra.mxu1 %v5512_v18  ;;  %v5929_v17 = vld [vmem:[#allocation11 + $0x1e8] sm:$0xff]  ;;  %v5932_v18 = vld [vmem:[#allocation11 + $0x1f8] sm:$0xff] }
 0x8c7   :  { %2393 = vmatprep.subr.mxu0 %v5515_v19  ;;  %2464 = vmatprep.subr.mxu1 %v5518_v20  ;;  %6806 = vst [vmem:[#allocation40_spill] sm:$0xff] %v5929_v17  ;;  %6807 = vst [vmem:[#allocation21_spill] sm:$0xff] %v5932_v18 }
 0x8c8   :  { %2394 = vmatpush1.msra.mxu0 %v5521_v21  ;;  %2465 = vmatpush1.msra.mxu1 %v5524_v22 }
 0x8c9   :  { %2395 = vmatprep.subr.mxu0 %v5527_v24  ;;  %2466 = vmatprep.subr.mxu1 %v5530_v27 }
 0x8ca   :  { %2396 = vmatpush1.msra.mxu0 %v5533_v28  ;;  %2467 = vmatpush1.msra.mxu1 %v5536_v29 }
 0x8cb   :  { %2397 = vmatprep.subr.mxu0 %v5539_v30  ;;  %2468 = vmatprep.subr.mxu1 %v5542_v31 }
 0x8cc   :  { %2398 = vmatpush1.msra.mxu0 %v5545_v32  ;;  %2469 = vmatpush1.msra.mxu1 %v5548_v33  ;;  %v2174_v32 = vld [vmem:[#allocation3] ss:$8 sm:$0xf] }
 0x8cd   :  { %2399 = vmatprep.subr.mxu0 %v5551_v34  ;;  %2470 = vmatprep.subr.mxu1 %v5554_v35 }
 0x8ce   :  { %2400 = vmatpush1.msra.mxu0 %v5557_v36  ;;  %2471 = vmatpush1.msra.mxu1 %v5560_v37 }
 0x8cf   :  { %2401 = vmatprep.subr.mxu0 %v5563_v38  ;;  %2472 = vmatprep.subr.mxu1 %v5566_v39 }
 0x8d0   :  { %2402 = vmatpush1.msra.mxu0 %v5569_v40  ;;  %2473 = vmatpush1.msra.mxu1 %v5572_v41 }
 0x8d1   :  { %2403 = vmatprep.subr.mxu0 %v5575_v42  ;;  %2474 = vmatprep.subr.mxu1 %v6786_v63  ;;  %v5966_v63 = vld [vmem:[#allocation11 + $0x1a0] sm:$0xff] }
 0x8d2   :  { %2404 = vmatpush1.msra.mxu0 %v6787_v54  ;;  %2475 = vmatpush1.msra.mxu1 %v6788_v57  ;;  %v5969_v54 = vld [vmem:[#allocation11 + $0x1b0] sm:$0xff]  ;;  %v5972_v57 = vld [vmem:[#allocation11 + $0x188] sm:$0xff] }
 0x8d3   :  { %2405 = vmatprep.subr.mxu0 %v6789_v62  ;;  %2476 = vmatprep.subr.mxu1 %v6790_v58  ;;  %v5975_v62 = vld [vmem:[#allocation11 + $0x198] sm:$0xff]  ;;  %v5978_v58 = vld [vmem:[#allocation11 + $0x180] sm:$0xff] }
 0x8d4   :  { %2406 = vmatpush1.msra.mxu0 %v6791_v2  ;;  %2477 = vmatpush1.msra.mxu1 %v6792_v60  ;;  %v5981_v2 = vld [vmem:[#allocation11 + $0x190] sm:$0xff]  ;;  %v5984_v60 = vld [vmem:[#allocation11 + $0x168] sm:$0xff] }
 0x8d5   :  { %2407 = vmatprep.subr.mxu0 %v6793_v51  ;;  %2478 = vmatprep.subr.mxu1 %v6794_v6  ;;  %v5987_v51 = vld [vmem:[#allocation11 + $0x178] sm:$0xff]  ;;  %v5990_v6 = vld [vmem:[#allocation11 + $0x160] sm:$0xff] }
 0x8d6   :  { %2408 = vmatpush1.msra.mxu0 %v6795_v7  ;;  %2479 = vmatpush1.msra.mxu1 %v6796_v8  ;;  %v5993_v7 = vld [vmem:[#allocation11 + $0x170] sm:$0xff]  ;;  %v5996_v8 = vld [vmem:[#allocation11 + $0x148] sm:$0xff] }
 0x8d7   :  { %2409 = vmatprep.subr.mxu0 %v6797_v9  ;;  %2480 = vmatprep.subr.mxu1 %v6798_v10  ;;  %v5999_v9 = vld [vmem:[#allocation11 + $0x158] sm:$0xff]  ;;  %v6002_v10 = vld [vmem:[#allocation11 + $0x140] sm:$0xff] }
 0x8d8   :  { %2410 = vmatpush1.msra.mxu0 %v6799_v11  ;;  %2481 = vmatpush1.msra.mxu1 %v6800_v0  ;;  %v6005_v11 = vld [vmem:[#allocation11 + $0x150] sm:$0xff]  ;;  %v6008_v0 = vld [vmem:[#allocation11 + $0x128] sm:$0xff] }
 0x8d9   :  { %2411 = vmatprep.subr.mxu0 %v6801_v12  ;;  %2482 = vmatprep.subr.mxu1 %v6802_v13  ;;  %v6011_v12 = vld [vmem:[#allocation11 + $0x138] sm:$0xff]  ;;  %v6014_v13 = vld [vmem:[#allocation11 + $0x120] sm:$0xff] }
 0x8da   :  { %2412 = vmatpush1.msra.mxu0 %v6803_v14  ;;  %2445 = vmatprep.mubr.f32.mxu0 %v6804_v15  ;;  %v6017_v14 = vld [vmem:[#allocation11 + $0x130] sm:$0xff] }
 0x8db   :  { %2483 = vmatpush1.msra.mxu1 %v6805_v16  ;;  %2516 = vmatprep.mubr.f32.mxu1 %v6804_v15  ;;  %v6020_v16 = vld [vmem:[#allocation11 + $0x108] sm:$0xff] }
 0x8dc   :  { %2587 = vmatprep.subr.mxu0 %v5929_v17  ;;  %2658 = vmatprep.subr.mxu1 %v5932_v18 }
 0x97b   :  { %v2241_v19 = vpop.f32.mrf.mxu0  ;;  %v2312_v20 = vpop.f32.mrf.mxu1 }
 0x97d   :  { %v2243_v21 = vpop.f32.mrf.mxu0  ;;  %v2314_v22 = vpop.f32.mrf.mxu1 }
 0x97e   :  { %v2321_v24 = vcombine.low %v2241_v19, %v2243_v21  ;;  %v2322_v27 = vcombine.low %v2312_v20, %v2314_v22  ;;  %v6023_v19 = vld [vmem:[#allocation11 + $0x118] sm:$0xff]  ;;  %v6026_v20 = vld [vmem:[#allocation11 + $0x100] sm:$0xff]  ;;  %v6029_v21 = vld [vmem:[#allocation11 + $0x110] sm:$0xff] }
 0x97f   :  { %v6032_v22 = vld [vmem:[#allocation11 + $0xe8] sm:$0xff] }
 0x980   :  { %v2329_v28 = vrot.slane %v2321_v24, %v5218_v53  ;;  %v2336_v29 = vrot.slane %v2322_v27, %v5218_v53  ;;  %v6035_v24 = vld [vmem:[#allocation11 + $0xf8] sm:$0xff]  ;;  %v6038_v27 = vld [vmem:[#allocation11 + $0xe0] sm:$0xff] }
 0x982   :  { %v2337_v30 = vcombine.low %v2329_v28, %v2336_v29  ;;  %v6041_v28 = vld [vmem:[#allocation11 + $0xf0] sm:$0xff]  ;;  %v6044_v29 = vld [vmem:[#allocation11 + $0xc8] sm:$0xff] }
 0x984   :  { %v2344_v31 = vrot.slane %v2337_v30, %v5218_v53  ;;  %v6047_v30 = vld [vmem:[#allocation11 + $0xd8] sm:$0xff] }
 0x986   :  { %v2346_v33 = vadd.f32 %v2344_v31, %v2174_v32  ;;  %v6050_v31 = vld [vmem:[#allocation11 + $0xc0] sm:$0xff]  ;;  %v6053_v32 = vld [vmem:[#allocation11 + $0xd0] sm:$0xff] }
 0x988   :  { %v3995_v34 = vmul.f32 -1.442695, %v2346_v33  ;;  %v2354_v35 = vrot.slane %v2346_v33, 1  ;;  %v2362_v37 = vrot.slane %v2346_v33, 2  ;;  %v2370_v40 = vrot.slane %v2346_v33, 3  ;;  %v6056_v33 = vld [vmem:[#allocation11 + $0xa8] sm:$0xff] }
 0x98a   :  { %4159 = vpow2.f32 %v3995_v34  ;;  %v3996_v36 = vmul.f32 -1.442695, %v2354_v35  ;;  %v3997_v38 = vmul.f32 -1.442695, %v2362_v37  ;;  %v6059_v34 = vld [vmem:[#allocation11 + $0xb8] sm:$0xff]  ;;  %v6062_v35 = vld [vmem:[#allocation11 + $0xa0] sm:$0xff] }
 0x98b   :  { %v6068_v37 = vld [vmem:[#allocation11 + $0x88] sm:$0xff] }
 0x98c   :  { %4161 = vpow2.f32 %v3996_v36  ;;  %v6065_v36 = vld [vmem:[#allocation11 + $0xb0] sm:$0xff] }
 0x98d   :  { %4163 = vpow2.f32 %v3997_v38  ;;  %v6071_v38 = vld [vmem:[#allocation11 + $0x98] sm:$0xff] }
 0x98e   :  { %6808 = vst [vmem:[#allocation19_spill] sm:$0xff] %v6071_v38 }
 0x997   :  { %v4160_v39 = vpop.eup %4159 }
 0x998   :  { %v2350_v41 = vadd.f32 1.0, %v4160_v39  ;;  %v6074_v39 = vld [vmem:[#allocation11 + $0x80] sm:$0xff] }
 0x999   :  { %v4162_v42 = vpop.eup %4161  ;;  %6809 = vst [vmem:[#allocation20_spill] sm:$0xff] %v6074_v39 }
 0x99a   :  { %4165 = vrcp.f32 %v2350_v41  ;;  %v2359_v4 = vadd.f32 1.0, %v4162_v42  ;;  %v4164_v48 = vpop.eup %4163  ;;  %v6080_v41 = vld [vmem:[#allocation11 + $0x68] sm:$0xff]  ;;  %v6083_v42 = vld [vmem:[#allocation11 + $0x78] sm:$0xff] }
 0x99b   :  { %4167 = vtanh.f32 %v2370_v40  ;;  %v2367_v47 = vadd.f32 1.0, %v4164_v48  ;;  %v6077_v40 = vld [vmem:[#allocation11 + $0x90] sm:$0xff]  ;;  %6811 = vst [vmem:[#allocation23_spill] sm:$0xff] %v6080_v41  ;;  %6812 = vst [vmem:[#allocation24_spill] sm:$0xff] %v6083_v42 }
 0x99c   :  { %4169 = vrcp.f32 %v2359_v4  ;;  %6810 = vst [vmem:[#allocation22_spill] sm:$0xff] %v6077_v40  ;;  %v6086_v4 = vld [vmem:[#allocation11 + $0x60] sm:$0xff]  ;;  %v6089_v48 = vld [vmem:[#allocation11 + $0x70] sm:$0xff] }
 0x99d   :  { %4171 = vrcp.f32 %v2367_v47  ;;  %6813 = vst [vmem:[#allocation25_spill] sm:$0xff] %v6086_v4  ;;  %6814 = vst [vmem:[#allocation26_spill] sm:$0xff] %v6089_v48  ;;  %v6101_v47 = vld [vmem:[#allocation11 + $0x50] sm:$0xff] }
 0x99e   :  { %6818 = vst [vmem:[#allocation30_spill] sm:$0xff] %v6101_v47 }
 0x9a7   :  { %v4166_v44 = vpop.eup %4165 }
 0x9a8   :  { %v4168_v59 = vpop.eup %4167  ;;  %v2373_v52 = vmul.f32 %v4166_v44, %v5862_v49  ;;  %v5954_v49 = vld [vmem:[#allocation11 + $0x1c0] sm:$0xff]  ;;  %v6092_v44 = vld [vmem:[#allocation11 + $0x48] sm:$0xff] }
 0x9a9   :  { %v4170_v45 = vpop.eup %4169  ;;  %6815 = vst [vmem:[#allocation27_spill] sm:$0xff] %v6092_v44 }
 0x9aa   :  { %v2374_v46 = vmul.f32 %v4170_v45, %v4168_v59  ;;  %v4172_v5 = vpop.eup %4171  ;;  %v6095_v59 = vld [vmem:[#allocation11 + $0x58] sm:$0xff]  ;;  %v6098_v45 = vld [vmem:[#allocation11 + $0x40] sm:$0xff] }
 0x9ab   :  { %6816 = vst [vmem:[#allocation28_spill] sm:$0xff] %v6095_v59  ;;  %6817 = vst [vmem:[#allocation29_spill] sm:$0xff] %v6098_v45 }
 0x9ac   :  { %v5939_v61 = vadd.f32 %v2374_v46, %v2373_v52  ;;  %v6104_v52 = vld [vmem:[#allocation11 + $0x28] sm:$0xff]  ;;  %v6107_v46 = vld [vmem:[#allocation11 + $0x38] sm:$0xff] }
 0x9ad   :  { %6819 = vst [vmem:[#allocation31_spill] sm:$0xff] %v6104_v52  ;;  %6820 = vst [vmem:[#allocation32_spill] sm:$0xff] %v6107_v46 }
 0x9ae   :  { %4173 = vtanh.f32 %v5939_v61 }
 0x9bb   :  { %v4174_v1 = vpop.eup %4173 }
 0x9bc   :  { %v2377_v55 = vmul.f32 %v4174_v1, %v4172_v5  ;;  %v6110_v5 = vld [vmem:[#allocation11 + $0x20] sm:$0xff]  ;;  %v6113_v1 = vld [vmem:[#allocation11 + $0x30] sm:$0xff] }
 0x9bd   :  { %6821 = vst [vmem:[#allocation33_spill] sm:$0xff] %v6110_v5  ;;  %6822 = vst [vmem:[#allocation34_spill] sm:$0xff] %v6113_v1 }
 0x9be   :  { %2378 = vst [vmem:[#allocation4] sm:$0x1] %v2377_v55  ;;  %2446 = vmatmul.mubr.f32.vlgmr.msra.gmra.mxu0 %v2377_v55  ;;  %2517 = vmatmul.mubr.f32.vlgmr.msra.gmra.mxu1 %v2377_v55  ;;  %v6116_v55 = vld [vmem:[#allocation11 + $0x8] sm:$0xff] }
 0x9bf   :  { %2588 = vmatpush1.msra.mxu0 %v5942_v56  ;;  %2659 = vmatpush1.msra.mxu1 %v5945_v50  ;;  %6823 = vst [vmem:[#allocation35_spill] sm:$0xff] %v6116_v55 }
 0x9c0   :  { %2589 = vmatprep.subr.mxu0 %v5948_v26  ;;  %2660 = vmatprep.subr.mxu1 %v5951_v43 }
 0x9c1   :  { %2590 = vmatpush1.msra.mxu0 %v5954_v49  ;;  %2661 = vmatpush1.msra.mxu1 %v5957_v25 }
 0x9c2   :  { %2591 = vmatprep.subr.mxu0 %v5960_v3  ;;  %2662 = vmatprep.subr.mxu1 %v5963_v23 }
 0x9c3   :  { %2592 = vmatpush1.msra.mxu0 %v5966_v63  ;;  %2663 = vmatpush1.msra.mxu1 %v5969_v54 }
 0x9c4   :  { %2593 = vmatprep.subr.mxu0 %v5972_v57  ;;  %2664 = vmatprep.subr.mxu1 %v5975_v62 }
 0x9c5   :  { %2594 = vmatpush1.msra.mxu0 %v5978_v58  ;;  %2665 = vmatpush1.msra.mxu1 %v5981_v2 }
 0x9c6   :  { %2595 = vmatprep.subr.mxu0 %v5984_v60  ;;  %2666 = vmatprep.subr.mxu1 %v5987_v51 }
 0x9c7   :  { %2596 = vmatpush1.msra.mxu0 %v5990_v6  ;;  %2667 = vmatpush1.msra.mxu1 %v5993_v7 }
 0x9c8   :  { %2597 = vmatprep.subr.mxu0 %v5996_v8  ;;  %2668 = vmatprep.subr.mxu1 %v5999_v9 }
 0x9c9   :  { %2598 = vmatpush1.msra.mxu0 %v6002_v10  ;;  %2669 = vmatpush1.msra.mxu1 %v6005_v11 }
 0x9ca   :  { %2599 = vmatprep.subr.mxu0 %v6008_v0  ;;  %2670 = vmatprep.subr.mxu1 %v6011_v12 }
 0x9cb   :  { %2600 = vmatpush1.msra.mxu0 %v6014_v13  ;;  %2671 = vmatpush1.msra.mxu1 %v6017_v14 }
 0x9cc   :  { %2601 = vmatprep.subr.mxu0 %v6020_v16  ;;  %2672 = vmatprep.subr.mxu1 %v6023_v19 }
 0x9cd   :  { %2602 = vmatpush1.msra.mxu0 %v6026_v20  ;;  %2673 = vmatpush1.msra.mxu1 %v6029_v21 }
 0x9ce   :  { %2603 = vmatprep.subr.mxu0 %v6032_v22  ;;  %2674 = vmatprep.subr.mxu1 %v6035_v24 }
 0x9cf   :  { %2604 = vmatpush1.msra.mxu0 %v6038_v27  ;;  %2675 = vmatpush1.msra.mxu1 %v6041_v28 }
 0x9d0   :  { %2605 = vmatprep.subr.mxu0 %v6044_v29  ;;  %2676 = vmatprep.subr.mxu1 %v6047_v30 }
 0x9d1   :  { %2606 = vmatpush1.msra.mxu0 %v6050_v31  ;;  %2677 = vmatpush1.msra.mxu1 %v6053_v32 }
 0x9d2   :  { %2607 = vmatprep.subr.mxu0 %v6056_v33  ;;  %2678 = vmatprep.subr.mxu1 %v6059_v34 }
 0x9d3   :  { %2608 = vmatpush1.msra.mxu0 %v6062_v35  ;;  %2679 = vmatpush1.msra.mxu1 %v6065_v36 }
 0x9d4   :  { %2609 = vmatprep.subr.mxu0 %v6068_v37  ;;  %2680 = vmatprep.subr.mxu1 %v6071_v38 }
 0x9d5   :  { %2610 = vmatpush1.msra.mxu0 %v6074_v39  ;;  %2681 = vmatpush1.msra.mxu1 %v6077_v40 }
 0x9d6   :  { %2611 = vmatprep.subr.mxu0 %v6080_v41  ;;  %2682 = vmatprep.subr.mxu1 %v6083_v42 }
 0x9d7   :  { %2612 = vmatpush1.msra.mxu0 %v6086_v4  ;;  %2683 = vmatpush1.msra.mxu1 %v6089_v48 }
 0x9d8   :  { %2613 = vmatprep.subr.mxu0 %v6092_v44  ;;  %2684 = vmatprep.subr.mxu1 %v6095_v59 }
 0x9d9   :  { %2614 = vmatpush1.msra.mxu0 %v6098_v45  ;;  %2685 = vmatpush1.msra.mxu1 %v6101_v47  ;;  %v6119_v47 = vld [vmem:[#allocation11 + $0x18] sm:$0xff] }
 0x9da   :  { %2615 = vmatprep.subr.mxu0 %v6104_v52  ;;  %2686 = vmatprep.subr.mxu1 %v6107_v46  ;;  %6824 = vst [vmem:[#allocation36_spill] sm:$0xff] %v6119_v47  ;;  %v6122_v52 = vld [vmem:[#allocation11] sm:$0xff]  ;;  %v6126_v46 = vld [vmem:[#allocation11 + $0x10] sm:$0xff] }
 0x9db   :  { %2616 = vmatpush1.msra.mxu0 %v6110_v5  ;;  %2687 = vmatpush1.msra.mxu1 %v6113_v1  ;;  %6825 = vst [vmem:[#allocation37_spill] sm:$0xff] %v6122_v52  ;;  %6826 = vst [vmem:[#allocation38_spill] sm:$0xff] %v6126_v46 }
 0x9dc   :  { %2617 = vmatprep.subr.mxu0 %v6116_v55  ;;  %2688 = vmatprep.subr.mxu1 %v6119_v47 }
 0x9dd   :  { %2618 = vmatpush1.msra.mxu0 %v6122_v52  ;;  %2651 = vmatprep.mubr.f32.mxu0 %v6804_v15 }
 0x9de   :  { %2689 = vmatpush1.msra.mxu1 %v6126_v46  ;;  %2722 = vmatprep.mubr.f32.mxu1 %v6804_v15  ;;  %v2380_v46 = vld [vmem:[#allocation3 + $0x1] ss:$8 sm:$0xf] }
 0x9df   :  { %2793 = vmatprep.subr.mxu0 %v5929_v17  ;;  %2864 = vmatprep.subr.mxu1 %v5932_v18 }
 0xa7e   :  { %v2447_v55 = vpop.f32.mrf.mxu0  ;;  %v2518_v1 = vpop.f32.mrf.mxu1 }
 0xa80   :  { %v2449_v5 = vpop.f32.mrf.mxu0  ;;  %v2520_v47 = vpop.f32.mrf.mxu1 }
 0xa81   :  { %v2527_v45 = vcombine.low %v2447_v55, %v2449_v5  ;;  %v2528_v59 = vcombine.low %v2518_v1, %v2520_v47  ;;  %v6831_v1 = vld [vmem:[#allocation24_spill] sm:$0xff]  ;;  %v6832_v55 = vld [vmem:[#allocation25_spill] sm:$0xff] }
 0xa83   :  { %v2535_v52 = vrot.slane %v2527_v45, %v5218_v53  ;;  %v2542_v44 = vrot.slane %v2528_v59, %v5218_v53 }
 0xa85   :  { %v2543_v48 = vcombine.low %v2535_v52, %v2542_v44 }
 0xa87   :  { %v2550_v4 = vrot.slane %v2543_v48, %v5218_v53 }
 0xa89   :  { %v2552_v42 = vadd.f32 %v2550_v4, %v2380_v46  ;;  %v6830_v46 = vld [vmem:[#allocation23_spill] sm:$0xff] }
 0xa8b   :  { %v3998_v15 = vmul.f32 -1.442695, %v2552_v42  ;;  %v2560_v41 = vrot.slane %v2552_v42, 1  ;;  %v2568_v18 = vrot.slane %v2552_v42, 2  ;;  %v2576_v38 = vrot.slane %v2552_v42, 3  ;;  %v6829_v42 = vld [vmem:[#allocation22_spill] sm:$0xff] }
 0xa8d   :  { %4175 = vpow2.f32 %v3998_v15  ;;  %v3999_v17 = vmul.f32 -1.442695, %v2560_v41  ;;  %v4000_v40 = vmul.f32 -1.442695, %v2568_v18 }
 0xa8f   :  { %4177 = vpow2.f32 %v3999_v17 }
 0xa90   :  { %4179 = vpow2.f32 %v4000_v40 }
 0xa9a   :  { %v4176_v39 = vpop.eup %4175 }
 0xa9b   :  { %v2556_v5 = vadd.f32 1.0, %v4176_v39 }
 0xa9c   :  { %v4178_v47 = vpop.eup %4177 }
 0xa9d   :  { %4181 = vrcp.f32 %v2556_v5  ;;  %v2565_v45 = vadd.f32 1.0, %v4178_v47  ;;  %v4180_v44 = vpop.eup %4179  ;;  %v6833_v5 = vld [vmem:[#allocation26_spill] sm:$0xff]  ;;  %v6834_v47 = vld [vmem:[#allocation27_spill] sm:$0xff] }
 0xa9e   :  { %4183 = vtanh.f32 %v2576_v38  ;;  %v2573_v52 = vadd.f32 1.0, %v4180_v44  ;;  %v6828_v38 = vld [vmem:[#allocation20_spill] sm:$0xff]  ;;  %v6836_v44 = vld [vmem:[#allocation29_spill] sm:$0xff] }
 0xa9f   :  { %4185 = vrcp.f32 %v2565_v45  ;;  %v6835_v45 = vld [vmem:[#allocation28_spill] sm:$0xff] }
 0xaa0   :  { %4187 = vrcp.f32 %v2573_v52  ;;  %v6840_v52 = vld [vmem:[#allocation33_spill] sm:$0xff] }
 0xaaa   :  { %v4182_v48 = vpop.eup %4181 }
 0xaab   :  { %v4184_v59 = vpop.eup %4183  ;;  %v2579_v15 = vmul.f32 %v4182_v48, %v5939_v61  ;;  %v6827_v61 = vld [vmem:[#allocation19_spill] sm:$0xff]  ;;  %v6837_v48 = vld [vmem:[#allocation30_spill] sm:$0xff] }
 0xaac   :  { %v4186_v4 = vpop.eup %4185 }
 0xaad   :  { %v2580_v41 = vmul.f32 %v4186_v4, %v4184_v59  ;;  %v4188_v18 = vpop.eup %4187  ;;  %v6838_v59 = vld [vmem:[#allocation31_spill] sm:$0xff]  ;;  %v6839_v4 = vld [vmem:[#allocation32_spill] sm:$0xff] }
 0xaaf   :  { %v6136_v17 = vadd.f32 %v2580_v41, %v2579_v15  ;;  %v6841_v15 = vld [vmem:[#allocation34_spill] sm:$0xff]  ;;  %v6842_v41 = vld [vmem:[#allocation35_spill] sm:$0xff] }
 0xab1   :  { %4189 = vtanh.f32 %v6136_v17 }
 0xabe   :  { %v4190_v39 = vpop.eup %4189 }
 0xabf   :  { %v2583_v40 = vmul.f32 %v4190_v39, %v4188_v18  ;;  %v6843_v18 = vld [vmem:[#allocation36_spill] sm:$0xff]  ;;  %v6844_v39 = vld [vmem:[#allocation37_spill] sm:$0xff] }
 0xac1   :  { %2584 = vst [vmem:[#allocation4 + $0x1] sm:$0x1] %v2583_v40  ;;  %2652 = vmatmul.mubr.f32.vlgmr.msra.gmra.mxu0 %v2583_v40  ;;  %2723 = vmatmul.mubr.f32.vlgmr.msra.gmra.mxu1 %v2583_v40  ;;  %v6845_v40 = vmov 0.0  }
 0xac2   :  { %2794 = vmatpush1.msra.mxu0 %v5942_v56  ;;  %2865 = vmatpush1.msra.mxu1 %v5945_v50 }
 0xac3   :  { %2795 = vmatprep.subr.mxu0 %v5948_v26  ;;  %2866 = vmatprep.subr.mxu1 %v5951_v43 }
 0xac4   :  { %2796 = vmatpush1.msra.mxu0 %v5954_v49  ;;  %2867 = vmatpush1.msra.mxu1 %v5957_v25 }
 0xac5   :  { %2797 = vmatprep.subr.mxu0 %v5960_v3  ;;  %2868 = vmatprep.subr.mxu1 %v5963_v23 }
 0xac6   :  { %2798 = vmatpush1.msra.mxu0 %v5966_v63  ;;  %2869 = vmatpush1.msra.mxu1 %v5969_v54 }
 0xac7   :  { %2799 = vmatprep.subr.mxu0 %v5972_v57  ;;  %2870 = vmatprep.subr.mxu1 %v5975_v62 }
 0xac8   :  { %2800 = vmatpush1.msra.mxu0 %v5978_v58  ;;  %2871 = vmatpush1.msra.mxu1 %v5981_v2 }
 0xac9   :  { %2801 = vmatprep.subr.mxu0 %v5984_v60  ;;  %2872 = vmatprep.subr.mxu1 %v5987_v51 }
 0xaca   :  { %2802 = vmatpush1.msra.mxu0 %v5990_v6  ;;  %2873 = vmatpush1.msra.mxu1 %v5993_v7 }
 0xacb   :  { %2803 = vmatprep.subr.mxu0 %v5996_v8  ;;  %2874 = vmatprep.subr.mxu1 %v5999_v9 }
 0xacc   :  { %2804 = vmatpush1.msra.mxu0 %v6002_v10  ;;  %2875 = vmatpush1.msra.mxu1 %v6005_v11 }
 0xacd   :  { %2805 = vmatprep.subr.mxu0 %v6008_v0  ;;  %2876 = vmatprep.subr.mxu1 %v6011_v12 }
 0xace   :  { %2806 = vmatpush1.msra.mxu0 %v6014_v13  ;;  %2877 = vmatpush1.msra.mxu1 %v6017_v14 }
 0xacf   :  { %2807 = vmatprep.subr.mxu0 %v6020_v16  ;;  %2878 = vmatprep.subr.mxu1 %v6023_v19 }
 0xad0   :  { %2808 = vmatpush1.msra.mxu0 %v6026_v20  ;;  %2879 = vmatpush1.msra.mxu1 %v6029_v21 }
 0xad1   :  { %2809 = vmatprep.subr.mxu0 %v6032_v22  ;;  %2880 = vmatprep.subr.mxu1 %v6035_v24 }
 0xad2   :  { %2810 = vmatpush1.msra.mxu0 %v6038_v27  ;;  %2881 = vmatpush1.msra.mxu1 %v6041_v28 }
 0xad3   :  { %2811 = vmatprep.subr.mxu0 %v6044_v29  ;;  %2882 = vmatprep.subr.mxu1 %v6047_v30 }
 0xad4   :  { %2812 = vmatpush1.msra.mxu0 %v6050_v31  ;;  %2883 = vmatpush1.msra.mxu1 %v6053_v32 }
 0xad5   :  { %2813 = vmatprep.subr.mxu0 %v6056_v33  ;;  %2884 = vmatprep.subr.mxu1 %v6059_v34 }
 0xad6   :  { %2814 = vmatpush1.msra.mxu0 %v6062_v35  ;;  %2885 = vmatpush1.msra.mxu1 %v6065_v36 }
 0xad7   :  { %2815 = vmatprep.subr.mxu0 %v6068_v37  ;;  %2886 = vmatprep.subr.mxu1 %v6827_v61 }
 0xad8   :  { %2816 = vmatpush1.msra.mxu0 %v6828_v38  ;;  %2887 = vmatpush1.msra.mxu1 %v6829_v42 }
 0xad9   :  { %2817 = vmatprep.subr.mxu0 %v6830_v46  ;;  %2888 = vmatprep.subr.mxu1 %v6831_v1 }
 0xada   :  { %2818 = vmatpush1.msra.mxu0 %v6832_v55  ;;  %2889 = vmatpush1.msra.mxu1 %v6833_v5 }
 0xadb   :  { %2819 = vmatprep.subr.mxu0 %v6834_v47  ;;  %2890 = vmatprep.subr.mxu1 %v6835_v45  ;;  %v6846_v45 = vld [vmem:[#allocation38_spill] sm:$0xff] }
 0xadc   :  { %2820 = vmatpush1.msra.mxu0 %v6836_v44  ;;  %2891 = vmatpush1.msra.mxu1 %v6837_v48  ;;  %v6847_v48 = vld [vmem:[#allocation40_spill] sm:$0xff] }
 0xadd   :  { %2821 = vmatprep.subr.mxu0 %v6838_v59  ;;  %2892 = vmatprep.subr.mxu1 %v6839_v4  ;;  %v6848_v59 = vld [vmem:[#allocation21_spill] sm:$0xff] }
 0xade   :  { %2822 = vmatpush1.msra.mxu0 %v6840_v52  ;;  %2893 = vmatpush1.msra.mxu1 %v6841_v15 }
 0xadf   :  { %2823 = vmatprep.subr.mxu0 %v6842_v41  ;;  %2894 = vmatprep.subr.mxu1 %v6843_v18 }
 0xae0   :  { %2824 = vmatpush1.msra.mxu0 %v6844_v39  ;;  %2857 = vmatprep.mubr.f32.mxu0 %v6845_v40 }
 0xae1   :  { %2895 = vmatpush1.msra.mxu1 %v6846_v45  ;;  %2928 = vmatprep.mubr.f32.mxu1 %v6845_v40  ;;  %v2586_v45 = vld [vmem:[#allocation3 + $0x2] ss:$8 sm:$0xf] }
 0xae2   :  { %2999 = vmatprep.subr.mxu0 %v6847_v48  ;;  %3070 = vmatprep.subr.mxu1 %v6848_v59 }
 0xb81   :  { %v2653_v4 = vpop.f32.mrf.mxu0  ;;  %v2724_v52 = vpop.f32.mrf.mxu1 }
 0xb83   :  { %v2655_v44 = vpop.f32.mrf.mxu0  ;;  %v2726_v15 = vpop.f32.mrf.mxu1 }
 0xb84   :  { %v2733_v47 = vcombine.low %v2653_v4, %v2655_v44  ;;  %v2734_v41 = vcombine.low %v2724_v52, %v2726_v15 }
 0xb86   :  { %v2741_v18 = vrot.slane %v2733_v47, %v5218_v53  ;;  %v2748_v39 = vrot.slane %v2734_v41, %v5218_v53 }
 0xb88   :  { %v2749_v5 = vcombine.low %v2741_v18, %v2748_v39  ;;  %v6852_v18 = vld [vmem:[#allocation23_spill] sm:$0xff]  ;;  %v6853_v39 = vld [vmem:[#allocation24_spill] sm:$0xff] }
 0xb8a   :  { %v2756_v55 = vrot.slane %v2749_v5, %v5218_v53 }
 0xb8c   :  { %v2758_v1 = vadd.f32 %v2756_v55, %v2586_v45 }
 0xb8e   :  { %v4001_v40 = vmul.f32 -1.442695, %v2758_v1  ;;  %v2766_v46 = vrot.slane %v2758_v1, 1  ;;  %v2774_v59 = vrot.slane %v2758_v1, 2  ;;  %v2782_v61 = vrot.slane %v2758_v1, 3 }
 0xb90   :  { %4191 = vpow2.f32 %v4001_v40  ;;  %v4002_v48 = vmul.f32 -1.442695, %v2766_v46  ;;  %v4003_v42 = vmul.f32 -1.442695, %v2774_v59  ;;  %v6851_v59 = vld [vmem:[#allocation22_spill] sm:$0xff]  ;;  %v6854_v40 = vld [vmem:[#allocation25_spill] sm:$0xff] }
 0xb92   :  { %4193 = vpow2.f32 %v4002_v48 }
 0xb93   :  { %4195 = vpow2.f32 %v4003_v42 }
 0xb9d   :  { %v4192_v38 = vpop.eup %4191 }
 0xb9e   :  { %v2762_v44 = vadd.f32 1.0, %v4192_v38 }
 0xb9f   :  { %v4194_v4 = vpop.eup %4193 }
 0xba0   :  { %4197 = vrcp.f32 %v2762_v44  ;;  %v2771_v47 = vadd.f32 1.0, %v4194_v4  ;;  %v4196_v52 = vpop.eup %4195  ;;  %v6855_v44 = vld [vmem:[#allocation26_spill] sm:$0xff]  ;;  %v6856_v4 = vld [vmem:[#allocation27_spill] sm:$0xff] }
 0xba1   :  { %4199 = vtanh.f32 %v2782_v61  ;;  %v2779_v45 = vadd.f32 1.0, %v4196_v52  ;;  %v6850_v61 = vld [vmem:[#allocation20_spill] sm:$0xff]  ;;  %v6858_v52 = vld [vmem:[#allocation29_spill] sm:$0xff] }
 0xba2   :  { %4201 = vrcp.f32 %v2771_v47  ;;  %v6857_v47 = vld [vmem:[#allocation28_spill] sm:$0xff] }
 0xba3   :  { %4203 = vrcp.f32 %v2779_v45  ;;  %v6862_v45 = vld [vmem:[#allocation33_spill] sm:$0xff] }
 0xbad   :  { %v4198_v5 = vpop.eup %4197 }
 0xbae   :  { %v4200_v15 = vpop.eup %4199  ;;  %v2785_v41 = vmul.f32 %v4198_v5, %v6136_v17  ;;  %v6849_v17 = vld [vmem:[#allocation19_spill] sm:$0xff]  ;;  %v6859_v5 = vld [vmem:[#allocation30_spill] sm:$0xff] }
 0xbaf   :  { %v4202_v55 = vpop.eup %4201 }
 0xbb0   :  { %v2786_v46 = vmul.f32 %v4202_v55, %v4200_v15  ;;  %v4204_v38 = vpop.eup %4203  ;;  %v6860_v15 = vld [vmem:[#allocation31_spill] sm:$0xff]  ;;  %v6861_v55 = vld [vmem:[#allocation32_spill] sm:$0xff] }
 0xbb2   :  { %v6209_v48 = vadd.f32 %v2786_v46, %v2785_v41  ;;  %v6863_v41 = vld [vmem:[#allocation34_spill] sm:$0xff]  ;;  %v6864_v46 = vld [vmem:[#allocation35_spill] sm:$0xff] }
 0xbb4   :  { %4205 = vtanh.f32 %v6209_v48 }
 0xbc1   :  { %v4206_v1 = vpop.eup %4205 }
 0xbc2   :  { %v2789_v42 = vmul.f32 %v4206_v1, %v4204_v38  ;;  %v6865_v38 = vld [vmem:[#allocation36_spill] sm:$0xff]  ;;  %v6866_v1 = vld [vmem:[#allocation37_spill] sm:$0xff] }
 0xbc4   :  { %2790 = vst [vmem:[#allocation4 + $0x2] sm:$0x1] %v2789_v42  ;;  %2858 = vmatmul.mubr.f32.vlgmr.msra.gmra.mxu0 %v2789_v42  ;;  %2929 = vmatmul.mubr.f32.vlgmr.msra.gmra.mxu1 %v2789_v42  ;;  %v6867_v42 = vmov 0.0  }
 0xbc5   :  { %3000 = vmatpush1.msra.mxu0 %v5942_v56  ;;  %3071 = vmatpush1.msra.mxu1 %v5945_v50 }
 0xbc6   :  { %3001 = vmatprep.subr.mxu0 %v5948_v26  ;;  %3072 = vmatprep.subr.mxu1 %v5951_v43 }
 0xbc7   :  { %3002 = vmatpush1.msra.mxu0 %v5954_v49  ;;  %3073 = vmatpush1.msra.mxu1 %v5957_v25 }
 0xbc8   :  { %3003 = vmatprep.subr.mxu0 %v5960_v3  ;;  %3074 = vmatprep.subr.mxu1 %v5963_v23 }
 0xbc9   :  { %3004 = vmatpush1.msra.mxu0 %v5966_v63  ;;  %3075 = vmatpush1.msra.mxu1 %v5969_v54 }
 0xbca   :  { %3005 = vmatprep.subr.mxu0 %v5972_v57  ;;  %3076 = vmatprep.subr.mxu1 %v5975_v62 }
 0xbcb   :  { %3006 = vmatpush1.msra.mxu0 %v5978_v58  ;;  %3077 = vmatpush1.msra.mxu1 %v5981_v2 }
 0xbcc   :  { %3007 = vmatprep.subr.mxu0 %v5984_v60  ;;  %3078 = vmatprep.subr.mxu1 %v5987_v51 }
 0xbcd   :  { %3008 = vmatpush1.msra.mxu0 %v5990_v6  ;;  %3079 = vmatpush1.msra.mxu1 %v5993_v7 }
 0xbce   :  { %3009 = vmatprep.subr.mxu0 %v5996_v8  ;;  %3080 = vmatprep.subr.mxu1 %v5999_v9 }
 0xbcf   :  { %3010 = vmatpush1.msra.mxu0 %v6002_v10  ;;  %3081 = vmatpush1.msra.mxu1 %v6005_v11 }
 0xbd0   :  { %3011 = vmatprep.subr.mxu0 %v6008_v0  ;;  %3082 = vmatprep.subr.mxu1 %v6011_v12 }
 0xbd1   :  { %3012 = vmatpush1.msra.mxu0 %v6014_v13  ;;  %3083 = vmatpush1.msra.mxu1 %v6017_v14 }
 0xbd2   :  { %3013 = vmatprep.subr.mxu0 %v6020_v16  ;;  %3084 = vmatprep.subr.mxu1 %v6023_v19 }
 0xbd3   :  { %3014 = vmatpush1.msra.mxu0 %v6026_v20  ;;  %3085 = vmatpush1.msra.mxu1 %v6029_v21 }
 0xbd4   :  { %3015 = vmatprep.subr.mxu0 %v6032_v22  ;;  %3086 = vmatprep.subr.mxu1 %v6035_v24 }
 0xbd5   :  { %3016 = vmatpush1.msra.mxu0 %v6038_v27  ;;  %3087 = vmatpush1.msra.mxu1 %v6041_v28 }
 0xbd6   :  { %3017 = vmatprep.subr.mxu0 %v6044_v29  ;;  %3088 = vmatprep.subr.mxu1 %v6047_v30 }
 0xbd7   :  { %3018 = vmatpush1.msra.mxu0 %v6050_v31  ;;  %3089 = vmatpush1.msra.mxu1 %v6053_v32 }
 0xbd8   :  { %3019 = vmatprep.subr.mxu0 %v6056_v33  ;;  %3090 = vmatprep.subr.mxu1 %v6059_v34 }
 0xbd9   :  { %3020 = vmatpush1.msra.mxu0 %v6062_v35  ;;  %3091 = vmatpush1.msra.mxu1 %v6065_v36 }
 0xbda   :  { %3021 = vmatprep.subr.mxu0 %v6068_v37  ;;  %3092 = vmatprep.subr.mxu1 %v6849_v17 }
 0xbdb   :  { %3022 = vmatpush1.msra.mxu0 %v6850_v61  ;;  %3093 = vmatpush1.msra.mxu1 %v6851_v59 }
 0xbdc   :  { %3023 = vmatprep.subr.mxu0 %v6852_v18  ;;  %3094 = vmatprep.subr.mxu1 %v6853_v39 }
 0xbdd   :  { %3024 = vmatpush1.msra.mxu0 %v6854_v40  ;;  %3095 = vmatpush1.msra.mxu1 %v6855_v44 }
 0xbde   :  { %3025 = vmatprep.subr.mxu0 %v6856_v4  ;;  %3096 = vmatprep.subr.mxu1 %v6857_v47  ;;  %v6868_v47 = vld [vmem:[#allocation38_spill] sm:$0xff] }
 0xbdf   :  { %3026 = vmatpush1.msra.mxu0 %v6858_v52  ;;  %3097 = vmatpush1.msra.mxu1 %v6859_v5  ;;  %v6869_v5 = vld [vmem:[#allocation40_spill] sm:$0xff] }
 0xbe0   :  { %3027 = vmatprep.subr.mxu0 %v6860_v15  ;;  %3098 = vmatprep.subr.mxu1 %v6861_v55  ;;  %v6870_v15 = vld [vmem:[#allocation21_spill] sm:$0xff] }
 0xbe1   :  { %3028 = vmatpush1.msra.mxu0 %v6862_v45  ;;  %3099 = vmatpush1.msra.mxu1 %v6863_v41 }
 0xbe2   :  { %3029 = vmatprep.subr.mxu0 %v6864_v46  ;;  %3100 = vmatprep.subr.mxu1 %v6865_v38 }
 0xbe3   :  { %3030 = vmatpush1.msra.mxu0 %v6866_v1  ;;  %3063 = vmatprep.mubr.f32.mxu0 %v6867_v42 }
 0xbe4   :  { %3101 = vmatpush1.msra.mxu1 %v6868_v47  ;;  %3134 = vmatprep.mubr.f32.mxu1 %v6867_v42  ;;  %v2792_v47 = vld [vmem:[#allocation3 + $0x3] ss:$8 sm:$0xf] }
 0xbe5   :  { %3205 = vmatprep.subr.mxu0 %v6869_v5  ;;  %3276 = vmatprep.subr.mxu1 %v6870_v15 }
 0xc84   :  { %v2859_v55 = vpop.f32.mrf.mxu0  ;;  %v2930_v45 = vpop.f32.mrf.mxu1 }
 0xc86   :  { %v2861_v52 = vpop.f32.mrf.mxu0  ;;  %v2932_v41 = vpop.f32.mrf.mxu1 }
 0xc87   :  { %v2939_v4 = vcombine.low %v2859_v55, %v2861_v52  ;;  %v2940_v46 = vcombine.low %v2930_v45, %v2932_v41 }
 0xc89   :  { %v2947_v38 = vrot.slane %v2939_v4, %v5218_v53  ;;  %v2954_v1 = vrot.slane %v2940_v46, %v5218_v53 }
 0xc8b   :  { %v2955_v44 = vcombine.low %v2947_v38, %v2954_v1  ;;  %v6874_v38 = vld [vmem:[#allocation23_spill] sm:$0xff]  ;;  %v6875_v1 = vld [vmem:[#allocation24_spill] sm:$0xff] }
 0xc8d   :  { %v2962_v40 = vrot.slane %v2955_v44, %v5218_v53 }
 0xc8f   :  { %v2964_v39 = vadd.f32 %v2962_v40, %v2792_v47 }
 0xc91   :  { %v4004_v42 = vmul.f32 -1.442695, %v2964_v39  ;;  %v2972_v18 = vrot.slane %v2964_v39, 1  ;;  %v2980_v15 = vrot.slane %v2964_v39, 2  ;;  %v2988_v17 = vrot.slane %v2964_v39, 3 }
 0xc93   :  { %4207 = vpow2.f32 %v4004_v42  ;;  %v4005_v5 = vmul.f32 -1.442695, %v2972_v18  ;;  %v4006_v59 = vmul.f32 -1.442695, %v2980_v15  ;;  %v6873_v15 = vld [vmem:[#allocation22_spill] sm:$0xff]  ;;  %v6876_v42 = vld [vmem:[#allocation25_spill] sm:$0xff] }
 0xc95   :  { %4209 = vpow2.f32 %v4005_v5 }
 0xc96   :  { %4211 = vpow2.f32 %v4006_v59 }
 0xca0   :  { %v4208_v61 = vpop.eup %4207 }
 0xca1   :  { %v2968_v52 = vadd.f32 1.0, %v4208_v61 }
 0xca2   :  { %v4210_v55 = vpop.eup %4209 }
 0xca3   :  { %4213 = vrcp.f32 %v2968_v52  ;;  %v2977_v4 = vadd.f32 1.0, %v4210_v55  ;;  %v4212_v45 = vpop.eup %4211  ;;  %v6877_v52 = vld [vmem:[#allocation26_spill] sm:$0xff]  ;;  %v6878_v55 = vld [vmem:[#allocation27_spill] sm:$0xff] }
 0xca4   :  { %4215 = vtanh.f32 %v2988_v17  ;;  %v2985_v47 = vadd.f32 1.0, %v4212_v45  ;;  %v6872_v17 = vld [vmem:[#allocation20_spill] sm:$0xff]  ;;  %v6880_v45 = vld [vmem:[#allocation29_spill] sm:$0xff] }
 0xca5   :  { %4217 = vrcp.f32 %v2977_v4  ;;  %v6879_v4 = vld [vmem:[#allocation28_spill] sm:$0xff] }
 0xca6   :  { %4219 = vrcp.f32 %v2985_v47  ;;  %v6884_v47 = vld [vmem:[#allocation33_spill] sm:$0xff] }
 0xcb0   :  { %v4214_v44 = vpop.eup %4213 }
 0xcb1   :  { %v4216_v41 = vpop.eup %4215  ;;  %v2991_v46 = vmul.f32 %v4214_v44, %v6209_v48  ;;  %v6871_v48 = vld [vmem:[#allocation19_spill] sm:$0xff]  ;;  %v6881_v44 = vld [vmem:[#allocation30_spill] sm:$0xff] }
 0xcb2   :  { %v4218_v40 = vpop.eup %4217 }
 0xcb3   :  { %v2992_v18 = vmul.f32 %v4218_v40, %v4216_v41  ;;  %v4220_v61 = vpop.eup %4219  ;;  %v6882_v41 = vld [vmem:[#allocation31_spill] sm:$0xff]  ;;  %v6883_v40 = vld [vmem:[#allocation32_spill] sm:$0xff] }
 0xcb5   :  { %v6282_v5 = vadd.f32 %v2992_v18, %v2991_v46  ;;  %v6885_v46 = vld [vmem:[#allocation34_spill] sm:$0xff]  ;;  %v6886_v18 = vld [vmem:[#allocation35_spill] sm:$0xff] }
 0xcb7   :  { %4221 = vtanh.f32 %v6282_v5 }
 0xcc4   :  { %v4222_v39 = vpop.eup %4221 }
 0xcc5   :  { %v2995_v59 = vmul.f32 %v4222_v39, %v4220_v61  ;;  %v6887_v61 = vld [vmem:[#allocation36_spill] sm:$0xff]  ;;  %v6888_v39 = vld [vmem:[#allocation37_spill] sm:$0xff] }
 0xcc7   :  { %2996 = vst [vmem:[#allocation4 + $0x3] sm:$0x1] %v2995_v59  ;;  %3064 = vmatmul.mubr.f32.vlgmr.msra.gmra.mxu0 %v2995_v59  ;;  %3135 = vmatmul.mubr.f32.vlgmr.msra.gmra.mxu1 %v2995_v59  ;;  %v6889_v59 = vmov 0.0  }
 0xcc8   :  { %3206 = vmatpush1.msra.mxu0 %v5942_v56  ;;  %3277 = vmatpush1.msra.mxu1 %v5945_v50 }
 0xcc9   :  { %3207 = vmatprep.subr.mxu0 %v5948_v26  ;;  %3278 = vmatprep.subr.mxu1 %v5951_v43 }
 0xcca   :  { %3208 = vmatpush1.msra.mxu0 %v5954_v49  ;;  %3279 = vmatpush1.msra.mxu1 %v5957_v25 }
 0xccb   :  { %3209 = vmatprep.subr.mxu0 %v5960_v3  ;;  %3280 = vmatprep.subr.mxu1 %v5963_v23 }
 0xccc   :  { %3210 = vmatpush1.msra.mxu0 %v5966_v63  ;;  %3281 = vmatpush1.msra.mxu1 %v5969_v54 }
 0xccd   :  { %3211 = vmatprep.subr.mxu0 %v5972_v57  ;;  %3282 = vmatprep.subr.mxu1 %v5975_v62 }
 0xcce   :  { %3212 = vmatpush1.msra.mxu0 %v5978_v58  ;;  %3283 = vmatpush1.msra.mxu1 %v5981_v2 }
 0xccf   :  { %3213 = vmatprep.subr.mxu0 %v5984_v60  ;;  %3284 = vmatprep.subr.mxu1 %v5987_v51 }
 0xcd0   :  { %3214 = vmatpush1.msra.mxu0 %v5990_v6  ;;  %3285 = vmatpush1.msra.mxu1 %v5993_v7 }
 0xcd1   :  { %3215 = vmatprep.subr.mxu0 %v5996_v8  ;;  %3286 = vmatprep.subr.mxu1 %v5999_v9 }
 0xcd2   :  { %3216 = vmatpush1.msra.mxu0 %v6002_v10  ;;  %3287 = vmatpush1.msra.mxu1 %v6005_v11 }
 0xcd3   :  { %3217 = vmatprep.subr.mxu0 %v6008_v0  ;;  %3288 = vmatprep.subr.mxu1 %v6011_v12 }
 0xcd4   :  { %3218 = vmatpush1.msra.mxu0 %v6014_v13  ;;  %3289 = vmatpush1.msra.mxu1 %v6017_v14 }
 0xcd5   :  { %3219 = vmatprep.subr.mxu0 %v6020_v16  ;;  %3290 = vmatprep.subr.mxu1 %v6023_v19 }
 0xcd6   :  { %3220 = vmatpush1.msra.mxu0 %v6026_v20  ;;  %3291 = vmatpush1.msra.mxu1 %v6029_v21 }
 0xcd7   :  { %3221 = vmatprep.subr.mxu0 %v6032_v22  ;;  %3292 = vmatprep.subr.mxu1 %v6035_v24 }
 0xcd8   :  { %3222 = vmatpush1.msra.mxu0 %v6038_v27  ;;  %3293 = vmatpush1.msra.mxu1 %v6041_v28 }
 0xcd9   :  { %3223 = vmatprep.subr.mxu0 %v6044_v29  ;;  %3294 = vmatprep.subr.mxu1 %v6047_v30 }
 0xcda   :  { %3224 = vmatpush1.msra.mxu0 %v6050_v31  ;;  %3295 = vmatpush1.msra.mxu1 %v6053_v32 }
 0xcdb   :  { %3225 = vmatprep.subr.mxu0 %v6056_v33  ;;  %3296 = vmatprep.subr.mxu1 %v6059_v34 }
 0xcdc   :  { %3226 = vmatpush1.msra.mxu0 %v6062_v35  ;;  %3297 = vmatpush1.msra.mxu1 %v6065_v36 }
 0xcdd   :  { %3227 = vmatprep.subr.mxu0 %v6068_v37  ;;  %3298 = vmatprep.subr.mxu1 %v6871_v48 }
 0xcde   :  { %3228 = vmatpush1.msra.mxu0 %v6872_v17  ;;  %3299 = vmatpush1.msra.mxu1 %v6873_v15 }
 0xcdf   :  { %3229 = vmatprep.subr.mxu0 %v6874_v38  ;;  %3300 = vmatprep.subr.mxu1 %v6875_v1 }
 0xce0   :  { %3230 = vmatpush1.msra.mxu0 %v6876_v42  ;;  %3301 = vmatpush1.msra.mxu1 %v6877_v52 }
 0xce1   :  { %3231 = vmatprep.subr.mxu0 %v6878_v55  ;;  %3302 = vmatprep.subr.mxu1 %v6879_v4  ;;  %v6890_v4 = vld [vmem:[#allocation38_spill] sm:$0xff] }
 0xce2   :  { %3232 = vmatpush1.msra.mxu0 %v6880_v45  ;;  %3303 = vmatpush1.msra.mxu1 %v6881_v44  ;;  %v6891_v44 = vld [vmem:[#allocation40_spill] sm:$0xff] }
 0xce3   :  { %3233 = vmatprep.subr.mxu0 %v6882_v41  ;;  %3304 = vmatprep.subr.mxu1 %v6883_v40  ;;  %v6892_v41 = vld [vmem:[#allocation21_spill] sm:$0xff] }
 0xce4   :  { %3234 = vmatpush1.msra.mxu0 %v6884_v47  ;;  %3305 = vmatpush1.msra.mxu1 %v6885_v46 }
 0xce5   :  { %3235 = vmatprep.subr.mxu0 %v6886_v18  ;;  %3306 = vmatprep.subr.mxu1 %v6887_v61 }
 0xce6   :  { %3236 = vmatpush1.msra.mxu0 %v6888_v39  ;;  %3269 = vmatprep.mubr.f32.mxu0 %v6889_v59 }
 0xce7   :  { %3307 = vmatpush1.msra.mxu1 %v6890_v4  ;;  %3340 = vmatprep.mubr.f32.mxu1 %v6889_v59  ;;  %v2998_v4 = vld [vmem:[#allocation3 + $0x4] ss:$8 sm:$0xf] }
 0xce8   :  { %3411 = vmatprep.subr.mxu0 %v6891_v44  ;;  %3482 = vmatprep.subr.mxu1 %v6892_v41 }
 0xd87   :  { %v3065_v40 = vpop.f32.mrf.mxu0  ;;  %v3136_v47 = vpop.f32.mrf.mxu1 }
 0xd89   :  { %v3067_v45 = vpop.f32.mrf.mxu0  ;;  %v3138_v46 = vpop.f32.mrf.mxu1 }
 0xd8a   :  { %v3145_v55 = vcombine.low %v3065_v40, %v3067_v45  ;;  %v3146_v18 = vcombine.low %v3136_v47, %v3138_v46 }
 0xd8c   :  { %v3153_v61 = vrot.slane %v3145_v55, %v5218_v53  ;;  %v3160_v39 = vrot.slane %v3146_v18, %v5218_v53 }
 0xd8e   :  { %v3161_v52 = vcombine.low %v3153_v61, %v3160_v39 }
 0xd90   :  { %v3168_v42 = vrot.slane %v3161_v52, %v5218_v53 }
 0xd92   :  { %v3170_v1 = vadd.f32 %v3168_v42, %v2998_v4 }
 0xd94   :  { %v4007_v59 = vmul.f32 -1.442695, %v3170_v1  ;;  %v3178_v38 = vrot.slane %v3170_v1, 1  ;;  %v3186_v41 = vrot.slane %v3170_v1, 2  ;;  %v3194_v48 = vrot.slane %v3170_v1, 3 }
 0xd96   :  { %4223 = vpow2.f32 %v4007_v59  ;;  %v4008_v44 = vmul.f32 -1.442695, %v3178_v38  ;;  %v4009_v15 = vmul.f32 -1.442695, %v3186_v41 }
 0xd98   :  { %4225 = vpow2.f32 %v4008_v44 }
 0xd99   :  { %4227 = vpow2.f32 %v4009_v15 }
 0xda3   :  { %v4224_v17 = vpop.eup %4223 }
 0xda4   :  { %v3174_v45 = vadd.f32 1.0, %v4224_v17 }
 0xda5   :  { %v4226_v40 = vpop.eup %4225 }
 0xda6   :  { %4229 = vrcp.f32 %v3174_v45  ;;  %v3183_v55 = vadd.f32 1.0, %v4226_v40  ;;  %v4228_v47 = vpop.eup %4227 }
 0xda7   :  { %4231 = vtanh.f32 %v3194_v48  ;;  %v3191_v4 = vadd.f32 1.0, %v4228_v47 }
 0xda8   :  { %4233 = vrcp.f32 %v3183_v55 }
 0xda9   :  { %4235 = vrcp.f32 %v3191_v4  ;;  %v4424_v4 = vld [vmem:[#allocation11 + $0x1f0] sm:$0xff] }
 0xdb3   :  { %v4230_v52 = vpop.eup %4229 }
 0xdb4   :  { %v4232_v46 = vpop.eup %4231  ;;  %v3197_v18 = vmul.f32 %v4230_v52, %v6282_v5 }
 0xdb5   :  { %v4234_v42 = vpop.eup %4233 }
 0xdb6   :  { %v3198_v38 = vmul.f32 %v4234_v42, %v4232_v46  ;;  %v4236_v17 = vpop.eup %4235  ;;  %v4423_v42 = vld [vmem:[#allocation11 + $0x1e0] sm:$0xff] }
 0xdb8   :  { %v6355_v61 = vadd.f32 %v3198_v38, %v3197_v18  ;;  %v4425_v18 = vld [vmem:[#allocation11 + $0x1c8] sm:$0xff]  ;;  %v4426_v38 = vld [vmem:[#allocation11 + $0x1d8] sm:$0xff] }
 0xdba   :  { %4237 = vtanh.f32 %v6355_v61 }
 0xdc7   :  { %v4238_v1 = vpop.eup %4237 }
 0xdc8   :  { %v3201_v15 = vmul.f32 %v4238_v1, %v4236_v17  ;;  %v4428_v17 = vld [vmem:[#allocation11 + $0x1d0] sm:$0xff]  ;;  %v4429_v1 = vld [vmem:[#allocation11 + $0x1a8] sm:$0xff] }
 0xdca   :  { %3202 = vst [vmem:[#allocation4 + $0x4] sm:$0x1] %v3201_v15  ;;  %3270 = vmatmul.mubr.f32.vlgmr.msra.gmra.mxu0 %v3201_v15  ;;  %3341 = vmatmul.mubr.f32.vlgmr.msra.gmra.mxu1 %v3201_v15  ;;  %v4430_v15 = vld [vmem:[#allocation11 + $0x1b8] sm:$0xff] }
 0xdcb   :  { %3412 = vmatpush1.msra.mxu0 %v5942_v56  ;;  %3483 = vmatpush1.msra.mxu1 %v5945_v50  ;;  %v6893_v56 = vld [vmem:[#allocation19_spill] sm:$0xff]  ;;  %v6894_v50 = vld [vmem:[#allocation20_spill] sm:$0xff] }
 0xdcc   :  { %3413 = vmatprep.subr.mxu0 %v5948_v26  ;;  %3484 = vmatprep.subr.mxu1 %v5951_v43  ;;  %v6895_v26 = vld [vmem:[#allocation22_spill] sm:$0xff]  ;;  %v6896_v43 = vld [vmem:[#allocation23_spill] sm:$0xff] }
 0xdcd   :  { %3414 = vmatpush1.msra.mxu0 %v5954_v49  ;;  %3485 = vmatpush1.msra.mxu1 %v5957_v25  ;;  %v6897_v49 = vld [vmem:[#allocation24_spill] sm:$0xff]  ;;  %v6898_v25 = vld [vmem:[#allocation25_spill] sm:$0xff] }
 0xdce   :  { %3415 = vmatprep.subr.mxu0 %v5960_v3  ;;  %3486 = vmatprep.subr.mxu1 %v5963_v23  ;;  %v6899_v3 = vld [vmem:[#allocation26_spill] sm:$0xff]  ;;  %v6900_v23 = vld [vmem:[#allocation27_spill] sm:$0xff] }
 0xdcf   :  { %3416 = vmatpush1.msra.mxu0 %v5966_v63  ;;  %3487 = vmatpush1.msra.mxu1 %v5969_v54  ;;  %v6901_v63 = vld [vmem:[#allocation28_spill] sm:$0xff]  ;;  %v6902_v54 = vld [vmem:[#allocation29_spill] sm:$0xff] }
 0xdd0   :  { %3417 = vmatprep.subr.mxu0 %v5972_v57  ;;  %3488 = vmatprep.subr.mxu1 %v5975_v62  ;;  %v6903_v57 = vld [vmem:[#allocation30_spill] sm:$0xff]  ;;  %v6904_v62 = vld [vmem:[#allocation31_spill] sm:$0xff] }
 0xdd1   :  { %3418 = vmatpush1.msra.mxu0 %v5978_v58  ;;  %3489 = vmatpush1.msra.mxu1 %v5981_v2  ;;  %v6905_v58 = vld [vmem:[#allocation32_spill] sm:$0xff]  ;;  %v6906_v2 = vld [vmem:[#allocation33_spill] sm:$0xff] }
 0xdd2   :  { %3419 = vmatprep.subr.mxu0 %v5984_v60  ;;  %3490 = vmatprep.subr.mxu1 %v5987_v51  ;;  %v6907_v60 = vld [vmem:[#allocation34_spill] sm:$0xff]  ;;  %v6908_v51 = vld [vmem:[#allocation35_spill] sm:$0xff] }
 0xdd3   :  { %3420 = vmatpush1.msra.mxu0 %v5990_v6  ;;  %3491 = vmatpush1.msra.mxu1 %v5993_v7  ;;  %v6909_v6 = vld [vmem:[#allocation36_spill] sm:$0xff]  ;;  %v6910_v7 = vld [vmem:[#allocation37_spill] sm:$0xff] }
 0xdd4   :  { %3421 = vmatprep.subr.mxu0 %v5996_v8  ;;  %3492 = vmatprep.subr.mxu1 %v5999_v9  ;;  %v6911_v8 = vmov 0.0   ;;  %v6912_v9 = vld [vmem:[#allocation38_spill] sm:$0xff] }
 0xdd5   :  { %3422 = vmatpush1.msra.mxu0 %v6002_v10  ;;  %3493 = vmatpush1.msra.mxu1 %v6005_v11  ;;  %v4421_v10 = vld [vmem:[#allocation11 + $0x1e8] sm:$0xff]  ;;  %v4422_v11 = vld [vmem:[#allocation11 + $0x1f8] sm:$0xff] }
 0xdd6   :  { %3423 = vmatprep.subr.mxu0 %v6008_v0  ;;  %3494 = vmatprep.subr.mxu1 %v6011_v12 }
 0xdd7   :  { %3424 = vmatpush1.msra.mxu0 %v6014_v13  ;;  %3495 = vmatpush1.msra.mxu1 %v6017_v14 }
 0xdd8   :  { %3425 = vmatprep.subr.mxu0 %v6020_v16  ;;  %3496 = vmatprep.subr.mxu1 %v6023_v19 }
 0xdd9   :  { %3426 = vmatpush1.msra.mxu0 %v6026_v20  ;;  %3497 = vmatpush1.msra.mxu1 %v6029_v21 }
 0xdda   :  { %3427 = vmatprep.subr.mxu0 %v6032_v22  ;;  %3498 = vmatprep.subr.mxu1 %v6035_v24 }
 0xddb   :  { %3428 = vmatpush1.msra.mxu0 %v6038_v27  ;;  %3499 = vmatpush1.msra.mxu1 %v6041_v28  ;;  %v3204_v27 = vld [vmem:[#allocation3 + $0x5] ss:$8 sm:$0xf] }
 0xddc   :  { %3429 = vmatprep.subr.mxu0 %v6044_v29  ;;  %3500 = vmatprep.subr.mxu1 %v6047_v30 }
 0xddd   :  { %3430 = vmatpush1.msra.mxu0 %v6050_v31  ;;  %3501 = vmatpush1.msra.mxu1 %v6053_v32 }
 0xdde   :  { %3431 = vmatprep.subr.mxu0 %v6056_v33  ;;  %3502 = vmatprep.subr.mxu1 %v6059_v34 }
 0xddf   :  { %3432 = vmatpush1.msra.mxu0 %v6062_v35  ;;  %3503 = vmatpush1.msra.mxu1 %v6065_v36 }
 0xde0   :  { %3433 = vmatprep.subr.mxu0 %v6068_v37  ;;  %3504 = vmatprep.subr.mxu1 %v6893_v56  ;;  %v4431_v56 = vld [vmem:[#allocation11 + $0x1a0] sm:$0xff] }
 0xde1   :  { %3434 = vmatpush1.msra.mxu0 %v6894_v50  ;;  %3505 = vmatpush1.msra.mxu1 %v6895_v26  ;;  %v4432_v50 = vld [vmem:[#allocation11 + $0x1b0] sm:$0xff]  ;;  %v4433_v26 = vld [vmem:[#allocation11 + $0x188] sm:$0xff] }
 0xde2   :  { %3435 = vmatprep.subr.mxu0 %v6896_v43  ;;  %3506 = vmatprep.subr.mxu1 %v6897_v49  ;;  %v4434_v43 = vld [vmem:[#allocation11 + $0x198] sm:$0xff]  ;;  %v4435_v49 = vld [vmem:[#allocation11 + $0x180] sm:$0xff] }
 0xde3   :  { %3436 = vmatpush1.msra.mxu0 %v6898_v25  ;;  %3507 = vmatpush1.msra.mxu1 %v6899_v3  ;;  %v4436_v25 = vld [vmem:[#allocation11 + $0x190] sm:$0xff]  ;;  %v4437_v3 = vld [vmem:[#allocation11 + $0x168] sm:$0xff] }
 0xde4   :  { %3437 = vmatprep.subr.mxu0 %v6900_v23  ;;  %3508 = vmatprep.subr.mxu1 %v6901_v63  ;;  %v4438_v23 = vld [vmem:[#allocation11 + $0x178] sm:$0xff]  ;;  %v4439_v63 = vld [vmem:[#allocation11 + $0x160] sm:$0xff] }
 0xde5   :  { %3438 = vmatpush1.msra.mxu0 %v6902_v54  ;;  %3509 = vmatpush1.msra.mxu1 %v6903_v57  ;;  %v4440_v54 = vld [vmem:[#allocation11 + $0x170] sm:$0xff]  ;;  %v4441_v57 = vld [vmem:[#allocation11 + $0x148] sm:$0xff] }
 0xde6   :  { %3439 = vmatprep.subr.mxu0 %v6904_v62  ;;  %3510 = vmatprep.subr.mxu1 %v6905_v58  ;;  %v4442_v62 = vld [vmem:[#allocation11 + $0x158] sm:$0xff]  ;;  %v4443_v58 = vld [vmem:[#allocation11 + $0x140] sm:$0xff] }
 0xde7   :  { %3440 = vmatpush1.msra.mxu0 %v6906_v2  ;;  %3511 = vmatpush1.msra.mxu1 %v6907_v60  ;;  %v4444_v2 = vld [vmem:[#allocation11 + $0x150] sm:$0xff]  ;;  %v4445_v60 = vld [vmem:[#allocation11 + $0x128] sm:$0xff] }
 0xde8   :  { %3441 = vmatprep.subr.mxu0 %v6908_v51  ;;  %3512 = vmatprep.subr.mxu1 %v6909_v6  ;;  %v4446_v51 = vld [vmem:[#allocation11 + $0x138] sm:$0xff]  ;;  %v4447_v6 = vld [vmem:[#allocation11 + $0x120] sm:$0xff] }
 0xde9   :  { %3442 = vmatpush1.msra.mxu0 %v6910_v7  ;;  %3475 = vmatprep.mubr.f32.mxu0 %v6911_v8  ;;  %v4448_v7 = vld [vmem:[#allocation11 + $0x130] sm:$0xff] }
 0xdea   :  { %3513 = vmatpush1.msra.mxu1 %v6912_v9  ;;  %3546 = vmatprep.mubr.f32.mxu1 %v6911_v8  ;;  %v4449_v9 = vld [vmem:[#allocation11 + $0x108] sm:$0xff] }
 0xdeb   :  { %3617 = vmatprep.subr.mxu0 %v4421_v10  ;;  %3688 = vmatprep.subr.mxu1 %v4422_v11  ;;  %v4450_v10 = vld [vmem:[#allocation11 + $0x118] sm:$0xff]  ;;  %v4451_v11 = vld [vmem:[#allocation11 + $0x100] sm:$0xff] }
 0xe8a   :  { %v3271_v0 = vpop.f32.mrf.mxu0  ;;  %v3342_v12 = vpop.f32.mrf.mxu1 }
 0xe8c   :  { %v3273_v13 = vpop.f32.mrf.mxu0  ;;  %v3344_v14 = vpop.f32.mrf.mxu1 }
 0xe8d   :  { %v3351_v16 = vcombine.low %v3271_v0, %v3273_v13  ;;  %v3352_v19 = vcombine.low %v3342_v12, %v3344_v14  ;;  %v4452_v0 = vld [vmem:[#allocation11 + $0x110] sm:$0xff]  ;;  %v4453_v12 = vld [vmem:[#allocation11 + $0xe8] sm:$0xff]  ;;  %v4454_v13 = vld [vmem:[#allocation11 + $0xf8] sm:$0xff] }
 0xe8e   :  { %v4455_v14 = vld [vmem:[#allocation11 + $0xe0] sm:$0xff] }
 0xe8f   :  { %v3359_v20 = vrot.slane %v3351_v16, %v5218_v53  ;;  %v3366_v21 = vrot.slane %v3352_v19, %v5218_v53  ;;  %v4456_v16 = vld [vmem:[#allocation11 + $0xf0] sm:$0xff]  ;;  %v4457_v19 = vld [vmem:[#allocation11 + $0xc8] sm:$0xff] }
 0xe91   :  { %v3367_v22 = vcombine.low %v3359_v20, %v3366_v21  ;;  %v4458_v20 = vld [vmem:[#allocation11 + $0xd8] sm:$0xff]  ;;  %v4459_v21 = vld [vmem:[#allocation11 + $0xc0] sm:$0xff] }
 0xe93   :  { %v3374_v24 = vrot.slane %v3367_v22, %v5218_v53  ;;  %v4460_v22 = vld [vmem:[#allocation11 + $0xd0] sm:$0xff] }
 0xe95   :  { %v3376_v28 = vadd.f32 %v3374_v24, %v3204_v27  ;;  %v4461_v24 = vld [vmem:[#allocation11 + $0xa8] sm:$0xff]  ;;  %v4462_v27 = vld [vmem:[#allocation11 + $0xb8] sm:$0xff] }
 0xe97   :  { %v4010_v29 = vmul.f32 -1.442695, %v3376_v28  ;;  %v3384_v30 = vrot.slane %v3376_v28, 1  ;;  %v3392_v32 = vrot.slane %v3376_v28, 2  ;;  %v3400_v35 = vrot.slane %v3376_v28, 3  ;;  %v4463_v28 = vld [vmem:[#allocation11 + $0xa0] sm:$0xff] }
 0xe99   :  { %4239 = vpow2.f32 %v4010_v29  ;;  %v4011_v31 = vmul.f32 -1.442695, %v3384_v30  ;;  %v4012_v33 = vmul.f32 -1.442695, %v3392_v32  ;;  %v4464_v29 = vld [vmem:[#allocation11 + $0xb0] sm:$0xff]  ;;  %v4465_v30 = vld [vmem:[#allocation11 + $0x88] sm:$0xff] }
 0xe9a   :  { %v4467_v32 = vld [vmem:[#allocation11 + $0x80] sm:$0xff] }
 0xe9b   :  { %4241 = vpow2.f32 %v4011_v31  ;;  %v4466_v31 = vld [vmem:[#allocation11 + $0x98] sm:$0xff] }
 0xe9c   :  { %4243 = vpow2.f32 %v4012_v33  ;;  %v4468_v33 = vld [vmem:[#allocation11 + $0x90] sm:$0xff] }
 0xea6   :  { %v4240_v34 = vpop.eup %4239 }
 0xea7   :  { %v3380_v36 = vadd.f32 1.0, %v4240_v34  ;;  %v4469_v34 = vld [vmem:[#allocation11 + $0x68] sm:$0xff] }
 0xea8   :  { %v4242_v37 = vpop.eup %4241 }
 0xea9   :  { %4245 = vrcp.f32 %v3380_v36  ;;  %v3389_v5 = vadd.f32 1.0, %v4242_v37  ;;  %v4244_v48 = vpop.eup %4243  ;;  %v4471_v36 = vld [vmem:[#allocation11 + $0x60] sm:$0xff]  ;;  %v4472_v37 = vld [vmem:[#allocation11 + $0x70] sm:$0xff] }
 0xeaa   :  { %4247 = vtanh.f32 %v3400_v35  ;;  %v3397_v41 = vadd.f32 1.0, %v4244_v48  ;;  %v4470_v35 = vld [vmem:[#allocation11 + $0x78] sm:$0xff] }
 0xeab   :  { %4249 = vrcp.f32 %v3389_v5  ;;  %v4473_v5 = vld [vmem:[#allocation11 + $0x48] sm:$0xff]  ;;  %v4474_v48 = vld [vmem:[#allocation11 + $0x58] sm:$0xff] }
 0xeac   :  { %4251 = vrcp.f32 %v3397_v41  ;;  %v4478_v41 = vld [vmem:[#allocation11 + $0x38] sm:$0xff] }
 0xeb6   :  { %v4246_v39 = vpop.eup %4245 }
 0xeb7   :  { %v4248_v59 = vpop.eup %4247  ;;  %v3403_v45 = vmul.f32 %v4246_v39, %v6355_v61  ;;  %v4427_v61 = vld [vmem:[#allocation11 + $0x1c0] sm:$0xff] }
 0xeb8   :  { %v4250_v44 = vpop.eup %4249  ;;  %v4475_v39 = vld [vmem:[#allocation11 + $0x40] sm:$0xff] }
 0xeb9   :  { %v3404_v40 = vmul.f32 %v4250_v44, %v4248_v59  ;;  %v4252_v47 = vpop.eup %4251  ;;  %v4476_v59 = vld [vmem:[#allocation11 + $0x50] sm:$0xff]  ;;  %v4477_v44 = vld [vmem:[#allocation11 + $0x28] sm:$0xff] }
 0xebb   :  { %v6426_v55 = vadd.f32 %v3404_v40, %v3403_v45  ;;  %v4479_v45 = vld [vmem:[#allocation11 + $0x20] sm:$0xff]  ;;  %v4480_v40 = vld [vmem:[#allocation11 + $0x30] sm:$0xff] }
 0xebd   :  { %4253 = vtanh.f32 %v6426_v55 }
 0xeca   :  { %v4254_v52 = vpop.eup %4253 }
 0xecb   :  { %v3407_v46 = vmul.f32 %v4254_v52, %v4252_v47  ;;  %v4481_v47 = vld [vmem:[#allocation11 + $0x8] sm:$0xff]  ;;  %v4482_v52 = vld [vmem:[#allocation11 + $0x18] sm:$0xff] }
 0xecd   :  { %3408 = vst [vmem:[#allocation4 + $0x5] sm:$0x1] %v3407_v46  ;;  %3476 = vmatmul.mubr.f32.vlgmr.msra.gmra.mxu0 %v3407_v46  ;;  %3547 = vmatmul.mubr.f32.vlgmr.msra.gmra.mxu1 %v3407_v46  ;;  %v4483_v46 = vld [vmem:[#allocation11] sm:$0xff] }
 0xece   :  { %3618 = vmatpush1.msra.mxu0 %v4423_v42  ;;  %3689 = vmatpush1.msra.mxu1 %v4424_v4  ;;  %v4484_v42 = vld [vmem:[#allocation11 + $0x10] sm:$0xff] }
 0xecf   :  { %3619 = vmatprep.subr.mxu0 %v4425_v18  ;;  %3690 = vmatprep.subr.mxu1 %v4426_v38 }
 0xed0   :  { %3620 = vmatpush1.msra.mxu0 %v4427_v61  ;;  %3691 = vmatpush1.msra.mxu1 %v4428_v17 }
 0xed1   :  { %3621 = vmatprep.subr.mxu0 %v4429_v1  ;;  %3692 = vmatprep.subr.mxu1 %v4430_v15 }
 0xed2   :  { %3622 = vmatpush1.msra.mxu0 %v4431_v56  ;;  %3693 = vmatpush1.msra.mxu1 %v4432_v50 }
 0xed3   :  { %3623 = vmatprep.subr.mxu0 %v4433_v26  ;;  %3694 = vmatprep.subr.mxu1 %v4434_v43  ;;  %v3410_v43 = vld [vmem:[#allocation3 + $0x6] ss:$8 sm:$0xf] }
 0xed4   :  { %3624 = vmatpush1.msra.mxu0 %v4435_v49  ;;  %3695 = vmatpush1.msra.mxu1 %v4436_v25 }
 0xed5   :  { %3625 = vmatprep.subr.mxu0 %v4437_v3  ;;  %3696 = vmatprep.subr.mxu1 %v4438_v23 }
 0xed6   :  { %3626 = vmatpush1.msra.mxu0 %v4439_v63  ;;  %3697 = vmatpush1.msra.mxu1 %v4440_v54 }
 0xed7   :  { %3627 = vmatprep.subr.mxu0 %v4441_v57  ;;  %3698 = vmatprep.subr.mxu1 %v4442_v62 }
 0xed8   :  { %3628 = vmatpush1.msra.mxu0 %v4443_v58  ;;  %3699 = vmatpush1.msra.mxu1 %v4444_v2 }
 0xed9   :  { %3629 = vmatprep.subr.mxu0 %v4445_v60  ;;  %3700 = vmatprep.subr.mxu1 %v4446_v51 }
 0xeda   :  { %3630 = vmatpush1.msra.mxu0 %v4447_v6  ;;  %3701 = vmatpush1.msra.mxu1 %v4448_v7 }
 0xedb   :  { %3631 = vmatprep.subr.mxu0 %v4449_v9  ;;  %3702 = vmatprep.subr.mxu1 %v4450_v10 }
 0xedc   :  { %3632 = vmatpush1.msra.mxu0 %v4451_v11  ;;  %3703 = vmatpush1.msra.mxu1 %v4452_v0 }
 0xedd   :  { %3633 = vmatprep.subr.mxu0 %v4453_v12  ;;  %3704 = vmatprep.subr.mxu1 %v4454_v13 }
 0xede   :  { %3634 = vmatpush1.msra.mxu0 %v4455_v14  ;;  %3705 = vmatpush1.msra.mxu1 %v4456_v16 }
 0xedf   :  { %3635 = vmatprep.subr.mxu0 %v4457_v19  ;;  %3706 = vmatprep.subr.mxu1 %v4458_v20  ;;  %v3853_v19 = vld [vmem:[#allocation13 + $0xf8] sm:$0xff]  ;;  %v3852_v20 = vld [vmem:[#allocation13 + $0xf0] sm:$0xff] }
 0xee0   :  { %3636 = vmatpush1.msra.mxu0 %v4459_v21  ;;  %3707 = vmatpush1.msra.mxu1 %v4460_v22  ;;  %v3851_v21 = vld [vmem:[#allocation13 + $0xe8] sm:$0xff]  ;;  %v3849_v22 = vld [vmem:[#allocation13 + $0xd8] sm:$0xff] }
 0xee1   :  { %3637 = vmatprep.subr.mxu0 %v4461_v24  ;;  %3708 = vmatprep.subr.mxu1 %v4462_v27  ;;  %v3848_v24 = vld [vmem:[#allocation13 + $0xd0] sm:$0xff]  ;;  %v3847_v27 = vld [vmem:[#allocation13 + $0xc8] sm:$0xff] }
 0xee2   :  { %3638 = vmatpush1.msra.mxu0 %v4463_v28  ;;  %3709 = vmatpush1.msra.mxu1 %v4464_v29  ;;  %v3846_v28 = vld [vmem:[#allocation13 + $0xc0] sm:$0xff]  ;;  %v3845_v29 = vld [vmem:[#allocation13 + $0xb8] sm:$0xff] }
 0xee3   :  { %3639 = vmatprep.subr.mxu0 %v4465_v30  ;;  %3710 = vmatprep.subr.mxu1 %v4466_v31  ;;  %v3844_v30 = vld [vmem:[#allocation13 + $0xb0] sm:$0xff]  ;;  %v3842_v31 = vld [vmem:[#allocation13 + $0xa0] sm:$0xff] }
 0xee4   :  { %3640 = vmatpush1.msra.mxu0 %v4467_v32  ;;  %3711 = vmatpush1.msra.mxu1 %v4468_v33  ;;  %v3841_v32 = vld [vmem:[#allocation13 + $0x98] sm:$0xff]  ;;  %v3840_v33 = vld [vmem:[#allocation13 + $0x90] sm:$0xff] }
 0xee5   :  { %3641 = vmatprep.subr.mxu0 %v4469_v34  ;;  %3712 = vmatprep.subr.mxu1 %v4470_v35  ;;  %v3839_v34 = vld [vmem:[#allocation13 + $0x88] sm:$0xff]  ;;  %v3838_v35 = vld [vmem:[#allocation13 + $0x80] sm:$0xff] }
 0xee6   :  { %3642 = vmatpush1.msra.mxu0 %v4471_v36  ;;  %3713 = vmatpush1.msra.mxu1 %v4472_v37  ;;  %v3837_v36 = vld [vmem:[#allocation13 + $0x78] sm:$0xff]  ;;  %v3836_v37 = vld [vmem:[#allocation13 + $0x70] sm:$0xff] }
 0xee7   :  { %3643 = vmatprep.subr.mxu0 %v4473_v5  ;;  %3714 = vmatprep.subr.mxu1 %v4474_v48  ;;  %v3835_v5 = vld [vmem:[#allocation13 + $0x68] sm:$0xff]  ;;  %v3834_v48 = vld [vmem:[#allocation13 + $0x60] sm:$0xff] }
 0xee8   :  { %3644 = vmatpush1.msra.mxu0 %v4475_v39  ;;  %3715 = vmatpush1.msra.mxu1 %v4476_v59  ;;  %v3833_v39 = vld [vmem:[#allocation13 + $0x58] sm:$0xff]  ;;  %v3832_v59 = vld [vmem:[#allocation13 + $0x50] sm:$0xff] }
 0xee9   :  { %3645 = vmatprep.subr.mxu0 %v4477_v44  ;;  %3716 = vmatprep.subr.mxu1 %v4478_v41  ;;  %v3831_v44 = vld [vmem:[#allocation13 + $0x48] sm:$0xff]  ;;  %v3830_v41 = vld [vmem:[#allocation13 + $0x40] sm:$0xff] }
 0xeea   :  { %3646 = vmatpush1.msra.mxu0 %v4479_v45  ;;  %3717 = vmatpush1.msra.mxu1 %v4480_v40  ;;  %v3829_v45 = vld [vmem:[#allocation13 + $0x38] sm:$0xff]  ;;  %v3828_v40 = vld [vmem:[#allocation13 + $0x30] sm:$0xff] }
 0xeeb   :  { %3647 = vmatprep.subr.mxu0 %v4481_v47  ;;  %3718 = vmatprep.subr.mxu1 %v4482_v52  ;;  %v3827_v47 = vld [vmem:[#allocation13 + $0x28] sm:$0xff]  ;;  %v3826_v52 = vld [vmem:[#allocation13 + $0x20] sm:$0xff] }
 0xeec   :  { %3648 = vmatpush1.msra.mxu0 %v4483_v46  ;;  %3681 = vmatprep.mubr.f32.mxu0 %v6911_v8  ;;  %v3825_v46 = vld [vmem:[#allocation13 + $0x18] sm:$0xff] }
 0xeed   :  { %3719 = vmatpush1.msra.mxu1 %v4484_v42  ;;  %3752 = vmatprep.mubr.f32.mxu1 %v6911_v8  ;;  %v3824_v42 = vld [vmem:[#allocation13 + $0x10] sm:$0xff] }
 0xeee   :  { %3866 = vmatprep.subr.mxu0 %v3853_v19 }
 0xf8d   :  { %v3477_v4 = vpop.f32.mrf.mxu0  ;;  %v3548_v18 = vpop.f32.mrf.mxu1 }
 0xf8f   :  { %v3479_v38 = vpop.f32.mrf.mxu0  ;;  %v3550_v61 = vpop.f32.mrf.mxu1 }
 0xf90   :  { %v3557_v17 = vcombine.low %v3477_v4, %v3479_v38  ;;  %v3558_v1 = vcombine.low %v3548_v18, %v3550_v61  ;;  %v3823_v4 = vld [vmem:[#allocation13 + $0x8] sm:$0xff]  ;;  %v3822_v18 = vld [vmem:[#allocation13] sm:$0xff] }
 0xf92   :  { %v3565_v15 = vrot.slane %v3557_v17, %v5218_v53  ;;  %v3572_v56 = vrot.slane %v3558_v1, %v5218_v53 }
 0xf94   :  { %v3573_v50 = vcombine.low %v3565_v15, %v3572_v56 }
 0xf96   :  { %v3580_v26 = vrot.slane %v3573_v50, %v5218_v53 }
 0xf98   :  { %v3582_v49 = vadd.f32 %v3580_v26, %v3410_v43 }
 0xf9a   :  { %v4013_v25 = vmul.f32 -1.442695, %v3582_v49  ;;  %v3590_v3 = vrot.slane %v3582_v49, 1  ;;  %v3598_v63 = vrot.slane %v3582_v49, 2  ;;  %v3606_v62 = vrot.slane %v3582_v49, 3 }
 0xf9c   :  { %4255 = vpow2.f32 %v4013_v25  ;;  %v4014_v23 = vmul.f32 -1.442695, %v3590_v3  ;;  %v4015_v54 = vmul.f32 -1.442695, %v3598_v63 }
 0xf9d   :  { %v3616_v25 = vld [vmem:[#allocation3 + $0x7] ss:$8 sm:$0xf] }
 0xf9e   :  { %4257 = vpow2.f32 %v4014_v23 }
 0xf9f   :  { %4259 = vpow2.f32 %v4015_v54 }
 0xfa9   :  { %v4256_v57 = vpop.eup %4255 }
 0xfaa   :  { %v3586_v58 = vadd.f32 1.0, %v4256_v57 }
 0xfab   :  { %v4258_v2 = vpop.eup %4257 }
 0xfac   :  { %4261 = vrcp.f32 %v3586_v58  ;;  %v3595_v60 = vadd.f32 1.0, %v4258_v2  ;;  %v4260_v51 = vpop.eup %4259 }
 0xfad   :  { %4263 = vtanh.f32 %v3606_v62  ;;  %v3603_v10 = vadd.f32 1.0, %v4260_v51 }
 0xfae   :  { %4265 = vrcp.f32 %v3595_v60 }
 0xfaf   :  { %4267 = vrcp.f32 %v3603_v10 }
 0xfb9   :  { %v4262_v6 = vpop.eup %4261 }
 0xfba   :  { %v4264_v7 = vpop.eup %4263  ;;  %v3609_v11 = vmul.f32 %v4262_v6, %v6426_v55  ;;  %v3850_v55 = vld [vmem:[#allocation13 + $0xe0] sm:$0xff] }
 0xfbb   :  { %v4266_v9 = vpop.eup %4265 }
 0xfbc   :  { %v3610_v0 = vmul.f32 %v4266_v9, %v4264_v7  ;;  %v4268_v13 = vpop.eup %4267 }
 0xfbe   :  { %v6435_v12 = vadd.f32 %v3610_v0, %v3609_v11 }
 0xfc0   :  { %4269 = vtanh.f32 %v6435_v12 }
 0xfcd   :  { %v4270_v14 = vpop.eup %4269 }
 0xfce   :  { %v3613_v16 = vmul.f32 %v4270_v14, %v4268_v13 }
 0xfd0   :  { %3614 = vst [vmem:[#allocation4 + $0x6] sm:$0x1] %v3613_v16  ;;  %3682 = vmatmul.mubr.f32.vlgmr.msra.gmra.mxu0 %v3613_v16  ;;  %3753 = vmatmul.mubr.f32.vlgmr.msra.gmra.mxu1 %v3613_v16 }
 0xfd1   :  { %3930 = vmatprep.mubr.f32.mxu0 %v6911_v8  ;;  %3867 = vmatpush1.msra.mxu0 %v3852_v20  ;;  %v3843_v8 = vld [vmem:[#allocation13 + $0xa8] sm:$0xff] }
 0xfd2   :  { %3868 = vmatprep.subr.mxu0 %v3851_v21 }
 0xfd3   :  { %3869 = vmatpush1.msra.mxu0 %v3850_v55  ;;  %v3854_v55 = vld [vmem:[%s6459_s6] sm:$0x3]  ;;  %s4624_s6 = smov [#allocation14]  }
 0xfd4   :  { %3870 = vmatprep.subr.mxu0 %v3849_v22  ;;  %v6913_v22 = vld [vmem:[#allocation41_spill] sm:$0xff]  ;;  %s3960_s28 = sshll.u32 %s4624_s6, 4  ;;  %s3961_s28 = int_to_ptr.vmem [resolvable:$true] %s3960_s28 }
 0xfd5   :  { %3871 = vmatpush1.msra.mxu0 %v3848_v24  ;;  %v6914_v24 = vsub.s32 0, %v6913_v22  ;;  %s4585_s29 = scalar_lea.vmem %s3961_s28, 256  ;;  %p4590_p12 = scmp.lt.s32.totalorder %s3961_s28, %s3961_s28 }
 0xfd6   :  { %3872 = vmatprep.subr.mxu0 %v3847_v27  ;;  %p4586_p11 = scmp.ne.s32.totalorder %s3961_s28, %s4585_s29  ;;  %p4591_p13 = scmp.lt.s32.totalorder %s4585_s29, %s4585_s29 }
 0xfd7   :  { %3873 = vmatpush1.msra.mxu0 %v3846_v28  ;;  %v3859_v27 = vrot.slane %v3854_v55, %v6914_v24  ;;  %v6915_v28 = vsub.s32 1, %v6913_v22 }
 0xfd8   :  { %3874 = vmatprep.subr.mxu0 %v3845_v29  ;;  %p4592_p0 = por %p4591_p13, %p4590_p12 }
 0xfd9   :  { %3875 = vmatpush1.msra.mxu0 %v3844_v30 }
 0xfda   :  { %3876 = vmatprep.subr.mxu0 %v3843_v8  ;;  %p4593_p1 = pnand %p4592_p0, %p4586_p11 }
 0xfdb   :  { %3877 = vmatpush1.msra.mxu0 %v3842_v31 }
 0xfdc   :  { %3878 = vmatprep.subr.mxu0 %v3841_v32 }
 0xfdd   :  { %3879 = vmatpush1.msra.mxu0 %v3840_v33 }
 0xfde   :  { %3880 = vmatprep.subr.mxu0 %v3839_v34 }
 0xfdf   :  { %3881 = vmatpush1.msra.mxu0 %v3838_v35 }
 0xfe0   :  { %3882 = vmatprep.subr.mxu0 %v3837_v36 }
 0xfe1   :  { %3883 = vmatpush1.msra.mxu0 %v3836_v37 }
 0xfe2   :  { %3884 = vmatprep.subr.mxu0 %v3835_v5 }
 0xfe3   :  { %3885 = vmatpush1.msra.mxu0 %v3834_v48 }
 0xfe4   :  { %3886 = vmatprep.subr.mxu0 %v3833_v39 }
 0xfe5   :  { %3887 = vmatpush1.msra.mxu0 %v3832_v59 }
 0xfe6   :  { %3888 = vmatprep.subr.mxu0 %v3831_v44 }
 0xfe7   :  { %3889 = vmatpush1.msra.mxu0 %v3830_v41 }
 0xfe8   :  { %3890 = vmatprep.subr.mxu0 %v3829_v45 }
 0xfe9   :  { %3891 = vmatpush1.msra.mxu0 %v3828_v40 }
 0xfea   :  { %3892 = vmatprep.subr.mxu0 %v3827_v47 }
 0xfeb   :  { %3893 = vmatpush1.msra.mxu0 %v3826_v52 }
 0xfec   :  { %3894 = vmatprep.subr.mxu0 %v3825_v46 }
 0xfed   :  { %3895 = vmatpush1.msra.mxu0 %v3824_v42 }
 0xfee   :  { %3896 = vmatprep.subr.mxu0 %v3823_v4 }
 0xfef   :  { %3897 = vmatpush1.msra.mxu0 %v3822_v18 }
0x1090   :  { %v3683_v38 = vpop.f32.mrf.mxu0  ;;  %v3754_v61 = vpop.f32.mrf.mxu1 }
0x1092   :  { %v3685_v17 = vpop.f32.mrf.mxu0  ;;  %v3756_v1 = vpop.f32.mrf.mxu1 }
0x1093   :  { %v3763_v15 = vcombine.low %v3683_v38, %v3685_v17  ;;  %v3764_v56 = vcombine.low %v3754_v61, %v3756_v1 }
0x1095   :  { %v3771_v50 = vrot.slane %v3763_v15, %v5218_v53  ;;  %v3778_v26 = vrot.slane %v3764_v56, %v5218_v53 }
0x1097   :  { %v3779_v43 = vcombine.low %v3771_v50, %v3778_v26 }
0x1099   :  { %v3786_v49 = vrot.slane %v3779_v43, %v5218_v53 }
0x109b   :  { %v3788_v3 = vadd.f32 %v3786_v49, %v3616_v25 }
0x109d   :  { %v4016_v23 = vmul.f32 -1.442695, %v3788_v3  ;;  %v3796_v63 = vrot.slane %v3788_v3, 1  ;;  %v3804_v57 = vrot.slane %v3788_v3, 2  ;;  %v3812_v2 = vrot.slane %v3788_v3, 3 }
0x109f   :  { %4271 = vpow2.f32 %v4016_v23  ;;  %v4017_v54 = vmul.f32 -1.442695, %v3796_v63  ;;  %v4018_v62 = vmul.f32 -1.442695, %v3804_v57 }
0x10a1   :  { %4273 = vpow2.f32 %v4017_v54 }
0x10a2   :  { %4275 = vpow2.f32 %v4018_v62 }
0x10ac   :  { %v4272_v58 = vpop.eup %4271 }
0x10ad   :  { %v3792_v60 = vadd.f32 1.0, %v4272_v58 }
0x10ae   :  { %v4274_v51 = vpop.eup %4273 }
0x10af   :  { %4277 = vrcp.f32 %v3792_v60  ;;  %v3801_v6 = vadd.f32 1.0, %v4274_v51  ;;  %v4276_v7 = vpop.eup %4275 }
0x10b0   :  { %4279 = vtanh.f32 %v3812_v2  ;;  %v3809_v11 = vadd.f32 1.0, %v4276_v7 }
0x10b1   :  { %4281 = vrcp.f32 %v3801_v6 }
0x10b2   :  { %4283 = vrcp.f32 %v3809_v11 }
0x10bc   :  { %v4278_v53 = vpop.eup %4277 }
0x10bd   :  { %v4280_v9 = vpop.eup %4279  ;;  %v3815_v0 = vmul.f32 %v4278_v53, %v6435_v12  ;;  %v3863_v12 = vrot.slane %v3854_v55, %v6915_v28 }
0x10be   :  { %v4282_v10 = vpop.eup %4281 }
0x10bf   :  { %v3816_v13 = vmul.f32 %v4282_v10, %v4280_v9  ;;  %v4284_v16 = vpop.eup %4283 }
0x10c1   :  { %v3817_v14 = vadd.f32 %v3816_v13, %v3815_v0 }
0x10c3   :  { %4285 = vtanh.f32 %v3817_v14 }
0x10d0   :  { %v4286_v19 = vpop.eup %4285 }
0x10d1   :  { %v3819_v20 = vmul.f32 %v4286_v19, %v4284_v16 }
0x10d3   :  { %3820 = vst [vmem:[#allocation4 + $0x7] sm:$0x1] %v3819_v20 }
0x10da   :  { %v3821_v21 = vld [vmem:[#allocation4] sm:$0xff] }
0x10db   :  { %3931 = vmatmul.mubr.f32.vlgmr.msra.gmra.mxu0 %v3821_v21 }
0x119b   :  { %v3932_v29 = vpop.f32.mrf.mxu0 }
0x119c   :  { %v3933_v8 = vadd.f32 %v3932_v29, %v3859_v27 }
0x119d   :  { %v3934_v30 = vpop.f32.mrf.mxu0 }
0x119e   :  { %v3935_v31 = vadd.f32 %v3934_v30, %v3863_v12 }
0x11a0   :  { %v3937_v32 = vmax.f32 %v3933_v8, %v3935_v31 }
0x11a2   :  { %3938 = vmax.xlane.f32.xlu0 %v3937_v32 }
0x122b   :  { %v3939_v33 = vpop.xlane.xlu0 %3938 }
0x122c   :  { %v3940_v34 = vsub.f32 %v3933_v8, %v3939_v33  ;;  %v3941_v35 = vsub.f32 %v3935_v31, %v3939_v33 }
0x122e   :  { %v3942_v36 = vmul.f32 1.442695, %v3940_v34  ;;  %v3944_v37 = vmul.f32 1.442695, %v3941_v35 }
0x1230   :  { %4287 = vpow2.f32 %v3942_v36 }
0x1231   :  { %4289 = vpow2.f32 %v3944_v37 }
0x123d   :  { %v4288_v5 = vpop.eup %4287 }
0x123e   :  { %v4290_v48 = vpop.eup %4289 }
0x123f   :  { %v3946_v39 = vadd.f32 %v4290_v48, %v4288_v5 }
0x1241   :  { %3947 = vadd.xlane.f32.xlu0 %v3946_v39 }
0x12ca   :  { %v3948_v59 = vpop.xlane.xlu0 %3947 }
0x12cb   :  { %4291 = vrcp.f32 %v3948_v59 }
0x12d8   :  { %v4292_v44 = vpop.eup %4291 }
0x12d9   :  { %v3950_v41 = vmul.f32 %v4292_v44, %v4288_v5  ;;  %v3951_v45 = vmul.f32 %v4292_v44, %v4290_v48 }
0x12db   :  { %3952 = vst [vmem:[#allocation14] sm:$0xff] %v3950_v41  ;;  %3953 = vst [vmem:[#allocation14 + $0x8] sm:$0xff] %v3951_v45 }
0x12dc   :  { %4596 = shalt.err (!%p4593_p1)
}
0x12dd   :  { %3963 = dma.vmem_to_hbm [thread:$0]  %s3961_s28, 256, %s6460_s7, [#allocation7]  }
0x12de   :  { %4611 = dma.done.wait [#allocation7], 256  }
0x12df   :  { %4612 = vsyncadd [#allocation7], 4294967040 }
0x12e0   :  { %3967 = vsyncpa [#allocation6], 1 }
0x12e1   :  { %3968 = vsyncpa [#allocation9], 1 }
0x12e2   :  { %3969 = vsyncpa [#allocation12], 1 }
0x12e3   :  { %3970 = vsyncpa [#allocation7], 1 }

</bundles_post_ra>
